<compile_context>
chip_gen: v5e
topology: v5e:2x2
jax: 0.10.0
libtpu: 0.0.40
codegen_flags: <defaults>
</compile_context>

<pallas_src>
import numpy as np
import jax
import jax.numpy as jnp
from jax import lax
from jax.experimental import pallas as pl
from jax.experimental.pallas import tpu as pltpu

DEQ_SCALE = 2.46902e-05
DEQ_OFFSETS = (1.02329, 0.000705523, 0.268245, 0.000560173)


# ---------------------------------------------------------------------------
# Host-side constant builders: 0/1 selection matrices that implement im2col /
# pooling window gathers as exact matmuls inside the kernel.
# ---------------------------------------------------------------------------
def _conv_selection(h_in, w_in, kh, kw, stride, pad):
    h_out = (h_in + 2 * pad - kh) // stride + 1
    w_out = (w_in + 2 * pad - kw) // stride + 1
    sel = np.zeros((kh * kw, h_in * w_in, h_out * w_out), np.float32)
    for i in range(kh):
        for j in range(kw):
            t = i * kw + j
            for ho in range(h_out):
                hi = ho * stride + i - pad
                if not (0 <= hi < h_in):
                    continue
                for wo in range(w_out):
                    wi = wo * stride + j - pad
                    if 0 <= wi < w_in:
                        sel[t, hi * w_in + wi, ho * w_out + wo] = 1.0
    return sel, h_out, w_out


def _pool_selection(h_in, w_in):
    h_out, w_out = h_in // 2, w_in // 2
    sel = np.zeros((4, h_in * w_in, h_out * w_out), np.float32)
    for dy in range(2):
        for dx in range(2):
            t = dy * 2 + dx
            for ho in range(h_out):
                for wo in range(w_out):
                    sel[t, (2 * ho + dy) * w_in + (2 * wo + dx),
                        ho * w_out + wo] = 1.0
    return sel, h_out, w_out


# ---------------------------------------------------------------------------
# The single fused Pallas kernel (one grid step == one sample).
# ---------------------------------------------------------------------------
def _frontnet_kernel(p0_ref, w0_ref, b0_ref, pool_ref,
                     w1_ref, b1_ref, s1_ref, w2_ref, b2_ref, s2_ref,
                     w3_ref, b3_ref, s3_ref, w4_ref, b4_ref, s4_ref,
                     w5_ref, b5_ref, s5_ref, w6_ref, b6_ref, s6_ref,
                     fcw_ref, fcb_ref, o_ref):
    f32 = jnp.float32

    # ---- conv0 (5x5, s2, pad2) on pre-extracted patches: one MXU matmul.
    a = jnp.dot(w0_ref[...], p0_ref[0], preferred_element_type=f32) + b0_ref[...]
    a = jnp.maximum(a, 0.0)                                   # (C0, H0*W0)

    # ---- fused 2x2/s2 max-pool: 4 selection gathers (exact) + elementwise max
    m00 = jnp.dot(a, pool_ref[0], preferred_element_type=f32)
    m01 = jnp.dot(a, pool_ref[1], preferred_element_type=f32)
    m10 = jnp.dot(a, pool_ref[2], preferred_element_type=f32)
    m11 = jnp.dot(a, pool_ref[3], preferred_element_type=f32)
    a = jnp.maximum(jnp.maximum(m00, m01), jnp.maximum(m10, m11))

    # ---- generic 3x3 conv (BN + quant consts folded into weights/bias) + relu
    def conv3x3(act, w_ref, b_ref, s_ref):
        taps = s_ref.shape[0]
        cout = b_ref.shape[0]
        # All taps' channel matmuls at once: (taps*Cout, Cin) @ (Cin, M_in).
        b_all = jnp.dot(w_ref[...], act, preferred_element_type=f32)
        acc = jnp.dot(b_all[0:cout, :], s_ref[0], preferred_element_type=f32)
        for t in range(1, taps):
            acc = acc + jnp.dot(b_all[t * cout:(t + 1) * cout, :], s_ref[t],
                                preferred_element_type=f32)
        return jnp.maximum(acc + b_ref[...], 0.0)

    a = conv3x3(a, w1_ref, b1_ref, s1_ref)   # layer1.conv1 (s2)
    a = conv3x3(a, w2_ref, b2_ref, s2_ref)   # layer1.conv2 (s1)
    a = conv3x3(a, w3_ref, b3_ref, s3_ref)   # layer2.conv1 (s2)
    a = conv3x3(a, w4_ref, b4_ref, s4_ref)   # layer2.conv2 (s1)
    a = conv3x3(a, w5_ref, b5_ref, s5_ref)   # layer3.conv1 (s2)
    a = conv3x3(a, w6_ref, b6_ref, s6_ref)   # layer3.conv2 (s1)

    # ---- FC + dequantization (scale/offset pre-folded into fcw/fcb).
    flat = a.reshape(-1, 1)                  # NCHW flatten(1): (c, h, w) order
    out = jnp.dot(fcw_ref[...], flat, preferred_element_type=f32) + fcb_ref[...]
    o_ref[0] = out                           # (4, 1) for this sample


def _full_spec(arr):
    zeros = (0,) * arr.ndim
    return pl.BlockSpec(arr.shape, lambda b, _z=zeros: _z)


# ---------------------------------------------------------------------------
# Forward pass wrapper: folds constants, builds selection matrices, and issues
# exactly one pallas_call for the whole network.
# ---------------------------------------------------------------------------
def frontnet_forward(x, W, consts):
    n, cin, h, w = x.shape
    c0 = W['conv.weight'].shape[0]

    # -------- layer-0 im2col of the raw input (the only XLA-side data prep)
    k0, s0, p0 = 5, 2, 2
    h0 = (h + 2 * p0 - k0) // s0 + 1
    w0o = (w + 2 * p0 - k0) // s0 + 1
    xp = jnp.pad(x, ((0, 0), (0, 0), (p0, p0), (p0, p0)))
    cols = [xp[:, :, i:i + s0 * h0:s0, j:j + s0 * w0o:s0]
            for i in range(k0) for j in range(k0)]
    patches = jnp.stack(cols, axis=2)                      # (N, Cin, 25, H0, W0)
    patches = patches.reshape(n, cin * k0 * k0, h0 * w0o)  # (N, K0, M0)
    kdim = cin * k0 * k0
    kpad = (-kdim) % 8                                     # sublane-align K
    patches = jnp.pad(patches, ((0, 0), (0, kpad), (0, 0)))

    # conv0 weights with BN gamma and the mul/div constants folded in (traced)
    g0 = W['bn.gamma'] * consts[0] / consts[1]
    w0m = (W['conv.weight'] * g0[:, None, None, None]).reshape(c0, kdim)
    w0m = jnp.pad(w0m, ((0, 0), (0, kpad)))
    b0 = (W['bn.beta'] * consts[0] / consts[1]).reshape(c0, 1)

    pool_np, hc, wc = _pool_selection(h0, w0o)
    pool_sel = jnp.asarray(pool_np)

    # -------- six 3x3 conv layers: folded weights + 0/1 selection matrices
    layer_defs = [
        ('layer1.conv1.weight', 'layer1.bn1', 2, 2),
        ('layer1.conv2.weight', 'layer1.bn2', 4, 1),
        ('layer2.conv1.weight', 'layer2.bn1', 6, 2),
        ('layer2.conv2.weight', 'layer2.bn2', 8, 1),
        ('layer3.conv1.weight', 'layer3.bn1', 10, 2),
        ('layer3.conv2.weight', 'layer3.bn2', 12, 1),
    ]
    conv_operands = []
    for wname, bn, ci, stride in layer_defs:
        wt = W[wname]
        cout, cinl, kh, kw = wt.shape
        scale = W[bn + '.gamma'] * consts[ci] / consts[ci + 1]
        ws = wt * scale[:, None, None, None]
        wstack = jnp.transpose(ws, (2, 3, 0, 1)).reshape(kh * kw * cout, cinl)
        bias = (W[bn + '.beta'] * consts[ci] / consts[ci + 1]).reshape(cout, 1)
        sel_np, hc, wc = _conv_selection(hc, wc, kh, kw, stride, 1)
        conv_operands += [wstack, bias, jnp.asarray(sel_np)]

    # -------- FC with dequantization folded in
    fcw = (W['fc.weight'] * DEQ_SCALE).astype(jnp.float32)
    fcb = (W['fc.bias'] * DEQ_SCALE
           + jnp.asarray(DEQ_OFFSETS, jnp.float32)).reshape(4, 1)

    operands = [patches, w0m, b0, pool_sel, *conv_operands, fcw, fcb]

    in_specs = [pl.BlockSpec((1,) + patches.shape[1:], lambda b: (b, 0, 0))]
    in_specs += [_full_spec(op) for op in operands[1:]]

    out = pl.pallas_call(
        _frontnet_kernel,
        out_shape=jax.ShapeDtypeStruct((n, 4, 1), jnp.float32),
        grid_spec=pltpu.PrefetchScalarGridSpec(
            num_scalar_prefetch=0,
            grid=(n,),
            in_specs=in_specs,
            out_specs=pl.BlockSpec((1, 4, 1), lambda b: (b, 0, 0)),
        ),
        compiler_params=pltpu.CompilerParams(
            dimension_semantics=("parallel",),      # shard samples across TCs
            vmem_limit_bytes=32 * 1024 * 1024,
        ),
    )(*operands)

    out = out.reshape(n, 4)
    return [out[:, 0:1], out[:, 1:2], out[:, 2:3], out[:, 3:4]]


# ---------------------------------------------------------------------------
# Pure-JAX reference (for correctness check).
# ---------------------------------------------------------------------------
def _conv_ref(x, w, stride, pad):
    return lax.conv_general_dilated(
        x, w, (stride, stride), [(pad, pad), (pad, pad)],
        dimension_numbers=('NCHW', 'OIHW', 'NCHW'))


def frontnet_reference(x, W, consts):
    def block(h, wk, bn, ci, stride, pad):
        c = _conv_ref(h, W[wk], stride, pad)
        y = W[bn + '.gamma'].reshape(1, -1, 1, 1) * c + W[bn + '.beta'].reshape(1, -1, 1, 1)
        return jnp.maximum(y * consts[ci] / consts[ci + 1], 0.0)

    h = block(x, 'conv.weight', 'bn', 0, 2, 2)
    h = lax.reduce_window(h, -jnp.inf, lax.max, (1, 1, 2, 2), (1, 1, 2, 2), 'VALID')
    h = block(h, 'layer1.conv1.weight', 'layer1.bn1', 2, 2, 1)
    h = block(h, 'layer1.conv2.weight', 'layer1.bn2', 4, 1, 1)
    h = block(h, 'layer2.conv1.weight', 'layer2.bn1', 6, 2, 1)
    h = block(h, 'layer2.conv2.weight', 'layer2.bn2', 8, 1, 1)
    h = block(h, 'layer3.conv1.weight', 'layer3.bn1', 10, 2, 1)
    h = block(h, 'layer3.conv2.weight', 'layer3.bn2', 12, 1, 1)
    flat = h.reshape(h.shape[0], -1)
    out = jnp.dot(flat, W['fc.weight'].T) + W['fc.bias']
    out = out * DEQ_SCALE + jnp.asarray(DEQ_OFFSETS, jnp.float32).reshape(1, 4)
    return [out[:, 0:1], out[:, 1:2], out[:, 2:3], out[:, 3:4]]


# ---------------------------------------------------------------------------
# Deterministic synthetic parameters (shapes implied by the forward pass).
# ---------------------------------------------------------------------------
def make_params(key):
    C0, C1, C2, C3 = 8, 8, 16, 32
    shapes = {
        'conv.weight': (C0, 1, 5, 5),
        'layer1.conv1.weight': (C1, C0, 3, 3),
        'layer1.conv2.weight': (C1, C1, 3, 3),
        'layer2.conv1.weight': (C2, C1, 3, 3),
        'layer2.conv2.weight': (C2, C2, 3, 3),
        'layer3.conv1.weight': (C3, C2, 3, 3),
        'layer3.conv2.weight': (C3, C3, 3, 3),
        'fc.weight': (4, C3),
        'fc.bias': (4,),
    }
    bn_channels = {
        'bn': C0, 'layer1.bn1': C1, 'layer1.bn2': C1,
        'layer2.bn1': C2, 'layer2.bn2': C2,
        'layer3.bn1': C3, 'layer3.bn2': C3,
    }
    W = {}
    keys = jax.random.split(key, len(shapes) + 2 * len(bn_channels))
    ki = 0
    for name, shp in shapes.items():
        W[name] = 0.1 * jax.random.normal(keys[ki], shp, jnp.float32)
        ki += 1
    for name, c in bn_channels.items():
        W[name + '.gamma'] = 1.0 + 0.05 * jax.random.normal(keys[ki], (c,), jnp.float32)
        ki += 1
        W[name + '.beta'] = 0.05 * jax.random.normal(keys[ki], (c,), jnp.float32)
        ki += 1
    consts = jnp.array([1.7, 2.3, 1.1, 1.9, 1.3, 2.7, 0.9, 1.5,
                        1.2, 2.1, 1.4, 1.8, 1.6, 2.2], jnp.float32)
    return W, consts


# ---------------------------------------------------------------------------
if __name__ == "__main__":
    key = jax.random.PRNGKey(0)
    k_param, k_in = jax.random.split(key)
    W, consts = make_params(k_param)

    # Small grayscale NCHW input consistent with the Frontnet forward pass.
    x = jax.random.normal(k_in, (2, 1, 32, 32), jnp.float32)

    outs = jax.jit(frontnet_forward)(x, W, consts)
    outs = [jax.block_until_ready(o) for o in outs]

    refs = frontnet_reference(x, W, consts)
    for o, r in zip(outs, refs):
        assert o.shape == (2, 1) and o.dtype == jnp.float32
        assert jnp.allclose(o, r, atol=1e-4, rtol=1e-3), (o, r)

    print("KERNEL_OK")
</pallas_src>

<mosaic_0001>
module attributes {stable_mosaic.version = 11 : i64} {
  func.func @_frontnet_kernel(%arg0: i32, %arg1: memref<1x32x256xf32, #tpu.memory_space<vmem>>, %arg2: memref<8x32xf32, #tpu.memory_space<vmem>>, %arg3: memref<8x1xf32, #tpu.memory_space<vmem>>, %arg4: memref<4x256x64xf32, #tpu.memory_space<vmem>>, %arg5: memref<72x8xf32, #tpu.memory_space<vmem>>, %arg6: memref<8x1xf32, #tpu.memory_space<vmem>>, %arg7: memref<9x64x16xf32, #tpu.memory_space<vmem>>, %arg8: memref<72x8xf32, #tpu.memory_space<vmem>>, %arg9: memref<8x1xf32, #tpu.memory_space<vmem>>, %arg10: memref<9x16x16xf32, #tpu.memory_space<vmem>>, %arg11: memref<144x8xf32, #tpu.memory_space<vmem>>, %arg12: memref<16x1xf32, #tpu.memory_space<vmem>>, %arg13: memref<9x16x4xf32, #tpu.memory_space<vmem>>, %arg14: memref<144x16xf32, #tpu.memory_space<vmem>>, %arg15: memref<16x1xf32, #tpu.memory_space<vmem>>, %arg16: memref<9x4x4xf32, #tpu.memory_space<vmem>>, %arg17: memref<288x16xf32, #tpu.memory_space<vmem>>, %arg18: memref<32x1xf32, #tpu.memory_space<vmem>>, %arg19: memref<9x4x1xf32, #tpu.memory_space<vmem>>, %arg20: memref<288x32xf32, #tpu.memory_space<vmem>>, %arg21: memref<32x1xf32, #tpu.memory_space<vmem>>, %arg22: memref<9x1x1xf32, #tpu.memory_space<vmem>>, %arg23: memref<4x32xf32, #tpu.memory_space<vmem>>, %arg24: memref<4x1xf32, #tpu.memory_space<vmem>>, %arg25: memref<1x4x1xf32, #tpu.memory_space<vmem>>) attributes {dimension_semantics = [#tpu.dimension_semantics<parallel>], iteration_bounds = array<i64: 2>, scalar_prefetch = 0 : i64, scratch_operands = 0 : i64, tpu.core_type = #tpu.core_type<tc>, window_params = [{transform_indices = @transform_0, window_bounds = array<i64: 1, 32, 256>}, {pipeline_mode = #tpu.pipeline_mode<synchronous>, transform_indices = @transform_1, window_bounds = array<i64: 8, 32>}, {pipeline_mode = #tpu.pipeline_mode<synchronous>, transform_indices = @transform_2, window_bounds = array<i64: 8, 1>}, {pipeline_mode = #tpu.pipeline_mode<synchronous>, transform_indices = @transform_3, window_bounds = array<i64: 4, 256, 64>}, {pipeline_mode = #tpu.pipeline_mode<synchronous>, transform_indices = @transform_4, window_bounds = array<i64: 72, 8>}, {pipeline_mode = #tpu.pipeline_mode<synchronous>, transform_indices = @transform_5, window_bounds = array<i64: 8, 1>}, {pipeline_mode = #tpu.pipeline_mode<synchronous>, transform_indices = @transform_6, window_bounds = array<i64: 9, 64, 16>}, {pipeline_mode = #tpu.pipeline_mode<synchronous>, transform_indices = @transform_7, window_bounds = array<i64: 72, 8>}, {pipeline_mode = #tpu.pipeline_mode<synchronous>, transform_indices = @transform_8, window_bounds = array<i64: 8, 1>}, {pipeline_mode = #tpu.pipeline_mode<synchronous>, transform_indices = @transform_9, window_bounds = array<i64: 9, 16, 16>}, {pipeline_mode = #tpu.pipeline_mode<synchronous>, transform_indices = @transform_10, window_bounds = array<i64: 144, 8>}, {pipeline_mode = #tpu.pipeline_mode<synchronous>, transform_indices = @transform_11, window_bounds = array<i64: 16, 1>}, {pipeline_mode = #tpu.pipeline_mode<synchronous>, transform_indices = @transform_12, window_bounds = array<i64: 9, 16, 4>}, {pipeline_mode = #tpu.pipeline_mode<synchronous>, transform_indices = @transform_13, window_bounds = array<i64: 144, 16>}, {pipeline_mode = #tpu.pipeline_mode<synchronous>, transform_indices = @transform_14, window_bounds = array<i64: 16, 1>}, {pipeline_mode = #tpu.pipeline_mode<synchronous>, transform_indices = @transform_15, window_bounds = array<i64: 9, 4, 4>}, {pipeline_mode = #tpu.pipeline_mode<synchronous>, transform_indices = @transform_16, window_bounds = array<i64: 288, 16>}, {pipeline_mode = #tpu.pipeline_mode<synchronous>, transform_indices = @transform_17, window_bounds = array<i64: 32, 1>}, {pipeline_mode = #tpu.pipeline_mode<synchronous>, transform_indices = @transform_18, window_bounds = array<i64: 9, 4, 1>}, {pipeline_mode = #tpu.pipeline_mode<synchronous>, transform_indices = @transform_19, window_bounds = array<i64: 288, 32>}, {pipeline_mode = #tpu.pipeline_mode<synchronous>, transform_indices = @transform_20, window_bounds = array<i64: 32, 1>}, {pipeline_mode = #tpu.pipeline_mode<synchronous>, transform_indices = @transform_21, window_bounds = array<i64: 9, 1, 1>}, {pipeline_mode = #tpu.pipeline_mode<synchronous>, transform_indices = @transform_22, window_bounds = array<i64: 4, 32>}, {pipeline_mode = #tpu.pipeline_mode<synchronous>, transform_indices = @transform_23, window_bounds = array<i64: 4, 1>}, {transform_indices = @transform_24, window_bounds = array<i64: 1, 4, 1>}]} {
    %c0 = arith.constant 0 : index
    %c0_0 = arith.constant 0 : index
    %0 = vector.load %arg2[%c0, %c0_0] : memref<8x32xf32, #tpu.memory_space<vmem>>, vector<8x32xf32>
    %c0_1 = arith.constant 0 : index
    %c0_2 = arith.constant 0 : index
    %c0_3 = arith.constant 0 : index
    %1 = vector.load %arg1[%c0_1, %c0_2, %c0_3] : memref<1x32x256xf32, #tpu.memory_space<vmem>>, vector<1x32x256xf32>
    %2 = vector.shape_cast %1 : vector<1x32x256xf32> to vector<32x256xf32>
    %cst = arith.constant dense<0.000000e+00> : vector<8x256xf32>
    %3 = tpu.matmul %0, %2, %cst {dimension_numbers = #tpu.dot_dimension_numbers<[1], [0], [0], [1], [0, 0, 1, 1], [], []>} : vector<8x32xf32>, vector<32x256xf32>, vector<8x256xf32> -> vector<8x256xf32>
    %c0_4 = arith.constant 0 : index
    %c0_5 = arith.constant 0 : index
    %4 = vector.load %arg3[%c0_4, %c0_5] : memref<8x1xf32, #tpu.memory_space<vmem>>, vector<8x1xf32>
    %5 = vector.broadcast %4 : vector<8x1xf32> to vector<8x256xf32>
    %6 = arith.addf %3, %5 : vector<8x256xf32>
    %cst_6 = arith.constant 0.000000e+00 : f32
    %7 = vector.broadcast %cst_6 : f32 to vector<8x256xf32>
    %8 = arith.maximumf %6, %7 : vector<8x256xf32>
    %c0_7 = arith.constant 0 : index
    %c0_8 = arith.constant 0 : index
    %c0_9 = arith.constant 0 : index
    %9 = vector.load %arg4[%c0_7, %c0_8, %c0_9] : memref<4x256x64xf32, #tpu.memory_space<vmem>>, vector<1x256x64xf32>
    %10 = vector.shape_cast %9 : vector<1x256x64xf32> to vector<256x64xf32>
    %cst_10 = arith.constant dense<0.000000e+00> : vector<8x64xf32>
    %11 = tpu.matmul %8, %10, %cst_10 {dimension_numbers = #tpu.dot_dimension_numbers<[1], [0], [0], [1], [0, 0, 1, 1], [], []>} : vector<8x256xf32>, vector<256x64xf32>, vector<8x64xf32> -> vector<8x64xf32>
    %c1 = arith.constant 1 : index
    %c0_11 = arith.constant 0 : index
    %c0_12 = arith.constant 0 : index
    %12 = vector.load %arg4[%c1, %c0_11, %c0_12] : memref<4x256x64xf32, #tpu.memory_space<vmem>>, vector<1x256x64xf32>
    %13 = vector.shape_cast %12 : vector<1x256x64xf32> to vector<256x64xf32>
    %cst_13 = arith.constant dense<0.000000e+00> : vector<8x64xf32>
    %14 = tpu.matmul %8, %13, %cst_13 {dimension_numbers = #tpu.dot_dimension_numbers<[1], [0], [0], [1], [0, 0, 1, 1], [], []>} : vector<8x256xf32>, vector<256x64xf32>, vector<8x64xf32> -> vector<8x64xf32>
    %c2 = arith.constant 2 : index
    %c0_14 = arith.constant 0 : index
    %c0_15 = arith.constant 0 : index
    %15 = vector.load %arg4[%c2, %c0_14, %c0_15] : memref<4x256x64xf32, #tpu.memory_space<vmem>>, vector<1x256x64xf32>
    %16 = vector.shape_cast %15 : vector<1x256x64xf32> to vector<256x64xf32>
    %cst_16 = arith.constant dense<0.000000e+00> : vector<8x64xf32>
    %17 = tpu.matmul %8, %16, %cst_16 {dimension_numbers = #tpu.dot_dimension_numbers<[1], [0], [0], [1], [0, 0, 1, 1], [], []>} : vector<8x256xf32>, vector<256x64xf32>, vector<8x64xf32> -> vector<8x64xf32>
    %c3 = arith.constant 3 : index
    %c0_17 = arith.constant 0 : index
    %c0_18 = arith.constant 0 : index
    %18 = vector.load %arg4[%c3, %c0_17, %c0_18] : memref<4x256x64xf32, #tpu.memory_space<vmem>>, vector<1x256x64xf32>
    %19 = vector.shape_cast %18 : vector<1x256x64xf32> to vector<256x64xf32>
    %cst_19 = arith.constant dense<0.000000e+00> : vector<8x64xf32>
    %20 = tpu.matmul %8, %19, %cst_19 {dimension_numbers = #tpu.dot_dimension_numbers<[1], [0], [0], [1], [0, 0, 1, 1], [], []>} : vector<8x256xf32>, vector<256x64xf32>, vector<8x64xf32> -> vector<8x64xf32>
    %21 = arith.maximumf %11, %14 : vector<8x64xf32>
    %22 = arith.maximumf %17, %20 : vector<8x64xf32>
    %23 = arith.maximumf %21, %22 : vector<8x64xf32>
    %c0_20 = arith.constant 0 : index
    %c0_21 = arith.constant 0 : index
    %24 = vector.load %arg5[%c0_20, %c0_21] : memref<72x8xf32, #tpu.memory_space<vmem>>, vector<72x8xf32>
    %cst_22 = arith.constant dense<0.000000e+00> : vector<72x64xf32>
    %25 = tpu.matmul %24, %23, %cst_22 {dimension_numbers = #tpu.dot_dimension_numbers<[1], [0], [0], [1], [0, 0, 1, 1], [], []>} : vector<72x8xf32>, vector<8x64xf32>, vector<72x64xf32> -> vector<72x64xf32>
    %26 = vector.extract_strided_slice %25 {offsets = [0, 0], sizes = [8, 64], strides = [1, 1]} : vector<72x64xf32> to vector<8x64xf32>
    %c0_23 = arith.constant 0 : index
    %c0_24 = arith.constant 0 : index
    %c0_25 = arith.constant 0 : index
    %27 = vector.load %arg7[%c0_23, %c0_24, %c0_25] : memref<9x64x16xf32, #tpu.memory_space<vmem>>, vector<1x64x16xf32>
    %28 = vector.shape_cast %27 : vector<1x64x16xf32> to vector<64x16xf32>
    %cst_26 = arith.constant dense<0.000000e+00> : vector<8x16xf32>
    %29 = tpu.matmul %26, %28, %cst_26 {dimension_numbers = #tpu.dot_dimension_numbers<[1], [0], [0], [1], [0, 0, 1, 1], [], []>} : vector<8x64xf32>, vector<64x16xf32>, vector<8x16xf32> -> vector<8x16xf32>
    %30 = vector.extract_strided_slice %25 {offsets = [8, 0], sizes = [8, 64], strides = [1, 1]} : vector<72x64xf32> to vector<8x64xf32>
    %c1_27 = arith.constant 1 : index
    %c0_28 = arith.constant 0 : index
    %c0_29 = arith.constant 0 : index
    %31 = vector.load %arg7[%c1_27, %c0_28, %c0_29] : memref<9x64x16xf32, #tpu.memory_space<vmem>>, vector<1x64x16xf32>
    %32 = vector.shape_cast %31 : vector<1x64x16xf32> to vector<64x16xf32>
    %cst_30 = arith.constant dense<0.000000e+00> : vector<8x16xf32>
    %33 = tpu.matmul %30, %32, %cst_30 {dimension_numbers = #tpu.dot_dimension_numbers<[1], [0], [0], [1], [0, 0, 1, 1], [], []>} : vector<8x64xf32>, vector<64x16xf32>, vector<8x16xf32> -> vector<8x16xf32>
    %34 = arith.addf %29, %33 : vector<8x16xf32>
    %35 = vector.extract_strided_slice %25 {offsets = [16, 0], sizes = [8, 64], strides = [1, 1]} : vector<72x64xf32> to vector<8x64xf32>
    %c2_31 = arith.constant 2 : index
    %c0_32 = arith.constant 0 : index
    %c0_33 = arith.constant 0 : index
    %36 = vector.load %arg7[%c2_31, %c0_32, %c0_33] : memref<9x64x16xf32, #tpu.memory_space<vmem>>, vector<1x64x16xf32>
    %37 = vector.shape_cast %36 : vector<1x64x16xf32> to vector<64x16xf32>
    %cst_34 = arith.constant dense<0.000000e+00> : vector<8x16xf32>
    %38 = tpu.matmul %35, %37, %cst_34 {dimension_numbers = #tpu.dot_dimension_numbers<[1], [0], [0], [1], [0, 0, 1, 1], [], []>} : vector<8x64xf32>, vector<64x16xf32>, vector<8x16xf32> -> vector<8x16xf32>
    %39 = arith.addf %34, %38 : vector<8x16xf32>
    %40 = vector.extract_strided_slice %25 {offsets = [24, 0], sizes = [8, 64], strides = [1, 1]} : vector<72x64xf32> to vector<8x64xf32>
    %c3_35 = arith.constant 3 : index
    %c0_36 = arith.constant 0 : index
    %c0_37 = arith.constant 0 : index
    %41 = vector.load %arg7[%c3_35, %c0_36, %c0_37] : memref<9x64x16xf32, #tpu.memory_space<vmem>>, vector<1x64x16xf32>
    %42 = vector.shape_cast %41 : vector<1x64x16xf32> to vector<64x16xf32>
    %cst_38 = arith.constant dense<0.000000e+00> : vector<8x16xf32>
    %43 = tpu.matmul %40, %42, %cst_38 {dimension_numbers = #tpu.dot_dimension_numbers<[1], [0], [0], [1], [0, 0, 1, 1], [], []>} : vector<8x64xf32>, vector<64x16xf32>, vector<8x16xf32> -> vector<8x16xf32>
    %44 = arith.addf %39, %43 : vector<8x16xf32>
    %45 = vector.extract_strided_slice %25 {offsets = [32, 0], sizes = [8, 64], strides = [1, 1]} : vector<72x64xf32> to vector<8x64xf32>
    %c4 = arith.constant 4 : index
    %c0_39 = arith.constant 0 : index
    %c0_40 = arith.constant 0 : index
    %46 = vector.load %arg7[%c4, %c0_39, %c0_40] : memref<9x64x16xf32, #tpu.memory_space<vmem>>, vector<1x64x16xf32>
    %47 = vector.shape_cast %46 : vector<1x64x16xf32> to vector<64x16xf32>
    %cst_41 = arith.constant dense<0.000000e+00> : vector<8x16xf32>
    %48 = tpu.matmul %45, %47, %cst_41 {dimension_numbers = #tpu.dot_dimension_numbers<[1], [0], [0], [1], [0, 0, 1, 1], [], []>} : vector<8x64xf32>, vector<64x16xf32>, vector<8x16xf32> -> vector<8x16xf32>
    %49 = arith.addf %44, %48 : vector<8x16xf32>
    %50 = vector.extract_strided_slice %25 {offsets = [40, 0], sizes = [8, 64], strides = [1, 1]} : vector<72x64xf32> to vector<8x64xf32>
    %c5 = arith.constant 5 : index
    %c0_42 = arith.constant 0 : index
    %c0_43 = arith.constant 0 : index
    %51 = vector.load %arg7[%c5, %c0_42, %c0_43] : memref<9x64x16xf32, #tpu.memory_space<vmem>>, vector<1x64x16xf32>
    %52 = vector.shape_cast %51 : vector<1x64x16xf32> to vector<64x16xf32>
    %cst_44 = arith.constant dense<0.000000e+00> : vector<8x16xf32>
    %53 = tpu.matmul %50, %52, %cst_44 {dimension_numbers = #tpu.dot_dimension_numbers<[1], [0], [0], [1], [0, 0, 1, 1], [], []>} : vector<8x64xf32>, vector<64x16xf32>, vector<8x16xf32> -> vector<8x16xf32>
    %54 = arith.addf %49, %53 : vector<8x16xf32>
    %55 = vector.extract_strided_slice %25 {offsets = [48, 0], sizes = [8, 64], strides = [1, 1]} : vector<72x64xf32> to vector<8x64xf32>
    %c6 = arith.constant 6 : index
    %c0_45 = arith.constant 0 : index
    %c0_46 = arith.constant 0 : index
    %56 = vector.load %arg7[%c6, %c0_45, %c0_46] : memref<9x64x16xf32, #tpu.memory_space<vmem>>, vector<1x64x16xf32>
    %57 = vector.shape_cast %56 : vector<1x64x16xf32> to vector<64x16xf32>
    %cst_47 = arith.constant dense<0.000000e+00> : vector<8x16xf32>
    %58 = tpu.matmul %55, %57, %cst_47 {dimension_numbers = #tpu.dot_dimension_numbers<[1], [0], [0], [1], [0, 0, 1, 1], [], []>} : vector<8x64xf32>, vector<64x16xf32>, vector<8x16xf32> -> vector<8x16xf32>
    %59 = arith.addf %54, %58 : vector<8x16xf32>
    %60 = vector.extract_strided_slice %25 {offsets = [56, 0], sizes = [8, 64], strides = [1, 1]} : vector<72x64xf32> to vector<8x64xf32>
    %c7 = arith.constant 7 : index
    %c0_48 = arith.constant 0 : index
    %c0_49 = arith.constant 0 : index
    %61 = vector.load %arg7[%c7, %c0_48, %c0_49] : memref<9x64x16xf32, #tpu.memory_space<vmem>>, vector<1x64x16xf32>
    %62 = vector.shape_cast %61 : vector<1x64x16xf32> to vector<64x16xf32>
    %cst_50 = arith.constant dense<0.000000e+00> : vector<8x16xf32>
    %63 = tpu.matmul %60, %62, %cst_50 {dimension_numbers = #tpu.dot_dimension_numbers<[1], [0], [0], [1], [0, 0, 1, 1], [], []>} : vector<8x64xf32>, vector<64x16xf32>, vector<8x16xf32> -> vector<8x16xf32>
    %64 = arith.addf %59, %63 : vector<8x16xf32>
    %65 = vector.extract_strided_slice %25 {offsets = [64, 0], sizes = [8, 64], strides = [1, 1]} : vector<72x64xf32> to vector<8x64xf32>
    %c8 = arith.constant 8 : index
    %c0_51 = arith.constant 0 : index
    %c0_52 = arith.constant 0 : index
    %66 = vector.load %arg7[%c8, %c0_51, %c0_52] : memref<9x64x16xf32, #tpu.memory_space<vmem>>, vector<1x64x16xf32>
    %67 = vector.shape_cast %66 : vector<1x64x16xf32> to vector<64x16xf32>
    %cst_53 = arith.constant dense<0.000000e+00> : vector<8x16xf32>
    %68 = tpu.matmul %65, %67, %cst_53 {dimension_numbers = #tpu.dot_dimension_numbers<[1], [0], [0], [1], [0, 0, 1, 1], [], []>} : vector<8x64xf32>, vector<64x16xf32>, vector<8x16xf32> -> vector<8x16xf32>
    %69 = arith.addf %64, %68 : vector<8x16xf32>
    %c0_54 = arith.constant 0 : index
    %c0_55 = arith.constant 0 : index
    %70 = vector.load %arg6[%c0_54, %c0_55] : memref<8x1xf32, #tpu.memory_space<vmem>>, vector<8x1xf32>
    %71 = vector.broadcast %70 : vector<8x1xf32> to vector<8x16xf32>
    %72 = arith.addf %69, %71 : vector<8x16xf32>
    %cst_56 = arith.constant 0.000000e+00 : f32
    %73 = vector.broadcast %cst_56 : f32 to vector<8x16xf32>
    %74 = arith.maximumf %72, %73 : vector<8x16xf32>
    %c0_57 = arith.constant 0 : index
    %c0_58 = arith.constant 0 : index
    %75 = vector.load %arg8[%c0_57, %c0_58] : memref<72x8xf32, #tpu.memory_space<vmem>>, vector<72x8xf32>
    %cst_59 = arith.constant dense<0.000000e+00> : vector<72x16xf32>
    %76 = tpu.matmul %75, %74, %cst_59 {dimension_numbers = #tpu.dot_dimension_numbers<[1], [0], [0], [1], [0, 0, 1, 1], [], []>} : vector<72x8xf32>, vector<8x16xf32>, vector<72x16xf32> -> vector<72x16xf32>
    %77 = vector.extract_strided_slice %76 {offsets = [0, 0], sizes = [8, 16], strides = [1, 1]} : vector<72x16xf32> to vector<8x16xf32>
    %c0_60 = arith.constant 0 : index
    %c0_61 = arith.constant 0 : index
    %c0_62 = arith.constant 0 : index
    %78 = vector.load %arg10[%c0_60, %c0_61, %c0_62] : memref<9x16x16xf32, #tpu.memory_space<vmem>>, vector<1x16x16xf32>
    %79 = vector.shape_cast %78 : vector<1x16x16xf32> to vector<16x16xf32>
    %cst_63 = arith.constant dense<0.000000e+00> : vector<8x16xf32>
    %80 = tpu.matmul %77, %79, %cst_63 {dimension_numbers = #tpu.dot_dimension_numbers<[1], [0], [0], [1], [0, 0, 1, 1], [], []>} : vector<8x16xf32>, vector<16x16xf32>, vector<8x16xf32> -> vector<8x16xf32>
    %81 = vector.extract_strided_slice %76 {offsets = [8, 0], sizes = [8, 16], strides = [1, 1]} : vector<72x16xf32> to vector<8x16xf32>
    %c1_64 = arith.constant 1 : index
    %c0_65 = arith.constant 0 : index
    %c0_66 = arith.constant 0 : index
    %82 = vector.load %arg10[%c1_64, %c0_65, %c0_66] : memref<9x16x16xf32, #tpu.memory_space<vmem>>, vector<1x16x16xf32>
    %83 = vector.shape_cast %82 : vector<1x16x16xf32> to vector<16x16xf32>
    %cst_67 = arith.constant dense<0.000000e+00> : vector<8x16xf32>
    %84 = tpu.matmul %81, %83, %cst_67 {dimension_numbers = #tpu.dot_dimension_numbers<[1], [0], [0], [1], [0, 0, 1, 1], [], []>} : vector<8x16xf32>, vector<16x16xf32>, vector<8x16xf32> -> vector<8x16xf32>
    %85 = arith.addf %80, %84 : vector<8x16xf32>
    %86 = vector.extract_strided_slice %76 {offsets = [16, 0], sizes = [8, 16], strides = [1, 1]} : vector<72x16xf32> to vector<8x16xf32>
    %c2_68 = arith.constant 2 : index
    %c0_69 = arith.constant 0 : index
    %c0_70 = arith.constant 0 : index
    %87 = vector.load %arg10[%c2_68, %c0_69, %c0_70] : memref<9x16x16xf32, #tpu.memory_space<vmem>>, vector<1x16x16xf32>
    %88 = vector.shape_cast %87 : vector<1x16x16xf32> to vector<16x16xf32>
    %cst_71 = arith.constant dense<0.000000e+00> : vector<8x16xf32>
    %89 = tpu.matmul %86, %88, %cst_71 {dimension_numbers = #tpu.dot_dimension_numbers<[1], [0], [0], [1], [0, 0, 1, 1], [], []>} : vector<8x16xf32>, vector<16x16xf32>, vector<8x16xf32> -> vector<8x16xf32>
    %90 = arith.addf %85, %89 : vector<8x16xf32>
    %91 = vector.extract_strided_slice %76 {offsets = [24, 0], sizes = [8, 16], strides = [1, 1]} : vector<72x16xf32> to vector<8x16xf32>
    %c3_72 = arith.constant 3 : index
    %c0_73 = arith.constant 0 : index
    %c0_74 = arith.constant 0 : index
    %92 = vector.load %arg10[%c3_72, %c0_73, %c0_74] : memref<9x16x16xf32, #tpu.memory_space<vmem>>, vector<1x16x16xf32>
    %93 = vector.shape_cast %92 : vector<1x16x16xf32> to vector<16x16xf32>
    %cst_75 = arith.constant dense<0.000000e+00> : vector<8x16xf32>
    %94 = tpu.matmul %91, %93, %cst_75 {dimension_numbers = #tpu.dot_dimension_numbers<[1], [0], [0], [1], [0, 0, 1, 1], [], []>} : vector<8x16xf32>, vector<16x16xf32>, vector<8x16xf32> -> vector<8x16xf32>
    %95 = arith.addf %90, %94 : vector<8x16xf32>
    %96 = vector.extract_strided_slice %76 {offsets = [32, 0], sizes = [8, 16], strides = [1, 1]} : vector<72x16xf32> to vector<8x16xf32>
    %c4_76 = arith.constant 4 : index
    %c0_77 = arith.constant 0 : index
    %c0_78 = arith.constant 0 : index
    %97 = vector.load %arg10[%c4_76, %c0_77, %c0_78] : memref<9x16x16xf32, #tpu.memory_space<vmem>>, vector<1x16x16xf32>
    %98 = vector.shape_cast %97 : vector<1x16x16xf32> to vector<16x16xf32>
    %cst_79 = arith.constant dense<0.000000e+00> : vector<8x16xf32>
    %99 = tpu.matmul %96, %98, %cst_79 {dimension_numbers = #tpu.dot_dimension_numbers<[1], [0], [0], [1], [0, 0, 1, 1], [], []>} : vector<8x16xf32>, vector<16x16xf32>, vector<8x16xf32> -> vector<8x16xf32>
    %100 = arith.addf %95, %99 : vector<8x16xf32>
    %101 = vector.extract_strided_slice %76 {offsets = [40, 0], sizes = [8, 16], strides = [1, 1]} : vector<72x16xf32> to vector<8x16xf32>
    %c5_80 = arith.constant 5 : index
    %c0_81 = arith.constant 0 : index
    %c0_82 = arith.constant 0 : index
    %102 = vector.load %arg10[%c5_80, %c0_81, %c0_82] : memref<9x16x16xf32, #tpu.memory_space<vmem>>, vector<1x16x16xf32>
    %103 = vector.shape_cast %102 : vector<1x16x16xf32> to vector<16x16xf32>
    %cst_83 = arith.constant dense<0.000000e+00> : vector<8x16xf32>
    %104 = tpu.matmul %101, %103, %cst_83 {dimension_numbers = #tpu.dot_dimension_numbers<[1], [0], [0], [1], [0, 0, 1, 1], [], []>} : vector<8x16xf32>, vector<16x16xf32>, vector<8x16xf32> -> vector<8x16xf32>
    %105 = arith.addf %100, %104 : vector<8x16xf32>
    %106 = vector.extract_strided_slice %76 {offsets = [48, 0], sizes = [8, 16], strides = [1, 1]} : vector<72x16xf32> to vector<8x16xf32>
    %c6_84 = arith.constant 6 : index
    %c0_85 = arith.constant 0 : index
    %c0_86 = arith.constant 0 : index
    %107 = vector.load %arg10[%c6_84, %c0_85, %c0_86] : memref<9x16x16xf32, #tpu.memory_space<vmem>>, vector<1x16x16xf32>
    %108 = vector.shape_cast %107 : vector<1x16x16xf32> to vector<16x16xf32>
    %cst_87 = arith.constant dense<0.000000e+00> : vector<8x16xf32>
    %109 = tpu.matmul %106, %108, %cst_87 {dimension_numbers = #tpu.dot_dimension_numbers<[1], [0], [0], [1], [0, 0, 1, 1], [], []>} : vector<8x16xf32>, vector<16x16xf32>, vector<8x16xf32> -> vector<8x16xf32>
    %110 = arith.addf %105, %109 : vector<8x16xf32>
    %111 = vector.extract_strided_slice %76 {offsets = [56, 0], sizes = [8, 16], strides = [1, 1]} : vector<72x16xf32> to vector<8x16xf32>
    %c7_88 = arith.constant 7 : index
    %c0_89 = arith.constant 0 : index
    %c0_90 = arith.constant 0 : index
    %112 = vector.load %arg10[%c7_88, %c0_89, %c0_90] : memref<9x16x16xf32, #tpu.memory_space<vmem>>, vector<1x16x16xf32>
    %113 = vector.shape_cast %112 : vector<1x16x16xf32> to vector<16x16xf32>
    %cst_91 = arith.constant dense<0.000000e+00> : vector<8x16xf32>
    %114 = tpu.matmul %111, %113, %cst_91 {dimension_numbers = #tpu.dot_dimension_numbers<[1], [0], [0], [1], [0, 0, 1, 1], [], []>} : vector<8x16xf32>, vector<16x16xf32>, vector<8x16xf32> -> vector<8x16xf32>
    %115 = arith.addf %110, %114 : vector<8x16xf32>
    %116 = vector.extract_strided_slice %76 {offsets = [64, 0], sizes = [8, 16], strides = [1, 1]} : vector<72x16xf32> to vector<8x16xf32>
    %c8_92 = arith.constant 8 : index
    %c0_93 = arith.constant 0 : index
    %c0_94 = arith.constant 0 : index
    %117 = vector.load %arg10[%c8_92, %c0_93, %c0_94] : memref<9x16x16xf32, #tpu.memory_space<vmem>>, vector<1x16x16xf32>
    %118 = vector.shape_cast %117 : vector<1x16x16xf32> to vector<16x16xf32>
    %cst_95 = arith.constant dense<0.000000e+00> : vector<8x16xf32>
    %119 = tpu.matmul %116, %118, %cst_95 {dimension_numbers = #tpu.dot_dimension_numbers<[1], [0], [0], [1], [0, 0, 1, 1], [], []>} : vector<8x16xf32>, vector<16x16xf32>, vector<8x16xf32> -> vector<8x16xf32>
    %120 = arith.addf %115, %119 : vector<8x16xf32>
    %c0_96 = arith.constant 0 : index
    %c0_97 = arith.constant 0 : index
    %121 = vector.load %arg9[%c0_96, %c0_97] : memref<8x1xf32, #tpu.memory_space<vmem>>, vector<8x1xf32>
    %122 = vector.broadcast %121 : vector<8x1xf32> to vector<8x16xf32>
    %123 = arith.addf %120, %122 : vector<8x16xf32>
    %cst_98 = arith.constant 0.000000e+00 : f32
    %124 = vector.broadcast %cst_98 : f32 to vector<8x16xf32>
    %125 = arith.maximumf %123, %124 : vector<8x16xf32>
    %c0_99 = arith.constant 0 : index
    %c0_100 = arith.constant 0 : index
    %126 = vector.load %arg11[%c0_99, %c0_100] : memref<144x8xf32, #tpu.memory_space<vmem>>, vector<144x8xf32>
    %cst_101 = arith.constant dense<0.000000e+00> : vector<144x16xf32>
    %127 = tpu.matmul %126, %125, %cst_101 {dimension_numbers = #tpu.dot_dimension_numbers<[1], [0], [0], [1], [0, 0, 1, 1], [], []>} : vector<144x8xf32>, vector<8x16xf32>, vector<144x16xf32> -> vector<144x16xf32>
    %128 = vector.extract_strided_slice %127 {offsets = [0, 0], sizes = [16, 16], strides = [1, 1]} : vector<144x16xf32> to vector<16x16xf32>
    %c0_102 = arith.constant 0 : index
    %c0_103 = arith.constant 0 : index
    %c0_104 = arith.constant 0 : index
    %129 = vector.load %arg13[%c0_102, %c0_103, %c0_104] : memref<9x16x4xf32, #tpu.memory_space<vmem>>, vector<1x16x4xf32>
    %130 = vector.shape_cast %129 : vector<1x16x4xf32> to vector<16x4xf32>
    %cst_105 = arith.constant dense<0.000000e+00> : vector<16x4xf32>
    %131 = tpu.matmul %128, %130, %cst_105 {dimension_numbers = #tpu.dot_dimension_numbers<[1], [0], [0], [1], [0, 0, 1, 1], [], []>} : vector<16x16xf32>, vector<16x4xf32>, vector<16x4xf32> -> vector<16x4xf32>
    %132 = vector.extract_strided_slice %127 {offsets = [16, 0], sizes = [16, 16], strides = [1, 1]} : vector<144x16xf32> to vector<16x16xf32>
    %c1_106 = arith.constant 1 : index
    %c0_107 = arith.constant 0 : index
    %c0_108 = arith.constant 0 : index
    %133 = vector.load %arg13[%c1_106, %c0_107, %c0_108] : memref<9x16x4xf32, #tpu.memory_space<vmem>>, vector<1x16x4xf32>
    %134 = vector.shape_cast %133 : vector<1x16x4xf32> to vector<16x4xf32>
    %cst_109 = arith.constant dense<0.000000e+00> : vector<16x4xf32>
    %135 = tpu.matmul %132, %134, %cst_109 {dimension_numbers = #tpu.dot_dimension_numbers<[1], [0], [0], [1], [0, 0, 1, 1], [], []>} : vector<16x16xf32>, vector<16x4xf32>, vector<16x4xf32> -> vector<16x4xf32>
    %136 = arith.addf %131, %135 : vector<16x4xf32>
    %137 = vector.extract_strided_slice %127 {offsets = [32, 0], sizes = [16, 16], strides = [1, 1]} : vector<144x16xf32> to vector<16x16xf32>
    %c2_110 = arith.constant 2 : index
    %c0_111 = arith.constant 0 : index
    %c0_112 = arith.constant 0 : index
    %138 = vector.load %arg13[%c2_110, %c0_111, %c0_112] : memref<9x16x4xf32, #tpu.memory_space<vmem>>, vector<1x16x4xf32>
    %139 = vector.shape_cast %138 : vector<1x16x4xf32> to vector<16x4xf32>
    %cst_113 = arith.constant dense<0.000000e+00> : vector<16x4xf32>
    %140 = tpu.matmul %137, %139, %cst_113 {dimension_numbers = #tpu.dot_dimension_numbers<[1], [0], [0], [1], [0, 0, 1, 1], [], []>} : vector<16x16xf32>, vector<16x4xf32>, vector<16x4xf32> -> vector<16x4xf32>
    %141 = arith.addf %136, %140 : vector<16x4xf32>
    %142 = vector.extract_strided_slice %127 {offsets = [48, 0], sizes = [16, 16], strides = [1, 1]} : vector<144x16xf32> to vector<16x16xf32>
    %c3_114 = arith.constant 3 : index
    %c0_115 = arith.constant 0 : index
    %c0_116 = arith.constant 0 : index
    %143 = vector.load %arg13[%c3_114, %c0_115, %c0_116] : memref<9x16x4xf32, #tpu.memory_space<vmem>>, vector<1x16x4xf32>
    %144 = vector.shape_cast %143 : vector<1x16x4xf32> to vector<16x4xf32>
    %cst_117 = arith.constant dense<0.000000e+00> : vector<16x4xf32>
    %145 = tpu.matmul %142, %144, %cst_117 {dimension_numbers = #tpu.dot_dimension_numbers<[1], [0], [0], [1], [0, 0, 1, 1], [], []>} : vector<16x16xf32>, vector<16x4xf32>, vector<16x4xf32> -> vector<16x4xf32>
    %146 = arith.addf %141, %145 : vector<16x4xf32>
    %147 = vector.extract_strided_slice %127 {offsets = [64, 0], sizes = [16, 16], strides = [1, 1]} : vector<144x16xf32> to vector<16x16xf32>
    %c4_118 = arith.constant 4 : index
    %c0_119 = arith.constant 0 : index
    %c0_120 = arith.constant 0 : index
    %148 = vector.load %arg13[%c4_118, %c0_119, %c0_120] : memref<9x16x4xf32, #tpu.memory_space<vmem>>, vector<1x16x4xf32>
    %149 = vector.shape_cast %148 : vector<1x16x4xf32> to vector<16x4xf32>
    %cst_121 = arith.constant dense<0.000000e+00> : vector<16x4xf32>
    %150 = tpu.matmul %147, %149, %cst_121 {dimension_numbers = #tpu.dot_dimension_numbers<[1], [0], [0], [1], [0, 0, 1, 1], [], []>} : vector<16x16xf32>, vector<16x4xf32>, vector<16x4xf32> -> vector<16x4xf32>
    %151 = arith.addf %146, %150 : vector<16x4xf32>
    %152 = vector.extract_strided_slice %127 {offsets = [80, 0], sizes = [16, 16], strides = [1, 1]} : vector<144x16xf32> to vector<16x16xf32>
    %c5_122 = arith.constant 5 : index
    %c0_123 = arith.constant 0 : index
    %c0_124 = arith.constant 0 : index
    %153 = vector.load %arg13[%c5_122, %c0_123, %c0_124] : memref<9x16x4xf32, #tpu.memory_space<vmem>>, vector<1x16x4xf32>
    %154 = vector.shape_cast %153 : vector<1x16x4xf32> to vector<16x4xf32>
    %cst_125 = arith.constant dense<0.000000e+00> : vector<16x4xf32>
    %155 = tpu.matmul %152, %154, %cst_125 {dimension_numbers = #tpu.dot_dimension_numbers<[1], [0], [0], [1], [0, 0, 1, 1], [], []>} : vector<16x16xf32>, vector<16x4xf32>, vector<16x4xf32> -> vector<16x4xf32>
    %156 = arith.addf %151, %155 : vector<16x4xf32>
    %157 = vector.extract_strided_slice %127 {offsets = [96, 0], sizes = [16, 16], strides = [1, 1]} : vector<144x16xf32> to vector<16x16xf32>
    %c6_126 = arith.constant 6 : index
    %c0_127 = arith.constant 0 : index
    %c0_128 = arith.constant 0 : index
    %158 = vector.load %arg13[%c6_126, %c0_127, %c0_128] : memref<9x16x4xf32, #tpu.memory_space<vmem>>, vector<1x16x4xf32>
    %159 = vector.shape_cast %158 : vector<1x16x4xf32> to vector<16x4xf32>
    %cst_129 = arith.constant dense<0.000000e+00> : vector<16x4xf32>
    %160 = tpu.matmul %157, %159, %cst_129 {dimension_numbers = #tpu.dot_dimension_numbers<[1], [0], [0], [1], [0, 0, 1, 1], [], []>} : vector<16x16xf32>, vector<16x4xf32>, vector<16x4xf32> -> vector<16x4xf32>
    %161 = arith.addf %156, %160 : vector<16x4xf32>
    %162 = vector.extract_strided_slice %127 {offsets = [112, 0], sizes = [16, 16], strides = [1, 1]} : vector<144x16xf32> to vector<16x16xf32>
    %c7_130 = arith.constant 7 : index
    %c0_131 = arith.constant 0 : index
    %c0_132 = arith.constant 0 : index
    %163 = vector.load %arg13[%c7_130, %c0_131, %c0_132] : memref<9x16x4xf32, #tpu.memory_space<vmem>>, vector<1x16x4xf32>
    %164 = vector.shape_cast %163 : vector<1x16x4xf32> to vector<16x4xf32>
    %cst_133 = arith.constant dense<0.000000e+00> : vector<16x4xf32>
    %165 = tpu.matmul %162, %164, %cst_133 {dimension_numbers = #tpu.dot_dimension_numbers<[1], [0], [0], [1], [0, 0, 1, 1], [], []>} : vector<16x16xf32>, vector<16x4xf32>, vector<16x4xf32> -> vector<16x4xf32>
    %166 = arith.addf %161, %165 : vector<16x4xf32>
    %167 = vector.extract_strided_slice %127 {offsets = [128, 0], sizes = [16, 16], strides = [1, 1]} : vector<144x16xf32> to vector<16x16xf32>
    %c8_134 = arith.constant 8 : index
    %c0_135 = arith.constant 0 : index
    %c0_136 = arith.constant 0 : index
    %168 = vector.load %arg13[%c8_134, %c0_135, %c0_136] : memref<9x16x4xf32, #tpu.memory_space<vmem>>, vector<1x16x4xf32>
    %169 = vector.shape_cast %168 : vector<1x16x4xf32> to vector<16x4xf32>
    %cst_137 = arith.constant dense<0.000000e+00> : vector<16x4xf32>
    %170 = tpu.matmul %167, %169, %cst_137 {dimension_numbers = #tpu.dot_dimension_numbers<[1], [0], [0], [1], [0, 0, 1, 1], [], []>} : vector<16x16xf32>, vector<16x4xf32>, vector<16x4xf32> -> vector<16x4xf32>
    %171 = arith.addf %166, %170 : vector<16x4xf32>
    %c0_138 = arith.constant 0 : index
    %c0_139 = arith.constant 0 : index
    %172 = vector.load %arg12[%c0_138, %c0_139] : memref<16x1xf32, #tpu.memory_space<vmem>>, vector<16x1xf32>
    %173 = vector.broadcast %172 : vector<16x1xf32> to vector<16x4xf32>
    %174 = arith.addf %171, %173 : vector<16x4xf32>
    %cst_140 = arith.constant 0.000000e+00 : f32
    %175 = vector.broadcast %cst_140 : f32 to vector<16x4xf32>
    %176 = arith.maximumf %174, %175 : vector<16x4xf32>
    %c0_141 = arith.constant 0 : index
    %c0_142 = arith.constant 0 : index
    %177 = vector.load %arg14[%c0_141, %c0_142] : memref<144x16xf32, #tpu.memory_space<vmem>>, vector<144x16xf32>
    %cst_143 = arith.constant dense<0.000000e+00> : vector<144x4xf32>
    %178 = tpu.matmul %177, %176, %cst_143 {dimension_numbers = #tpu.dot_dimension_numbers<[1], [0], [0], [1], [0, 0, 1, 1], [], []>} : vector<144x16xf32>, vector<16x4xf32>, vector<144x4xf32> -> vector<144x4xf32>
    %179 = vector.extract_strided_slice %178 {offsets = [0, 0], sizes = [16, 4], strides = [1, 1]} : vector<144x4xf32> to vector<16x4xf32>
    %c0_144 = arith.constant 0 : index
    %c0_145 = arith.constant 0 : index
    %c0_146 = arith.constant 0 : index
    %180 = vector.load %arg16[%c0_144, %c0_145, %c0_146] : memref<9x4x4xf32, #tpu.memory_space<vmem>>, vector<1x4x4xf32>
    %181 = vector.shape_cast %180 : vector<1x4x4xf32> to vector<4x4xf32>
    %cst_147 = arith.constant dense<0.000000e+00> : vector<16x4xf32>
    %182 = tpu.matmul %179, %181, %cst_147 {dimension_numbers = #tpu.dot_dimension_numbers<[1], [0], [0], [1], [0, 0, 1, 1], [], []>} : vector<16x4xf32>, vector<4x4xf32>, vector<16x4xf32> -> vector<16x4xf32>
    %183 = vector.extract_strided_slice %178 {offsets = [16, 0], sizes = [16, 4], strides = [1, 1]} : vector<144x4xf32> to vector<16x4xf32>
    %c1_148 = arith.constant 1 : index
    %c0_149 = arith.constant 0 : index
    %c0_150 = arith.constant 0 : index
    %184 = vector.load %arg16[%c1_148, %c0_149, %c0_150] : memref<9x4x4xf32, #tpu.memory_space<vmem>>, vector<1x4x4xf32>
    %185 = vector.shape_cast %184 : vector<1x4x4xf32> to vector<4x4xf32>
    %cst_151 = arith.constant dense<0.000000e+00> : vector<16x4xf32>
    %186 = tpu.matmul %183, %185, %cst_151 {dimension_numbers = #tpu.dot_dimension_numbers<[1], [0], [0], [1], [0, 0, 1, 1], [], []>} : vector<16x4xf32>, vector<4x4xf32>, vector<16x4xf32> -> vector<16x4xf32>
    %187 = arith.addf %182, %186 : vector<16x4xf32>
    %188 = vector.extract_strided_slice %178 {offsets = [32, 0], sizes = [16, 4], strides = [1, 1]} : vector<144x4xf32> to vector<16x4xf32>
    %c2_152 = arith.constant 2 : index
    %c0_153 = arith.constant 0 : index
    %c0_154 = arith.constant 0 : index
    %189 = vector.load %arg16[%c2_152, %c0_153, %c0_154] : memref<9x4x4xf32, #tpu.memory_space<vmem>>, vector<1x4x4xf32>
    %190 = vector.shape_cast %189 : vector<1x4x4xf32> to vector<4x4xf32>
    %cst_155 = arith.constant dense<0.000000e+00> : vector<16x4xf32>
    %191 = tpu.matmul %188, %190, %cst_155 {dimension_numbers = #tpu.dot_dimension_numbers<[1], [0], [0], [1], [0, 0, 1, 1], [], []>} : vector<16x4xf32>, vector<4x4xf32>, vector<16x4xf32> -> vector<16x4xf32>
    %192 = arith.addf %187, %191 : vector<16x4xf32>
    %193 = vector.extract_strided_slice %178 {offsets = [48, 0], sizes = [16, 4], strides = [1, 1]} : vector<144x4xf32> to vector<16x4xf32>
    %c3_156 = arith.constant 3 : index
    %c0_157 = arith.constant 0 : index
    %c0_158 = arith.constant 0 : index
    %194 = vector.load %arg16[%c3_156, %c0_157, %c0_158] : memref<9x4x4xf32, #tpu.memory_space<vmem>>, vector<1x4x4xf32>
    %195 = vector.shape_cast %194 : vector<1x4x4xf32> to vector<4x4xf32>
    %cst_159 = arith.constant dense<0.000000e+00> : vector<16x4xf32>
    %196 = tpu.matmul %193, %195, %cst_159 {dimension_numbers = #tpu.dot_dimension_numbers<[1], [0], [0], [1], [0, 0, 1, 1], [], []>} : vector<16x4xf32>, vector<4x4xf32>, vector<16x4xf32> -> vector<16x4xf32>
    %197 = arith.addf %192, %196 : vector<16x4xf32>
    %198 = vector.extract_strided_slice %178 {offsets = [64, 0], sizes = [16, 4], strides = [1, 1]} : vector<144x4xf32> to vector<16x4xf32>
    %c4_160 = arith.constant 4 : index
    %c0_161 = arith.constant 0 : index
    %c0_162 = arith.constant 0 : index
    %199 = vector.load %arg16[%c4_160, %c0_161, %c0_162] : memref<9x4x4xf32, #tpu.memory_space<vmem>>, vector<1x4x4xf32>
    %200 = vector.shape_cast %199 : vector<1x4x4xf32> to vector<4x4xf32>
    %cst_163 = arith.constant dense<0.000000e+00> : vector<16x4xf32>
    %201 = tpu.matmul %198, %200, %cst_163 {dimension_numbers = #tpu.dot_dimension_numbers<[1], [0], [0], [1], [0, 0, 1, 1], [], []>} : vector<16x4xf32>, vector<4x4xf32>, vector<16x4xf32> -> vector<16x4xf32>
    %202 = arith.addf %197, %201 : vector<16x4xf32>
    %203 = vector.extract_strided_slice %178 {offsets = [80, 0], sizes = [16, 4], strides = [1, 1]} : vector<144x4xf32> to vector<16x4xf32>
    %c5_164 = arith.constant 5 : index
    %c0_165 = arith.constant 0 : index
    %c0_166 = arith.constant 0 : index
    %204 = vector.load %arg16[%c5_164, %c0_165, %c0_166] : memref<9x4x4xf32, #tpu.memory_space<vmem>>, vector<1x4x4xf32>
    %205 = vector.shape_cast %204 : vector<1x4x4xf32> to vector<4x4xf32>
    %cst_167 = arith.constant dense<0.000000e+00> : vector<16x4xf32>
    %206 = tpu.matmul %203, %205, %cst_167 {dimension_numbers = #tpu.dot_dimension_numbers<[1], [0], [0], [1], [0, 0, 1, 1], [], []>} : vector<16x4xf32>, vector<4x4xf32>, vector<16x4xf32> -> vector<16x4xf32>
    %207 = arith.addf %202, %206 : vector<16x4xf32>
    %208 = vector.extract_strided_slice %178 {offsets = [96, 0], sizes = [16, 4], strides = [1, 1]} : vector<144x4xf32> to vector<16x4xf32>
    %c6_168 = arith.constant 6 : index
    %c0_169 = arith.constant 0 : index
    %c0_170 = arith.constant 0 : index
    %209 = vector.load %arg16[%c6_168, %c0_169, %c0_170] : memref<9x4x4xf32, #tpu.memory_space<vmem>>, vector<1x4x4xf32>
    %210 = vector.shape_cast %209 : vector<1x4x4xf32> to vector<4x4xf32>
    %cst_171 = arith.constant dense<0.000000e+00> : vector<16x4xf32>
    %211 = tpu.matmul %208, %210, %cst_171 {dimension_numbers = #tpu.dot_dimension_numbers<[1], [0], [0], [1], [0, 0, 1, 1], [], []>} : vector<16x4xf32>, vector<4x4xf32>, vector<16x4xf32> -> vector<16x4xf32>
    %212 = arith.addf %207, %211 : vector<16x4xf32>
    %213 = vector.extract_strided_slice %178 {offsets = [112, 0], sizes = [16, 4], strides = [1, 1]} : vector<144x4xf32> to vector<16x4xf32>
    %c7_172 = arith.constant 7 : index
    %c0_173 = arith.constant 0 : index
    %c0_174 = arith.constant 0 : index
    %214 = vector.load %arg16[%c7_172, %c0_173, %c0_174] : memref<9x4x4xf32, #tpu.memory_space<vmem>>, vector<1x4x4xf32>
    %215 = vector.shape_cast %214 : vector<1x4x4xf32> to vector<4x4xf32>
    %cst_175 = arith.constant dense<0.000000e+00> : vector<16x4xf32>
    %216 = tpu.matmul %213, %215, %cst_175 {dimension_numbers = #tpu.dot_dimension_numbers<[1], [0], [0], [1], [0, 0, 1, 1], [], []>} : vector<16x4xf32>, vector<4x4xf32>, vector<16x4xf32> -> vector<16x4xf32>
    %217 = arith.addf %212, %216 : vector<16x4xf32>
    %218 = vector.extract_strided_slice %178 {offsets = [128, 0], sizes = [16, 4], strides = [1, 1]} : vector<144x4xf32> to vector<16x4xf32>
    %c8_176 = arith.constant 8 : index
    %c0_177 = arith.constant 0 : index
    %c0_178 = arith.constant 0 : index
    %219 = vector.load %arg16[%c8_176, %c0_177, %c0_178] : memref<9x4x4xf32, #tpu.memory_space<vmem>>, vector<1x4x4xf32>
    %220 = vector.shape_cast %219 : vector<1x4x4xf32> to vector<4x4xf32>
    %cst_179 = arith.constant dense<0.000000e+00> : vector<16x4xf32>
    %221 = tpu.matmul %218, %220, %cst_179 {dimension_numbers = #tpu.dot_dimension_numbers<[1], [0], [0], [1], [0, 0, 1, 1], [], []>} : vector<16x4xf32>, vector<4x4xf32>, vector<16x4xf32> -> vector<16x4xf32>
    %222 = arith.addf %217, %221 : vector<16x4xf32>
    %c0_180 = arith.constant 0 : index
    %c0_181 = arith.constant 0 : index
    %223 = vector.load %arg15[%c0_180, %c0_181] : memref<16x1xf32, #tpu.memory_space<vmem>>, vector<16x1xf32>
    %224 = vector.broadcast %223 : vector<16x1xf32> to vector<16x4xf32>
    %225 = arith.addf %222, %224 : vector<16x4xf32>
    %cst_182 = arith.constant 0.000000e+00 : f32
    %226 = vector.broadcast %cst_182 : f32 to vector<16x4xf32>
    %227 = arith.maximumf %225, %226 : vector<16x4xf32>
    %c0_183 = arith.constant 0 : index
    %c0_184 = arith.constant 0 : index
    %228 = vector.load %arg17[%c0_183, %c0_184] : memref<288x16xf32, #tpu.memory_space<vmem>>, vector<288x16xf32>
    %cst_185 = arith.constant dense<0.000000e+00> : vector<288x4xf32>
    %229 = tpu.matmul %228, %227, %cst_185 {dimension_numbers = #tpu.dot_dimension_numbers<[1], [0], [0], [1], [0, 0, 1, 1], [], []>} : vector<288x16xf32>, vector<16x4xf32>, vector<288x4xf32> -> vector<288x4xf32>
    %230 = vector.extract_strided_slice %229 {offsets = [0, 0], sizes = [32, 4], strides = [1, 1]} : vector<288x4xf32> to vector<32x4xf32>
    %c0_186 = arith.constant 0 : index
    %c0_187 = arith.constant 0 : index
    %c0_188 = arith.constant 0 : index
    %231 = vector.load %arg19[%c0_186, %c0_187, %c0_188] : memref<9x4x1xf32, #tpu.memory_space<vmem>>, vector<1x4x1xf32>
    %232 = vector.shape_cast %231 : vector<1x4x1xf32> to vector<4x1xf32>
    %cst_189 = arith.constant dense<0.000000e+00> : vector<32x1xf32>
    %233 = tpu.matmul %230, %232, %cst_189 {dimension_numbers = #tpu.dot_dimension_numbers<[1], [0], [0], [1], [0, 0, 1, 1], [], []>} : vector<32x4xf32>, vector<4x1xf32>, vector<32x1xf32> -> vector<32x1xf32>
    %234 = vector.extract_strided_slice %229 {offsets = [32, 0], sizes = [32, 4], strides = [1, 1]} : vector<288x4xf32> to vector<32x4xf32>
    %c1_190 = arith.constant 1 : index
    %c0_191 = arith.constant 0 : index
    %c0_192 = arith.constant 0 : index
    %235 = vector.load %arg19[%c1_190, %c0_191, %c0_192] : memref<9x4x1xf32, #tpu.memory_space<vmem>>, vector<1x4x1xf32>
    %236 = vector.shape_cast %235 : vector<1x4x1xf32> to vector<4x1xf32>
    %cst_193 = arith.constant dense<0.000000e+00> : vector<32x1xf32>
    %237 = tpu.matmul %234, %236, %cst_193 {dimension_numbers = #tpu.dot_dimension_numbers<[1], [0], [0], [1], [0, 0, 1, 1], [], []>} : vector<32x4xf32>, vector<4x1xf32>, vector<32x1xf32> -> vector<32x1xf32>
    %238 = arith.addf %233, %237 : vector<32x1xf32>
    %239 = vector.extract_strided_slice %229 {offsets = [64, 0], sizes = [32, 4], strides = [1, 1]} : vector<288x4xf32> to vector<32x4xf32>
    %c2_194 = arith.constant 2 : index
    %c0_195 = arith.constant 0 : index
    %c0_196 = arith.constant 0 : index
    %240 = vector.load %arg19[%c2_194, %c0_195, %c0_196] : memref<9x4x1xf32, #tpu.memory_space<vmem>>, vector<1x4x1xf32>
    %241 = vector.shape_cast %240 : vector<1x4x1xf32> to vector<4x1xf32>
    %cst_197 = arith.constant dense<0.000000e+00> : vector<32x1xf32>
    %242 = tpu.matmul %239, %241, %cst_197 {dimension_numbers = #tpu.dot_dimension_numbers<[1], [0], [0], [1], [0, 0, 1, 1], [], []>} : vector<32x4xf32>, vector<4x1xf32>, vector<32x1xf32> -> vector<32x1xf32>
    %243 = arith.addf %238, %242 : vector<32x1xf32>
    %244 = vector.extract_strided_slice %229 {offsets = [96, 0], sizes = [32, 4], strides = [1, 1]} : vector<288x4xf32> to vector<32x4xf32>
    %c3_198 = arith.constant 3 : index
    %c0_199 = arith.constant 0 : index
    %c0_200 = arith.constant 0 : index
    %245 = vector.load %arg19[%c3_198, %c0_199, %c0_200] : memref<9x4x1xf32, #tpu.memory_space<vmem>>, vector<1x4x1xf32>
    %246 = vector.shape_cast %245 : vector<1x4x1xf32> to vector<4x1xf32>
    %cst_201 = arith.constant dense<0.000000e+00> : vector<32x1xf32>
    %247 = tpu.matmul %244, %246, %cst_201 {dimension_numbers = #tpu.dot_dimension_numbers<[1], [0], [0], [1], [0, 0, 1, 1], [], []>} : vector<32x4xf32>, vector<4x1xf32>, vector<32x1xf32> -> vector<32x1xf32>
    %248 = arith.addf %243, %247 : vector<32x1xf32>
    %249 = vector.extract_strided_slice %229 {offsets = [128, 0], sizes = [32, 4], strides = [1, 1]} : vector<288x4xf32> to vector<32x4xf32>
    %c4_202 = arith.constant 4 : index
    %c0_203 = arith.constant 0 : index
    %c0_204 = arith.constant 0 : index
    %250 = vector.load %arg19[%c4_202, %c0_203, %c0_204] : memref<9x4x1xf32, #tpu.memory_space<vmem>>, vector<1x4x1xf32>
    %251 = vector.shape_cast %250 : vector<1x4x1xf32> to vector<4x1xf32>
    %cst_205 = arith.constant dense<0.000000e+00> : vector<32x1xf32>
    %252 = tpu.matmul %249, %251, %cst_205 {dimension_numbers = #tpu.dot_dimension_numbers<[1], [0], [0], [1], [0, 0, 1, 1], [], []>} : vector<32x4xf32>, vector<4x1xf32>, vector<32x1xf32> -> vector<32x1xf32>
    %253 = arith.addf %248, %252 : vector<32x1xf32>
    %254 = vector.extract_strided_slice %229 {offsets = [160, 0], sizes = [32, 4], strides = [1, 1]} : vector<288x4xf32> to vector<32x4xf32>
    %c5_206 = arith.constant 5 : index
    %c0_207 = arith.constant 0 : index
    %c0_208 = arith.constant 0 : index
    %255 = vector.load %arg19[%c5_206, %c0_207, %c0_208] : memref<9x4x1xf32, #tpu.memory_space<vmem>>, vector<1x4x1xf32>
    %256 = vector.shape_cast %255 : vector<1x4x1xf32> to vector<4x1xf32>
    %cst_209 = arith.constant dense<0.000000e+00> : vector<32x1xf32>
    %257 = tpu.matmul %254, %256, %cst_209 {dimension_numbers = #tpu.dot_dimension_numbers<[1], [0], [0], [1], [0, 0, 1, 1], [], []>} : vector<32x4xf32>, vector<4x1xf32>, vector<32x1xf32> -> vector<32x1xf32>
    %258 = arith.addf %253, %257 : vector<32x1xf32>
    %259 = vector.extract_strided_slice %229 {offsets = [192, 0], sizes = [32, 4], strides = [1, 1]} : vector<288x4xf32> to vector<32x4xf32>
    %c6_210 = arith.constant 6 : index
    %c0_211 = arith.constant 0 : index
    %c0_212 = arith.constant 0 : index
    %260 = vector.load %arg19[%c6_210, %c0_211, %c0_212] : memref<9x4x1xf32, #tpu.memory_space<vmem>>, vector<1x4x1xf32>
    %261 = vector.shape_cast %260 : vector<1x4x1xf32> to vector<4x1xf32>
    %cst_213 = arith.constant dense<0.000000e+00> : vector<32x1xf32>
    %262 = tpu.matmul %259, %261, %cst_213 {dimension_numbers = #tpu.dot_dimension_numbers<[1], [0], [0], [1], [0, 0, 1, 1], [], []>} : vector<32x4xf32>, vector<4x1xf32>, vector<32x1xf32> -> vector<32x1xf32>
    %263 = arith.addf %258, %262 : vector<32x1xf32>
    %264 = vector.extract_strided_slice %229 {offsets = [224, 0], sizes = [32, 4], strides = [1, 1]} : vector<288x4xf32> to vector<32x4xf32>
    %c7_214 = arith.constant 7 : index
    %c0_215 = arith.constant 0 : index
    %c0_216 = arith.constant 0 : index
    %265 = vector.load %arg19[%c7_214, %c0_215, %c0_216] : memref<9x4x1xf32, #tpu.memory_space<vmem>>, vector<1x4x1xf32>
    %266 = vector.shape_cast %265 : vector<1x4x1xf32> to vector<4x1xf32>
    %cst_217 = arith.constant dense<0.000000e+00> : vector<32x1xf32>
    %267 = tpu.matmul %264, %266, %cst_217 {dimension_numbers = #tpu.dot_dimension_numbers<[1], [0], [0], [1], [0, 0, 1, 1], [], []>} : vector<32x4xf32>, vector<4x1xf32>, vector<32x1xf32> -> vector<32x1xf32>
    %268 = arith.addf %263, %267 : vector<32x1xf32>
    %269 = vector.extract_strided_slice %229 {offsets = [256, 0], sizes = [32, 4], strides = [1, 1]} : vector<288x4xf32> to vector<32x4xf32>
    %c8_218 = arith.constant 8 : index
    %c0_219 = arith.constant 0 : index
    %c0_220 = arith.constant 0 : index
    %270 = vector.load %arg19[%c8_218, %c0_219, %c0_220] : memref<9x4x1xf32, #tpu.memory_space<vmem>>, vector<1x4x1xf32>
    %271 = vector.shape_cast %270 : vector<1x4x1xf32> to vector<4x1xf32>
    %cst_221 = arith.constant dense<0.000000e+00> : vector<32x1xf32>
    %272 = tpu.matmul %269, %271, %cst_221 {dimension_numbers = #tpu.dot_dimension_numbers<[1], [0], [0], [1], [0, 0, 1, 1], [], []>} : vector<32x4xf32>, vector<4x1xf32>, vector<32x1xf32> -> vector<32x1xf32>
    %273 = arith.addf %268, %272 : vector<32x1xf32>
    %c0_222 = arith.constant 0 : index
    %c0_223 = arith.constant 0 : index
    %274 = vector.load %arg18[%c0_222, %c0_223] : memref<32x1xf32, #tpu.memory_space<vmem>>, vector<32x1xf32>
    %275 = arith.addf %273, %274 : vector<32x1xf32>
    %cst_224 = arith.constant 0.000000e+00 : f32
    %276 = vector.broadcast %cst_224 : f32 to vector<32x1xf32>
    %277 = arith.maximumf %275, %276 : vector<32x1xf32>
    %c0_225 = arith.constant 0 : index
    %c0_226 = arith.constant 0 : index
    %278 = vector.load %arg20[%c0_225, %c0_226] : memref<288x32xf32, #tpu.memory_space<vmem>>, vector<288x32xf32>
    %cst_227 = arith.constant dense<0.000000e+00> : vector<288x1xf32>
    %279 = tpu.matmul %278, %277, %cst_227 {dimension_numbers = #tpu.dot_dimension_numbers<[1], [0], [0], [1], [0, 0, 1, 1], [], []>} : vector<288x32xf32>, vector<32x1xf32>, vector<288x1xf32> -> vector<288x1xf32>
    %280 = vector.extract_strided_slice %279 {offsets = [0, 0], sizes = [32, 1], strides = [1, 1]} : vector<288x1xf32> to vector<32x1xf32>
    %c0_228 = arith.constant 0 : index
    %c0_229 = arith.constant 0 : index
    %c0_230 = arith.constant 0 : index
    %281 = vector.load %arg22[%c0_228, %c0_229, %c0_230] : memref<9x1x1xf32, #tpu.memory_space<vmem>>, vector<1x1x1xf32>
    %282 = vector.shape_cast %281 : vector<1x1x1xf32> to vector<1x1xf32>
    %cst_231 = arith.constant dense<0.000000e+00> : vector<32x1xf32>
    %283 = tpu.matmul %280, %282, %cst_231 {dimension_numbers = #tpu.dot_dimension_numbers<[1], [0], [0], [1], [0, 0, 1, 1], [], []>} : vector<32x1xf32>, vector<1x1xf32>, vector<32x1xf32> -> vector<32x1xf32>
    %284 = vector.extract_strided_slice %279 {offsets = [32, 0], sizes = [32, 1], strides = [1, 1]} : vector<288x1xf32> to vector<32x1xf32>
    %c1_232 = arith.constant 1 : index
    %c0_233 = arith.constant 0 : index
    %c0_234 = arith.constant 0 : index
    %285 = vector.load %arg22[%c1_232, %c0_233, %c0_234] : memref<9x1x1xf32, #tpu.memory_space<vmem>>, vector<1x1x1xf32>
    %286 = vector.shape_cast %285 : vector<1x1x1xf32> to vector<1x1xf32>
    %cst_235 = arith.constant dense<0.000000e+00> : vector<32x1xf32>
    %287 = tpu.matmul %284, %286, %cst_235 {dimension_numbers = #tpu.dot_dimension_numbers<[1], [0], [0], [1], [0, 0, 1, 1], [], []>} : vector<32x1xf32>, vector<1x1xf32>, vector<32x1xf32> -> vector<32x1xf32>
    %288 = arith.addf %283, %287 : vector<32x1xf32>
    %289 = vector.extract_strided_slice %279 {offsets = [64, 0], sizes = [32, 1], strides = [1, 1]} : vector<288x1xf32> to vector<32x1xf32>
    %c2_236 = arith.constant 2 : index
    %c0_237 = arith.constant 0 : index
    %c0_238 = arith.constant 0 : index
    %290 = vector.load %arg22[%c2_236, %c0_237, %c0_238] : memref<9x1x1xf32, #tpu.memory_space<vmem>>, vector<1x1x1xf32>
    %291 = vector.shape_cast %290 : vector<1x1x1xf32> to vector<1x1xf32>
    %cst_239 = arith.constant dense<0.000000e+00> : vector<32x1xf32>
    %292 = tpu.matmul %289, %291, %cst_239 {dimension_numbers = #tpu.dot_dimension_numbers<[1], [0], [0], [1], [0, 0, 1, 1], [], []>} : vector<32x1xf32>, vector<1x1xf32>, vector<32x1xf32> -> vector<32x1xf32>
    %293 = arith.addf %288, %292 : vector<32x1xf32>
    %294 = vector.extract_strided_slice %279 {offsets = [96, 0], sizes = [32, 1], strides = [1, 1]} : vector<288x1xf32> to vector<32x1xf32>
    %c3_240 = arith.constant 3 : index
    %c0_241 = arith.constant 0 : index
    %c0_242 = arith.constant 0 : index
    %295 = vector.load %arg22[%c3_240, %c0_241, %c0_242] : memref<9x1x1xf32, #tpu.memory_space<vmem>>, vector<1x1x1xf32>
    %296 = vector.shape_cast %295 : vector<1x1x1xf32> to vector<1x1xf32>
    %cst_243 = arith.constant dense<0.000000e+00> : vector<32x1xf32>
    %297 = tpu.matmul %294, %296, %cst_243 {dimension_numbers = #tpu.dot_dimension_numbers<[1], [0], [0], [1], [0, 0, 1, 1], [], []>} : vector<32x1xf32>, vector<1x1xf32>, vector<32x1xf32> -> vector<32x1xf32>
    %298 = arith.addf %293, %297 : vector<32x1xf32>
    %299 = vector.extract_strided_slice %279 {offsets = [128, 0], sizes = [32, 1], strides = [1, 1]} : vector<288x1xf32> to vector<32x1xf32>
    %c4_244 = arith.constant 4 : index
    %c0_245 = arith.constant 0 : index
    %c0_246 = arith.constant 0 : index
    %300 = vector.load %arg22[%c4_244, %c0_245, %c0_246] : memref<9x1x1xf32, #tpu.memory_space<vmem>>, vector<1x1x1xf32>
    %301 = vector.shape_cast %300 : vector<1x1x1xf32> to vector<1x1xf32>
    %cst_247 = arith.constant dense<0.000000e+00> : vector<32x1xf32>
    %302 = tpu.matmul %299, %301, %cst_247 {dimension_numbers = #tpu.dot_dimension_numbers<[1], [0], [0], [1], [0, 0, 1, 1], [], []>} : vector<32x1xf32>, vector<1x1xf32>, vector<32x1xf32> -> vector<32x1xf32>
    %303 = arith.addf %298, %302 : vector<32x1xf32>
    %304 = vector.extract_strided_slice %279 {offsets = [160, 0], sizes = [32, 1], strides = [1, 1]} : vector<288x1xf32> to vector<32x1xf32>
    %c5_248 = arith.constant 5 : index
    %c0_249 = arith.constant 0 : index
    %c0_250 = arith.constant 0 : index
    %305 = vector.load %arg22[%c5_248, %c0_249, %c0_250] : memref<9x1x1xf32, #tpu.memory_space<vmem>>, vector<1x1x1xf32>
    %306 = vector.shape_cast %305 : vector<1x1x1xf32> to vector<1x1xf32>
    %cst_251 = arith.constant dense<0.000000e+00> : vector<32x1xf32>
    %307 = tpu.matmul %304, %306, %cst_251 {dimension_numbers = #tpu.dot_dimension_numbers<[1], [0], [0], [1], [0, 0, 1, 1], [], []>} : vector<32x1xf32>, vector<1x1xf32>, vector<32x1xf32> -> vector<32x1xf32>
    %308 = arith.addf %303, %307 : vector<32x1xf32>
    %309 = vector.extract_strided_slice %279 {offsets = [192, 0], sizes = [32, 1], strides = [1, 1]} : vector<288x1xf32> to vector<32x1xf32>
    %c6_252 = arith.constant 6 : index
    %c0_253 = arith.constant 0 : index
    %c0_254 = arith.constant 0 : index
    %310 = vector.load %arg22[%c6_252, %c0_253, %c0_254] : memref<9x1x1xf32, #tpu.memory_space<vmem>>, vector<1x1x1xf32>
    %311 = vector.shape_cast %310 : vector<1x1x1xf32> to vector<1x1xf32>
    %cst_255 = arith.constant dense<0.000000e+00> : vector<32x1xf32>
    %312 = tpu.matmul %309, %311, %cst_255 {dimension_numbers = #tpu.dot_dimension_numbers<[1], [0], [0], [1], [0, 0, 1, 1], [], []>} : vector<32x1xf32>, vector<1x1xf32>, vector<32x1xf32> -> vector<32x1xf32>
    %313 = arith.addf %308, %312 : vector<32x1xf32>
    %314 = vector.extract_strided_slice %279 {offsets = [224, 0], sizes = [32, 1], strides = [1, 1]} : vector<288x1xf32> to vector<32x1xf32>
    %c7_256 = arith.constant 7 : index
    %c0_257 = arith.constant 0 : index
    %c0_258 = arith.constant 0 : index
    %315 = vector.load %arg22[%c7_256, %c0_257, %c0_258] : memref<9x1x1xf32, #tpu.memory_space<vmem>>, vector<1x1x1xf32>
    %316 = vector.shape_cast %315 : vector<1x1x1xf32> to vector<1x1xf32>
    %cst_259 = arith.constant dense<0.000000e+00> : vector<32x1xf32>
    %317 = tpu.matmul %314, %316, %cst_259 {dimension_numbers = #tpu.dot_dimension_numbers<[1], [0], [0], [1], [0, 0, 1, 1], [], []>} : vector<32x1xf32>, vector<1x1xf32>, vector<32x1xf32> -> vector<32x1xf32>
    %318 = arith.addf %313, %317 : vector<32x1xf32>
    %319 = vector.extract_strided_slice %279 {offsets = [256, 0], sizes = [32, 1], strides = [1, 1]} : vector<288x1xf32> to vector<32x1xf32>
    %c8_260 = arith.constant 8 : index
    %c0_261 = arith.constant 0 : index
    %c0_262 = arith.constant 0 : index
    %320 = vector.load %arg22[%c8_260, %c0_261, %c0_262] : memref<9x1x1xf32, #tpu.memory_space<vmem>>, vector<1x1x1xf32>
    %321 = vector.shape_cast %320 : vector<1x1x1xf32> to vector<1x1xf32>
    %cst_263 = arith.constant dense<0.000000e+00> : vector<32x1xf32>
    %322 = tpu.matmul %319, %321, %cst_263 {dimension_numbers = #tpu.dot_dimension_numbers<[1], [0], [0], [1], [0, 0, 1, 1], [], []>} : vector<32x1xf32>, vector<1x1xf32>, vector<32x1xf32> -> vector<32x1xf32>
    %323 = arith.addf %318, %322 : vector<32x1xf32>
    %c0_264 = arith.constant 0 : index
    %c0_265 = arith.constant 0 : index
    %324 = vector.load %arg21[%c0_264, %c0_265] : memref<32x1xf32, #tpu.memory_space<vmem>>, vector<32x1xf32>
    %325 = arith.addf %323, %324 : vector<32x1xf32>
    %cst_266 = arith.constant 0.000000e+00 : f32
    %326 = vector.broadcast %cst_266 : f32 to vector<32x1xf32>
    %327 = arith.maximumf %325, %326 : vector<32x1xf32>
    %c0_267 = arith.constant 0 : index
    %c0_268 = arith.constant 0 : index
    %328 = vector.load %arg23[%c0_267, %c0_268] : memref<4x32xf32, #tpu.memory_space<vmem>>, vector<4x32xf32>
    %cst_269 = arith.constant dense<0.000000e+00> : vector<4x1xf32>
    %329 = tpu.matmul %328, %327, %cst_269 {dimension_numbers = #tpu.dot_dimension_numbers<[1], [0], [0], [1], [0, 0, 1, 1], [], []>} : vector<4x32xf32>, vector<32x1xf32>, vector<4x1xf32> -> vector<4x1xf32>
    %c0_270 = arith.constant 0 : index
    %c0_271 = arith.constant 0 : index
    %330 = vector.load %arg24[%c0_270, %c0_271] : memref<4x1xf32, #tpu.memory_space<vmem>>, vector<4x1xf32>
    %331 = arith.addf %329, %330 : vector<4x1xf32>
    %c0_272 = arith.constant 0 : index
    %c0_273 = arith.constant 0 : index
    %c0_274 = arith.constant 0 : index
    %332 = vector.load %arg25[%c0_272, %c0_273, %c0_274] : memref<1x4x1xf32, #tpu.memory_space<vmem>>, vector<1x4x1xf32>
    %333 = vector.shape_cast %332 : vector<1x4x1xf32> to vector<4x1xf32>
    %334 = vector.shape_cast %331 : vector<4x1xf32> to vector<1x4x1xf32>
    tpu.vector_store %arg25[%c0_272, %c0_273, %c0_274], %334 {strides = array<i32>} : memref<1x4x1xf32, #tpu.memory_space<vmem>>, vector<1x4x1xf32>,
    return
  }
  func.func @transform_0(%arg0: i32) -> (i32, i32, i32) {
    %c0_i32 = arith.constant 0 : i32
    %c0_i32_0 = arith.constant 0 : i32
    %c0_i32_1 = arith.constant 0 : i32
    return %arg0, %c0_i32, %c0_i32_0 : i32, i32, i32
  }
  func.func @transform_1(%arg0: i32) -> (i32, i32) {
    %c0_i32 = arith.constant 0 : i32
    %c0_i32_0 = arith.constant 0 : i32
    %c0_i32_1 = arith.constant 0 : i32
    return %c0_i32, %c0_i32_0 : i32, i32
  }
  func.func @transform_2(%arg0: i32) -> (i32, i32) {
    %c0_i32 = arith.constant 0 : i32
    %c0_i32_0 = arith.constant 0 : i32
    %c0_i32_1 = arith.constant 0 : i32
    return %c0_i32, %c0_i32_0 : i32, i32
  }
  func.func @transform_3(%arg0: i32) -> (i32, i32, i32) {
    %c0_i32 = arith.constant 0 : i32
    %c0_i32_0 = arith.constant 0 : i32
    %c0_i32_1 = arith.constant 0 : i32
    %c0_i32_2 = arith.constant 0 : i32
    return %c0_i32, %c0_i32_0, %c0_i32_1 : i32, i32, i32
  }
  func.func @transform_4(%arg0: i32) -> (i32, i32) {
    %c0_i32 = arith.constant 0 : i32
    %c0_i32_0 = arith.constant 0 : i32
    %c0_i32_1 = arith.constant 0 : i32
    return %c0_i32, %c0_i32_0 : i32, i32
  }
  func.func @transform_5(%arg0: i32) -> (i32, i32) {
    %c0_i32 = arith.constant 0 : i32
    %c0_i32_0 = arith.constant 0 : i32
    %c0_i32_1 = arith.constant 0 : i32
    return %c0_i32, %c0_i32_0 : i32, i32
  }
  func.func @transform_6(%arg0: i32) -> (i32, i32, i32) {
    %c0_i32 = arith.constant 0 : i32
    %c0_i32_0 = arith.constant 0 : i32
    %c0_i32_1 = arith.constant 0 : i32
    %c0_i32_2 = arith.constant 0 : i32
    return %c0_i32, %c0_i32_0, %c0_i32_1 : i32, i32, i32
  }
  func.func @transform_7(%arg0: i32) -> (i32, i32) {
    %c0_i32 = arith.constant 0 : i32
    %c0_i32_0 = arith.constant 0 : i32
    %c0_i32_1 = arith.constant 0 : i32
    return %c0_i32, %c0_i32_0 : i32, i32
  }
  func.func @transform_8(%arg0: i32) -> (i32, i32) {
    %c0_i32 = arith.constant 0 : i32
    %c0_i32_0 = arith.constant 0 : i32
    %c0_i32_1 = arith.constant 0 : i32
    return %c0_i32, %c0_i32_0 : i32, i32
  }
  func.func @transform_9(%arg0: i32) -> (i32, i32, i32) {
    %c0_i32 = arith.constant 0 : i32
    %c0_i32_0 = arith.constant 0 : i32
    %c0_i32_1 = arith.constant 0 : i32
    %c0_i32_2 = arith.constant 0 : i32
    return %c0_i32, %c0_i32_0, %c0_i32_1 : i32, i32, i32
  }
  func.func @transform_10(%arg0: i32) -> (i32, i32) {
    %c0_i32 = arith.constant 0 : i32
    %c0_i32_0 = arith.constant 0 : i32
    %c0_i32_1 = arith.constant 0 : i32
    return %c0_i32, %c0_i32_0 : i32, i32
  }
  func.func @transform_11(%arg0: i32) -> (i32, i32) {
    %c0_i32 = arith.constant 0 : i32
    %c0_i32_0 = arith.constant 0 : i32
    %c0_i32_1 = arith.constant 0 : i32
    return %c0_i32, %c0_i32_0 : i32, i32
  }
  func.func @transform_12(%arg0: i32) -> (i32, i32, i32) {
    %c0_i32 = arith.constant 0 : i32
    %c0_i32_0 = arith.constant 0 : i32
    %c0_i32_1 = arith.constant 0 : i32
    %c0_i32_2 = arith.constant 0 : i32
    return %c0_i32, %c0_i32_0, %c0_i32_1 : i32, i32, i32
  }
  func.func @transform_13(%arg0: i32) -> (i32, i32) {
    %c0_i32 = arith.constant 0 : i32
    %c0_i32_0 = arith.constant 0 : i32
    %c0_i32_1 = arith.constant 0 : i32
    return %c0_i32, %c0_i32_0 : i32, i32
  }
  func.func @transform_14(%arg0: i32) -> (i32, i32) {
    %c0_i32 = arith.constant 0 : i32
    %c0_i32_0 = arith.constant 0 : i32
    %c0_i32_1 = arith.constant 0 : i32
    return %c0_i32, %c0_i32_0 : i32, i32
  }
  func.func @transform_15(%arg0: i32) -> (i32, i32, i32) {
    %c0_i32 = arith.constant 0 : i32
    %c0_i32_0 = arith.constant 0 : i32
    %c0_i32_1 = arith.constant 0 : i32
    %c0_i32_2 = arith.constant 0 : i32
    return %c0_i32, %c0_i32_0, %c0_i32_1 : i32, i32, i32
  }
  func.func @transform_16(%arg0: i32) -> (i32, i32) {
    %c0_i32 = arith.constant 0 : i32
    %c0_i32_0 = arith.constant 0 : i32
    %c0_i32_1 = arith.constant 0 : i32
    return %c0_i32, %c0_i32_0 : i32, i32
  }
  func.func @transform_17(%arg0: i32) -> (i32, i32) {
    %c0_i32 = arith.constant 0 : i32
    %c0_i32_0 = arith.constant 0 : i32
    %c0_i32_1 = arith.constant 0 : i32
    return %c0_i32, %c0_i32_0 : i32, i32
  }
  func.func @transform_18(%arg0: i32) -> (i32, i32, i32) {
    %c0_i32 = arith.constant 0 : i32
    %c0_i32_0 = arith.constant 0 : i32
    %c0_i32_1 = arith.constant 0 : i32
    %c0_i32_2 = arith.constant 0 : i32
    return %c0_i32, %c0_i32_0, %c0_i32_1 : i32, i32, i32
  }
  func.func @transform_19(%arg0: i32) -> (i32, i32) {
    %c0_i32 = arith.constant 0 : i32
    %c0_i32_0 = arith.constant 0 : i32
    %c0_i32_1 = arith.constant 0 : i32
    return %c0_i32, %c0_i32_0 : i32, i32
  }
  func.func @transform_20(%arg0: i32) -> (i32, i32) {
    %c0_i32 = arith.constant 0 : i32
    %c0_i32_0 = arith.constant 0 : i32
    %c0_i32_1 = arith.constant 0 : i32
    return %c0_i32, %c0_i32_0 : i32, i32
  }
  func.func @transform_21(%arg0: i32) -> (i32, i32, i32) {
    %c0_i32 = arith.constant 0 : i32
    %c0_i32_0 = arith.constant 0 : i32
    %c0_i32_1 = arith.constant 0 : i32
    %c0_i32_2 = arith.constant 0 : i32
    return %c0_i32, %c0_i32_0, %c0_i32_1 : i32, i32, i32
  }
  func.func @transform_22(%arg0: i32) -> (i32, i32) {
    %c0_i32 = arith.constant 0 : i32
    %c0_i32_0 = arith.constant 0 : i32
    %c0_i32_1 = arith.constant 0 : i32
    return %c0_i32, %c0_i32_0 : i32, i32
  }
  func.func @transform_23(%arg0: i32) -> (i32, i32) {
    %c0_i32 = arith.constant 0 : i32
    %c0_i32_0 = arith.constant 0 : i32
    %c0_i32_1 = arith.constant 0 : i32
    return %c0_i32, %c0_i32_0 : i32, i32
  }
  func.func @transform_24(%arg0: i32) -> (i32, i32, i32) {
    %c0_i32 = arith.constant 0 : i32
    %c0_i32_0 = arith.constant 0 : i32
    %c0_i32_1 = arith.constant 0 : i32
    return %arg0, %c0_i32, %c0_i32_0 : i32, i32, i32
  }
}

</mosaic_0001>

<bundles_post_ra>
// kernel: frontnet_forward.1
= control target key start
LH: loop header
LB: loop body
LE: loop exit
PB: predicated region body
PF: predicated region fallthrough
CT: control target
= control target key end

     0   :  { %s6463_s0 = inlined_call_operand.vmem [shape: f32[2,32,256], index: 0, kind: input, shape index: {}]   ;;  %s6464_s1 = inlined_call_operand.vmem [shape: f32[8,32], index: 1, kind: input, shape index: {}]   ;;  %s6465_s2 = inlined_call_operand.vmem [shape: f32[8,1], index: 2, kind: input, shape index: {}]   ;;  %s6466_s3 = inlined_call_operand.vmem [shape: f32[4,256,64], index: 3, kind: input, shape index: {}]   ;;  %s6467_s4 = inlined_call_operand.vmem [shape: f32[72,8], index: 4, kind: input, shape index: {}]   ;;  %s6468_s5 = inlined_call_operand.vmem [shape: f32[8,1], index: 5, kind: input, shape index: {}]   ;;  %s6469_s6 = inlined_call_operand.vmem [shape: f32[9,64,16], index: 6, kind: input, shape index: {}]   ;;  %s6470_s7 = inlined_call_operand.vmem [shape: f32[72,8], index: 7, kind: input, shape index: {}]   ;;  %s6471_s8 = inlined_call_operand.vmem [shape: f32[8,1], index: 8, kind: input, shape index: {}]   ;;  %s6472_s9 = inlined_call_operand.vmem [shape: f32[9,16,16], index: 9, kind: input, shape index: {}]   ;;  %s6473_s10 = inlined_call_operand.vmem [shape: f32[144,8], index: 10, kind: input, shape index: {}]   ;;  %s6474_s11 = inlined_call_operand.vmem [shape: f32[16,1], index: 11, kind: input, shape index: {}]   ;;  %s6475_s12 = inlined_call_operand.vmem [shape: f32[9,16,4], index: 12, kind: input, shape index: {}]   ;;  %s6476_s13 = inlined_call_operand.vmem [shape: f32[144,16], index: 13, kind: input, shape index: {}]   ;;  %s6477_s14 = inlined_call_operand.vmem [shape: f32[16,1], index: 14, kind: input, shape index: {}]   ;;  %s6478_s15 = inlined_call_operand.vmem [shape: f32[9,4,4], index: 15, kind: input, shape index: {}]   ;;  %s6479_s16 = inlined_call_operand.vmem [shape: f32[288,16], index: 16, kind: input, shape index: {}]   ;;  %s6480_s17 = inlined_call_operand.vmem [shape: f32[32,1], index: 17, kind: input, shape index: {}]   ;;  %s6481_s18 = inlined_call_operand.vmem [shape: f32[9,4,1], index: 18, kind: input, shape index: {}]   ;;  %s6482_s19 = inlined_call_operand.vmem [shape: f32[288,32], index: 19, kind: input, shape index: {}]   ;;  %s6483_s20 = inlined_call_operand.vmem [shape: f32[32,1], index: 20, kind: input, shape index: {}]   ;;  %s6484_s21 = inlined_call_operand.vmem [shape: f32[9,1,1], index: 21, kind: input, shape index: {}]   ;;  %s6485_s22 = inlined_call_operand.vmem [shape: f32[4,32], index: 22, kind: input, shape index: {}]   ;;  %s6486_s23 = inlined_call_operand.vmem [shape: f32[4,1], index: 23, kind: input, shape index: {}]   ;;  %s6487_s24 = inlined_call_operand.vmem [shape: f32[2,4,1], index: 24, kind: output, shape index: {}]  }
   0x1   :  { %6493 = sst [smem:[#allocation2_spill]] %s6463_s0 }
   0x2   :  { %6494 = sst [smem:[#allocation3_spill]] %s6464_s1 }
   0x3   :  { %6495 = sst [smem:[#allocation4_spill]] %s6465_s2 }
   0x4   :  { %6496 = sst [smem:[#allocation5_spill]] %s6466_s3 }
   0x5   :  { %6497 = sst [smem:[#allocation6_spill]] %s6467_s4 }
   0x6   :  { %6498 = sst [smem:[#allocation7_spill]] %s6468_s5  ;;  %s4930_s5 = smov 0  }
   0x7   :  { %6499 = sst [smem:[#allocation8_spill]] %s6469_s6 }
   0x8   :  { %6500 = sst [smem:[#allocation9_spill]] %s6470_s7 }
   0x9   :  { %6501 = sst [smem:[#allocation10_spill]] %s6471_s8 }
   0xa LB: > { %s4270_s26 = sadd.s32 4294967295, %s4802_s5   ;;  %p4274_p0 = scmp.ge.s32.totalorder %s4802_s5, 1  ;;  %s4802_s5 = sphi %s4930_s5, %s34_s5  }
   0xb   : > { %p662_p1 = scmp.lt.s32.totalorder %s4802_s5, 3 }
   0xd   : > { %p663_p2 = pnand %p4274_p0, %p662_p1 }
   0xe   : > { %p727_p3 = scmp.lt.s32.totalorder (!%p663_p2), %s4270_s26, 1  ;;  %s6502_s6 = sld [smem:[#allocation4_spill]] (!%p663_p2) }
   0xf   : > { %666 = sbr.rel (%p663_p2) target bundleno = 2990 (0xbae), region = 116  ;;  %s6503_s0 = sld [smem:[#allocation5_spill]] (!%p663_p2) }
  0x10   : > { %s6504_s27 = sld [smem:[#allocation2_spill]] (!%p663_p2) }
  0x11   : > { %s6505_s30 = sld [smem:[#allocation7_spill]] (!%p663_p2) }
  0x12   : > { %s6507_s4 = sld [smem:[#allocation6_spill]] (!%p663_p2) }
  0x13   : > { %s6508_s3 = sld [smem:[#allocation8_spill]] (!%p663_p2) }
  0x14   : > { %v745_v0 = vld [vmem:[%s6502_s6] sm:$0xff]  ;;  %v4804_v1 = vmov 0   ;;  %s6512_s26 = smov (!%p727_p3, %s4270_s26), 1  ;;  %s6506_s6 = sld [smem:[#allocation3_spill]]  ;;  %vm751_vm0 = vcmask 261120   ;;  %vm1100_vm1 = vcmask 64512  }
  0x15   : > { %4793 = vset.pattern.permute.xlu0 %v4804_v1  ;;  %v812_v2 = vld [vmem:[%s6503_s0 + $0x78] sm:$0xff]  ;;  %v811_v3 = vld [vmem:[%s6503_s0 + $0x70] sm:$0xff]  ;;  %4794 = vset.pattern.permute.xlu1 %v4804_v1  ;;  %v810_v4 = vld [vmem:[%s6503_s0 + $0x68] sm:$0xff]  ;;  %s4778_s8 = sshll.u32 %s6512_s26, 6  ;;  %vm1189_vm2 = vcmask 523264   ;;  %vm1560_vm3 = vcmask 130048  }
  0x16   : > { %748 = vperm.xlu0 %4793, %v745_v0   ;;  %829 = vmatpush.msra.mxu1 %v812_v2  ;;  %s731_s28 = scalar_lea.vmem %s6504_s27, %s4778_s8  ;;  %v809_v5 = vld [vmem:[%s6503_s0 + $0x60] sm:$0xff]  ;;  %v808_v11 = vld [vmem:[%s6503_s0 + $0x58] sm:$0xff]  ;;  %v807_v14 = vld [vmem:[%s6503_s0 + $0x50] sm:$0xff]  ;;  %vm2417_vm4 = vcmask 1043456   ;;  %vm2410_vm5 = vcmask 31744   ;;  %vm3751_vm6 = vcmask 1040384  }
  0x17   : > { %4795 = vset.pattern.permute.xlu2 %v4804_v1  ;;  %v743_v6 = vld [vmem:[%s731_s28 + $0x30] sm:$0xff]  ;;  %v744_v7 = vld [vmem:[%s731_s28 + $0x38] sm:$0xff]  ;;  %v741_v8 = vld [vmem:[%s731_s28 + $0x20] sm:$0xff]  ;;  %vm3738_vm7 = vcmask 7168   ;;  %s4277_s8 = sshll.u32 %s6512_s26, 2  ;;  %vm4215_vm8 = vcmask 3072  }
  0x18   : > { %830 = vmatpush.msra.mxu1 %v811_v3  ;;  %767 = vmatpush.msra.mxu0 %v743_v6  ;;  %v742_v9 = vld [vmem:[%s731_s28 + $0x28] sm:$0xff]  ;;  %v1467_v10 = vld [vmem:[%s6505_s30] sm:$0xff]  ;;  %v739_v12 = vld [vmem:[%s731_s28 + $0x10] sm:$0xff]  ;;  %s735_s7 = scalar_lea.vmem %s6487_s24, %s4277_s8 }
  0x19   : > { %787 = vmatpush.msra.mxu3 %v744_v7  ;;  %v740_v13 = vld [vmem:[%s731_s28 + $0x18] sm:$0xff]  ;;  %v737_v15 = vld [vmem:[%s731_s28] sm:$0xff]  ;;  %v738_v16 = vld [vmem:[%s731_s28 + $0x8] sm:$0xff] }
  0x1a   : > { %831 = vmatpush.msra.mxu1 %v810_v4  ;;  %768 = vmatpush.msra.mxu0 %v741_v8  ;;  %v736_v17 = vld [vmem:[%s6506_s6] sm:$0xff]  ;;  %v4295_v18 = vld [vmem:[%s6503_s0 + $0x178] sm:$0xff]  ;;  %v806_v19 = vld [vmem:[%s6503_s0 + $0x48] sm:$0xff]  ;;  %s6509_s6 = sld [smem:[#allocation9_spill]] }
  0x1b   : > { %788 = vmatpush.msra.mxu3 %v742_v9  ;;  %v828_v20 = vld [vmem:[%s6503_s0 + $0xf8] sm:$0xff]  ;;  %v4294_v21 = vld [vmem:[%s6503_s0 + $0x170] sm:$0xff]  ;;  %v805_v22 = vld [vmem:[%s6503_s0 + $0x40] sm:$0xff] }
  0x1c   : > { %832 = vmatpush.msra.mxu1 %v809_v5  ;;  %769 = vmatpush.msra.mxu0 %v739_v12  ;;  %v2728_v23 = vld [vmem:[%s6477_s14] sm:$0xff]  ;;  %v827_v24 = vld [vmem:[%s6503_s0 + $0xf0] sm:$0xff]  ;;  %v4293_v25 = vld [vmem:[%s6503_s0 + $0x168] sm:$0xff] }
  0x1d   : > { %789 = vmatpush.msra.mxu3 %v740_v13  ;;  %v804_v26 = vld [vmem:[%s6503_s0 + $0x38] sm:$0xff]  ;;  %v826_v27 = vld [vmem:[%s6503_s0 + $0xe8] sm:$0xff]  ;;  %v4292_v29 = vld [vmem:[%s6503_s0 + $0x160] sm:$0xff] }
  0x1e   : > { %1470 = vperm.xlu0 %4793, %v1467_v10   ;;  %833 = vmatpush.msra.mxu1 %v808_v11  ;;  %v4327_v28 = vld [vmem:[%s6503_s0 + $0x278] sm:$0xff]  ;;  %v803_v30 = vld [vmem:[%s6503_s0 + $0x30] sm:$0xff]  ;;  %v825_v31 = vld [vmem:[%s6503_s0 + $0xe0] sm:$0xff] }
  0x1f   : > { %770 = vmatpush.msra.mxu0 %v737_v15  ;;  %790 = vmatpush.msra.mxu3 %v738_v16  ;;  %v4326_v32 = vld [vmem:[%s6503_s0 + $0x270] sm:$0xff]  ;;  %v4291_v33 = vld [vmem:[%s6503_s0 + $0x158] sm:$0xff]  ;;  %v802_v34 = vld [vmem:[%s6503_s0 + $0x28] sm:$0xff] }
  0x20   : > { %834 = vmatpush.msra.mxu1 %v807_v14  ;;  %4278 = vmatmul.msk.f32.vlgmr.msra.gmra.mxu0 %vm751_vm0, %v736_v17  ;;  %v824_v35 = vld [vmem:[%s6503_s0 + $0xd8] sm:$0xff]  ;;  %v4325_v36 = vld [vmem:[%s6503_s0 + $0x268] sm:$0xff]  ;;  %v4290_v37 = vld [vmem:[%s6503_s0 + $0x150] sm:$0xff] }
  0x21   : > { %4279 = vmatmul.msk.f32.vlgmr.msra.gmra.mxu3 %vm751_vm0, %v736_v17  ;;  %902 = vmatpush.msrb.mxu0 %v4295_v18  ;;  %v801_v38 = vld [vmem:[%s6503_s0 + $0x20] sm:$0xff]  ;;  %v823_v39 = vld [vmem:[%s6503_s0 + $0xd0] sm:$0xff]  ;;  %v4289_v41 = vld [vmem:[%s6503_s0 + $0x148] sm:$0xff] }
  0x22   : > { %835 = vmatpush.msra.mxu1 %v806_v19  ;;  %849 = vmatpush.msrb.mxu3 %v828_v20  ;;  %v4324_v40 = vld [vmem:[%s6503_s0 + $0x260] sm:$0xff]  ;;  %v800_v42 = vld [vmem:[%s6503_s0 + $0x18] sm:$0xff]  ;;  %v822_v43 = vld [vmem:[%s6503_s0 + $0xc8] sm:$0xff] }
  0x23   : > { %903 = vmatpush.msrb.mxu0 %v4294_v21  ;;  %975 = vmatpush.msra.mxu2 %v4327_v28  ;;  %v4323_v44 = vld [vmem:[%s6503_s0 + $0x258] sm:$0xff]  ;;  %v4288_v45 = vld [vmem:[%s6503_s0 + $0x140] sm:$0xff]  ;;  %v799_v46 = vld [vmem:[%s6503_s0 + $0x10] sm:$0xff] }
  0x24   : > { %836 = vmatpush.msra.mxu1 %v805_v22  ;;  %850 = vmatpush.msrb.mxu3 %v827_v24  ;;  %v821_v47 = vld [vmem:[%s6503_s0 + $0xc0] sm:$0xff]  ;;  %v4322_v48 = vld [vmem:[%s6503_s0 + $0x250] sm:$0xff]  ;;  %v4287_v49 = vld [vmem:[%s6503_s0 + $0x138] sm:$0xff] }
  0x25   : > { %904 = vmatpush.msrb.mxu0 %v4293_v25  ;;  %976 = vmatpush.msra.mxu2 %v4326_v32  ;;  %v798_v50 = vld [vmem:[%s6503_s0 + $0x8] sm:$0xff]  ;;  %v820_v51 = vld [vmem:[%s6503_s0 + $0xb8] sm:$0xff]  ;;  %v4286_v52 = vld [vmem:[%s6503_s0 + $0x130] sm:$0xff] }
  0x26   : > { %2732 = vperm.xlu0 %4793, %v2728_v23   ;;  %837 = vmatpush.msra.mxu1 %v804_v26  ;;  %v797_v53 = vld [vmem:[%s6503_s0] sm:$0xff]  ;;  %v4311_v54 = vld [vmem:[%s6503_s0 + $0x1f8] sm:$0xff]  ;;  %v819_v55 = vld [vmem:[%s6503_s0 + $0xb0] sm:$0xff] }
  0x27   : > { %851 = vmatpush.msrb.mxu3 %v826_v27  ;;  %905 = vmatpush.msrb.mxu0 %v4292_v29  ;;  %v4285_v56 = vld [vmem:[%s6503_s0 + $0x128] sm:$0xff]  ;;  %v4310_v57 = vld [vmem:[%s6503_s0 + $0x1f0] sm:$0xff]  ;;  %v4284_v59 = vld [vmem:[%s6503_s0 + $0x120] sm:$0xff] }
  0x28   : > { %838 = vmatpush.msra.mxu1 %v803_v30  ;;  %977 = vmatpush.msra.mxu2 %v4325_v36  ;;  %v818_v58 = vld [vmem:[%s6503_s0 + $0xa8] sm:$0xff]  ;;  %v817_v61 = vld [vmem:[%s6503_s0 + $0xa0] sm:$0xff]  ;;  %v4283_v62 = vld [vmem:[%s6503_s0 + $0x118] sm:$0xff] }
  0x29   : > { %852 = vmatpush.msrb.mxu3 %v825_v31  ;;  %906 = vmatpush.msrb.mxu0 %v4291_v33  ;;  %v4309_v60 = vld [vmem:[%s6503_s0 + $0x1e8] sm:$0xff]  ;;  %v4308_v63 = vld [vmem:[%s6503_s0 + $0x1e0] sm:$0xff]  ;;  %v816_v0 = vld [vmem:[%s6503_s0 + $0x98] sm:$0xff] }
  0x2a   : > { %839 = vmatpush.msra.mxu1 %v802_v34  ;;  %978 = vmatpush.msra.mxu2 %v4324_v40  ;;  %v4282_v1 = vld [vmem:[%s6503_s0 + $0x110] sm:$0xff]  ;;  %v4307_v2 = vld [vmem:[%s6503_s0 + $0x1d8] sm:$0xff]  ;;  %v4281_v4 = vld [vmem:[%s6503_s0 + $0x108] sm:$0xff] }
  0x2b   : > { %853 = vmatpush.msrb.mxu3 %v824_v35  ;;  %907 = vmatpush.msrb.mxu0 %v4290_v37  ;;  %v815_v3 = vld [vmem:[%s6503_s0 + $0x90] sm:$0xff]  ;;  %v4280_v6 = vld [vmem:[%s6503_s0 + $0x100] sm:$0xff]  ;;  %v4359_v7 = vld [vmem:[%s6503_s0 + $0x378] sm:$0xff] }
  0x2c   : > { %840 = vmatpush.msra.mxu1 %v801_v38  ;;  %979 = vmatpush.msra.mxu2 %v4323_v44  ;;  %v4306_v5 = vld [vmem:[%s6503_s0 + $0x1d0] sm:$0xff]  ;;  %v814_v9 = vld [vmem:[%s6503_s0 + $0x88] sm:$0xff]  ;;  %v813_v13 = vld [vmem:[%s6503_s0 + $0x80] sm:$0xff] }
  0x2d   : > { %854 = vmatpush.msrb.mxu3 %v823_v39  ;;  %908 = vmatpush.msrb.mxu0 %v4289_v41  ;;  %v4358_v8 = vld [vmem:[%s6503_s0 + $0x370] sm:$0xff]  ;;  %v4305_v10 = vld [vmem:[%s6503_s0 + $0x1c8] sm:$0xff]  ;;  %v4304_v14 = vld [vmem:[%s6503_s0 + $0x1c0] sm:$0xff] }
  0x2e   : > { %841 = vmatpush.msra.mxu1 %v800_v42  ;;  %980 = vmatpush.msra.mxu2 %v4322_v48  ;;  %v4321_v11 = vld [vmem:[%s6503_s0 + $0x248] sm:$0xff]  ;;  %v4320_v15 = vld [vmem:[%s6503_s0 + $0x240] sm:$0xff]  ;;  %v4343_v16 = vld [vmem:[%s6503_s0 + $0x2f8] sm:$0xff] }
  0x2f   : > { %855 = vmatpush.msrb.mxu3 %v822_v43  ;;  %909 = vmatpush.msrb.mxu0 %v4288_v45  ;;  %v4357_v12 = vld [vmem:[%s6503_s0 + $0x368] sm:$0xff]  ;;  %v4356_v17 = vld [vmem:[%s6503_s0 + $0x360] sm:$0xff]  ;;  %v4303_v18 = vld [vmem:[%s6503_s0 + $0x1b8] sm:$0xff] }
  0x30   : > { %842 = vmatpush.msra.mxu1 %v799_v46  ;;  %981 = vmatpush.msra.mxu2 %v4321_v11  ;;  %v4319_v19 = vld [vmem:[%s6503_s0 + $0x238] sm:$0xff]  ;;  %v4342_v20 = vld [vmem:[%s6503_s0 + $0x2f0] sm:$0xff]  ;;  %v4341_v24 = vld [vmem:[%s6503_s0 + $0x2e8] sm:$0xff] }
  0x31   : > { %856 = vmatpush.msrb.mxu3 %v821_v47  ;;  %910 = vmatpush.msrb.mxu0 %v4287_v49  ;;  %v4355_v21 = vld [vmem:[%s6503_s0 + $0x358] sm:$0xff]  ;;  %v4302_v22 = vld [vmem:[%s6503_s0 + $0x1b0] sm:$0xff]  ;;  %v4301_v26 = vld [vmem:[%s6503_s0 + $0x1a8] sm:$0xff] }
  0x32   : > { %843 = vmatpush.msra.mxu1 %v798_v50  ;;  %982 = vmatpush.msra.mxu2 %v4320_v15  ;;  %v4318_v23 = vld [vmem:[%s6503_s0 + $0x230] sm:$0xff]  ;;  %v4317_v27 = vld [vmem:[%s6503_s0 + $0x228] sm:$0xff]  ;;  %v4340_v28 = vld [vmem:[%s6503_s0 + $0x2e0] sm:$0xff] }
  0x33   : > { %857 = vmatpush.msrb.mxu3 %v820_v51  ;;  %911 = vmatpush.msrb.mxu0 %v4286_v52  ;;  %v4354_v25 = vld [vmem:[%s6503_s0 + $0x350] sm:$0xff]  ;;  %v4353_v29 = vld [vmem:[%s6503_s0 + $0x348] sm:$0xff]  ;;  %v4300_v30 = vld [vmem:[%s6503_s0 + $0x1a0] sm:$0xff] }
  0x34   : > { %844 = vmatpush.msra.mxu1 %v797_v53  ;;  %983 = vmatpush.msra.mxu2 %v4319_v19  ;;  %v4316_v31 = vld [vmem:[%s6503_s0 + $0x220] sm:$0xff]  ;;  %v4339_v32 = vld [vmem:[%s6503_s0 + $0x2d8] sm:$0xff]  ;;  %v4338_v36 = vld [vmem:[%s6503_s0 + $0x2d0] sm:$0xff] }
  0x35   : > { %858 = vmatpush.msrb.mxu3 %v819_v55  ;;  %912 = vmatpush.msrb.mxu0 %v4285_v56  ;;  %v4352_v33 = vld [vmem:[%s6503_s0 + $0x340] sm:$0xff]  ;;  %v4299_v34 = vld [vmem:[%s6503_s0 + $0x198] sm:$0xff]  ;;  %v4298_v38 = vld [vmem:[%s6503_s0 + $0x190] sm:$0xff] }
  0x36   : > { %922 = vmatpush.msrb.mxu1 %v4311_v54  ;;  %984 = vmatpush.msra.mxu2 %v4318_v23  ;;  %v4315_v35 = vld [vmem:[%s6503_s0 + $0x218] sm:$0xff]  ;;  %v4314_v39 = vld [vmem:[%s6503_s0 + $0x210] sm:$0xff]  ;;  %v4337_v40 = vld [vmem:[%s6503_s0 + $0x2c8] sm:$0xff] }
  0x37   : > { %859 = vmatpush.msrb.mxu3 %v818_v58  ;;  %913 = vmatpush.msrb.mxu0 %v4284_v59  ;;  %v4351_v37 = vld [vmem:[%s6503_s0 + $0x338] sm:$0xff]  ;;  %v4350_v41 = vld [vmem:[%s6503_s0 + $0x330] sm:$0xff]  ;;  %v4297_v42 = vld [vmem:[%s6503_s0 + $0x188] sm:$0xff] }
  0x38   : > { %923 = vmatpush.msrb.mxu1 %v4310_v57  ;;  %985 = vmatpush.msra.mxu2 %v4317_v27  ;;  %v4313_v43 = vld [vmem:[%s6503_s0 + $0x208] sm:$0xff]  ;;  %v4336_v44 = vld [vmem:[%s6503_s0 + $0x2c0] sm:$0xff]  ;;  %v4335_v48 = vld [vmem:[%s6503_s0 + $0x2b8] sm:$0xff] }
  0x39   : > { %860 = vmatpush.msrb.mxu3 %v817_v61  ;;  %914 = vmatpush.msrb.mxu0 %v4283_v62  ;;  %v4349_v45 = vld [vmem:[%s6503_s0 + $0x328] sm:$0xff]  ;;  %v4296_v46 = vld [vmem:[%s6503_s0 + $0x180] sm:$0xff]  ;;  %v4334_v50 = vld [vmem:[%s6503_s0 + $0x2b0] sm:$0xff] }
  0x3a   : > { %924 = vmatpush.msrb.mxu1 %v4309_v60  ;;  %986 = vmatpush.msra.mxu2 %v4316_v31  ;;  %v4312_v47 = vld [vmem:[%s6503_s0 + $0x200] sm:$0xff]  ;;  %v4347_v51 = vld [vmem:[%s6503_s0 + $0x318] sm:$0xff]  ;;  %v4333_v52 = vld [vmem:[%s6503_s0 + $0x2a8] sm:$0xff] }
  0x3b   : > { %861 = vmatpush.msrb.mxu3 %v816_v0  ;;  %915 = vmatpush.msrb.mxu0 %v4282_v1  ;;  %v4348_v49 = vld [vmem:[%s6503_s0 + $0x320] sm:$0xff]  ;;  %v4346_v53 = vld [vmem:[%s6503_s0 + $0x310] sm:$0xff]  ;;  %v4345_v55 = vld [vmem:[%s6503_s0 + $0x308] sm:$0xff] }
  0x3c   : > { %925 = vmatpush.msrb.mxu1 %v4308_v63  ;;  %987 = vmatpush.msra.mxu2 %v4315_v35  ;;  %v4332_v54 = vld [vmem:[%s6503_s0 + $0x2a0] sm:$0xff]  ;;  %v4331_v56 = vld [vmem:[%s6503_s0 + $0x298] sm:$0xff]  ;;  %v4330_v58 = vld [vmem:[%s6503_s0 + $0x290] sm:$0xff] }
  0x3d   : > { %862 = vmatpush.msrb.mxu3 %v815_v3  ;;  %916 = vmatpush.msrb.mxu0 %v4281_v4  ;;  %v4344_v57 = vld [vmem:[%s6503_s0 + $0x300] sm:$0xff]  ;;  %v4329_v59 = vld [vmem:[%s6503_s0 + $0x288] sm:$0xff]  ;;  %v4375_v1 = vld [vmem:[%s6503_s0 + $0x3f8] sm:$0xff] }
  0x3e   : > { %926 = vmatpush.msrb.mxu1 %v4307_v2  ;;  %988 = vmatpush.msra.mxu2 %v4314_v39  ;;  %v4328_v60 = vld [vmem:[%s6503_s0 + $0x280] sm:$0xff]  ;;  %v4374_v2 = vld [vmem:[%s6503_s0 + $0x3f0] sm:$0xff]  ;;  %v1179_v39 = vld [vmem:[%s6508_s3 + $0x38] sm:$0xff] }
  0x3f   : > { %917 = vmatpush.msrb.mxu0 %v4280_v6  ;;  %863 = vmatpush.msrb.mxu3 %v814_v9  ;;  %v4370_v9 = vld [vmem:[%s6503_s0 + $0x3d0] sm:$0xff]  ;;  %v4368_v11 = vld [vmem:[%s6503_s0 + $0x3c0] sm:$0xff] }
  0x40   : > { %927 = vmatpush.msrb.mxu1 %v4306_v5  ;;  %989 = vmatpush.msra.mxu2 %v4313_v43  ;;  %v4373_v5 = vld [vmem:[%s6503_s0 + $0x3e8] sm:$0xff]  ;;  %v4364_v15 = vld [vmem:[%s6503_s0 + $0x3a0] sm:$0xff]  ;;  %v4391_v43 = vld [vmem:[%s6508_s3 + $0x70] sm:$0xff] }
  0x41   : > { %1048 = vmatpush.msra.mxu0 %v4359_v7  ;;  %864 = vmatpush.msrb.mxu3 %v813_v13  ;;  %v4372_v7 = vld [vmem:[%s6503_s0 + $0x3e0] sm:$0xff]  ;;  %v4366_v13 = vld [vmem:[%s6503_s0 + $0x3b0] sm:$0xff] }
  0x42   : > { %928 = vmatpush.msrb.mxu1 %v4305_v10  ;;  %990 = vmatpush.msra.mxu2 %v4312_v47  ;;  %v4369_v10 = vld [vmem:[%s6503_s0 + $0x3c8] sm:$0xff]  ;;  %v4360_v19 = vld [vmem:[%s6503_s0 + $0x380] sm:$0xff] }
  0x43   : > { %1049 = vmatpush.msra.mxu0 %v4358_v8  ;;  %995 = vmatpush.msra.mxu3 %v4343_v16  ;;  %v4371_v8 = vld [vmem:[%s6503_s0 + $0x3d8] sm:$0xff]  ;;  %v1091_v35 = vld [vmem:[%s6507_s4] sm:$0xff] }
  0x44   : > { %929 = vmatpush.msrb.mxu1 %v4304_v14  ;;  %v4365_v14 = vld [vmem:[%s6503_s0 + $0x3a8] sm:$0xff]  ;;  %v4363_v16 = vld [vmem:[%s6503_s0 + $0x398] sm:$0xff]  ;;  %v1099_v47 = vld [vmem:[%s6507_s4 + $0x40] sm:$0xff] }
  0x45   : > { %1050 = vmatpush.msra.mxu0 %v4357_v12  ;;  %996 = vmatpush.msra.mxu3 %v4342_v20  ;;  %v4367_v12 = vld [vmem:[%s6503_s0 + $0x3b8] sm:$0xff] }
  0x46   : > { %930 = vmatpush.msrb.mxu1 %v4303_v18  ;;  %v4361_v18 = vld [vmem:[%s6503_s0 + $0x388] sm:$0xff] }
  0x47   : > { %1051 = vmatpush.msra.mxu0 %v4356_v17  ;;  %997 = vmatpush.msra.mxu3 %v4341_v24  ;;  %v4362_v17 = vld [vmem:[%s6503_s0 + $0x390] sm:$0xff]  ;;  %s6510_s0 = sld [smem:[#allocation10_spill]] }
  0x48   : > { %931 = vmatpush.msrb.mxu1 %v4302_v22 }
  0x49   : > { %1052 = vmatpush.msra.mxu0 %v4355_v21  ;;  %998 = vmatpush.msra.mxu3 %v4340_v28 }
  0x4a   : > { %932 = vmatpush.msrb.mxu1 %v4301_v26 }
  0x4b   : > { %1053 = vmatpush.msra.mxu0 %v4354_v25  ;;  %999 = vmatpush.msra.mxu3 %v4339_v32 }
  0x4c   : > { %933 = vmatpush.msrb.mxu1 %v4300_v30 }
  0x4d   : > { %1054 = vmatpush.msra.mxu0 %v4353_v29  ;;  %1000 = vmatpush.msra.mxu3 %v4338_v36  ;;  %v1092_v36 = vld [vmem:[%s6507_s4 + $0x8] sm:$0xff] }
  0x4e   : > { %934 = vmatpush.msrb.mxu1 %v4299_v34 }
  0x4f   : > { %1055 = vmatpush.msra.mxu0 %v4352_v33  ;;  %1001 = vmatpush.msra.mxu3 %v4337_v40  ;;  %v1178_v40 = vld [vmem:[%s6508_s3 + $0x30] sm:$0xff] }
  0x50   : > { %935 = vmatpush.msrb.mxu1 %v4298_v38  ;;  %v1098_v38 = vld [vmem:[%s6507_s4 + $0x38] sm:$0xff] }
  0x51   : > { %1056 = vmatpush.msra.mxu0 %v4351_v37  ;;  %1002 = vmatpush.msra.mxu3 %v4336_v44  ;;  %v1093_v37 = vld [vmem:[%s6507_s4 + $0x10] sm:$0xff]  ;;  %v1176_v44 = vld [vmem:[%s6508_s3 + $0x20] sm:$0xff] }
  0x52   : > { %936 = vmatpush.msrb.mxu1 %v4297_v42  ;;  %v4392_v42 = vld [vmem:[%s6508_s3 + $0x78] sm:$0xff] }
  0x53   : > { %1057 = vmatpush.msra.mxu0 %v4350_v41  ;;  %1003 = vmatpush.msra.mxu3 %v4335_v48  ;;  %v1177_v41 = vld [vmem:[%s6508_s3 + $0x28] sm:$0xff]  ;;  %v1175_v48 = vld [vmem:[%s6508_s3 + $0x18] sm:$0xff] }
  0x54   : > { %937 = vmatpush.msrb.mxu1 %v4296_v46  ;;  %v1094_v46 = vld [vmem:[%s6507_s4 + $0x18] sm:$0xff] }
  0x55   : > { %1058 = vmatpush.msra.mxu0 %v4349_v45  ;;  %1004 = vmatpush.msra.mxu3 %v4334_v50  ;;  %v4390_v45 = vld [vmem:[%s6508_s3 + $0x68] sm:$0xff] }
  0x56   : > { %v1173_v50 = vld [vmem:[%s6508_s3 + $0x8] sm:$0xff] }
  0x57   : > { %1059 = vmatpush.msra.mxu0 %v4348_v49  ;;  %1005 = vmatpush.msra.mxu3 %v4333_v52  ;;  %v1174_v49 = vld [vmem:[%s6508_s3 + $0x10] sm:$0xff]  ;;  %v1096_v52 = vld [vmem:[%s6507_s4 + $0x28] sm:$0xff] }
  0x59   : > { %1060 = vmatpush.msra.mxu0 %v4347_v51  ;;  %1006 = vmatpush.msra.mxu3 %v4332_v54  ;;  %v1095_v51 = vld [vmem:[%s6507_s4 + $0x20] sm:$0xff] }
  0x5a   : > { %v4389_v54 = vld [vmem:[%s6508_s3 + $0x60] sm:$0xff] }
  0x5b   : > { %1061 = vmatpush.msra.mxu0 %v4346_v53  ;;  %1007 = vmatpush.msra.mxu3 %v4331_v56  ;;  %v1097_v53 = vld [vmem:[%s6507_s4 + $0x30] sm:$0xff]  ;;  %v4388_v56 = vld [vmem:[%s6508_s3 + $0x58] sm:$0xff] }
  0x5d   : > { %1062 = vmatpush.msra.mxu0 %v4345_v55  ;;  %1008 = vmatpush.msra.mxu3 %v4330_v58  ;;  %v1172_v55 = vld [vmem:[%s6508_s3] sm:$0xff]  ;;  %v4387_v58 = vld [vmem:[%s6508_s3 + $0x50] sm:$0xff] }
  0x5f   : > { %1063 = vmatpush.msra.mxu0 %v4344_v57  ;;  %1009 = vmatpush.msra.mxu3 %v4329_v59  ;;  %v4402_v57 = vld [vmem:[%s6508_s3 + $0xb8] sm:$0xff]  ;;  %v4401_v59 = vld [vmem:[%s6508_s3 + $0xb0] sm:$0xff] }
  0x61   : > { %1010 = vmatpush.msra.mxu3 %v4328_v60  ;;  %v4386_v60 = vld [vmem:[%s6508_s3 + $0x48] sm:$0xff] }
  0x88   : > { %v749_v61 = vpop.permute.xlu0 %748 }
  0x9d   : > { %v772_v62 = vpop.f32.mrf.mxu0 }
  0x9e   : > { %v773_v63 = vadd.f32 %v772_v62, %v749_v61  ;;  %v4385_v62 = vld [vmem:[%s6508_s3 + $0x40] sm:$0xff] }
  0xa0   : > { %v795_v0 = vmax.f32 %v773_v63, 0.0  ;;  %v4399_v63 = vld [vmem:[%s6508_s3 + $0xa0] sm:$0xff] }
  0xa2   : > { %845 = vmatmul.f32.vlgmr.msra.gmra.mxu1 %v795_v0  ;;  %918 = vmatmul.f32.vlgmr.msrb.gmra.mxu0 %v795_v0 }
  0xa3   : > { %991 = vmatmul.f32.vlgmr.msra.gmra.mxu2 %v795_v0  ;;  %1068 = vmatpush.msra.mxu1 %v4375_v1  ;;  %v4411_v1 = vld [vmem:[%s6508_s3 + $0xf8] sm:$0xff] }
  0xa4   : > { %v792_v3 = vpop.f32.mrf.mxu3  ;;  %1224 = vmatpush.msrb.mxu0 %v1179_v39  ;;  %v4435_v39 = vld [vmem:[%s6508_s3 + $0x1a0] sm:$0xff] }
  0xa5   : > { %v793_v4 = vadd.f32 %v792_v3, %v749_v61  ;;  %1069 = vmatpush.msra.mxu1 %v4374_v2  ;;  %v4400_v61 = vld [vmem:[%s6508_s3 + $0xa8] sm:$0xff]  ;;  %v4397_v2 = vld [vmem:[%s6508_s3 + $0x90] sm:$0xff] }
  0xa6   : > { %1225 = vmatpush.msrb.mxu0 %v1178_v40  ;;  %v4410_v3 = vld [vmem:[%s6508_s3 + $0xf0] sm:$0xff]  ;;  %v4434_v40 = vld [vmem:[%s6508_s3 + $0x198] sm:$0xff] }
  0xa7   : > { %v796_v6 = vmax.f32 %v793_v4, 0.0  ;;  %1070 = vmatpush.msra.mxu1 %v4373_v5  ;;  %v4396_v4 = vld [vmem:[%s6508_s3 + $0x88] sm:$0xff] }
  0xa8   : > { %1226 = vmatpush.msrb.mxu0 %v1177_v41  ;;  %v4409_v5 = vld [vmem:[%s6508_s3 + $0xe8] sm:$0xff]  ;;  %v4456_v41 = vld [vmem:[%s6508_s3 + $0x238] sm:$0xff] }
  0xa9   : > { %865 = vmatmul.f32.vlgmr.msrb.gmra.mxu3 %v796_v6  ;;  %1071 = vmatpush.msra.mxu1 %v4372_v7  ;;  %v4408_v7 = vld [vmem:[%s6508_s3 + $0xe0] sm:$0xff] }
  0xaa   : > { %938 = vmatmul.f32.vlgmr.msrb.gmra.mxu1 %v796_v6  ;;  %1064 = vmatmul.f32.vlgmr.msra.gmra.mxu0 %v795_v0  ;;  %v4398_v0 = vld [vmem:[%s6508_s3 + $0x98] sm:$0xff] }
  0xab   : > { %1072 = vmatpush.msra.mxu1 %v4371_v8  ;;  %1227 = vmatpush.msrb.mxu0 %v1176_v44  ;;  %v4407_v8 = vld [vmem:[%s6508_s3 + $0xd8] sm:$0xff]  ;;  %v4433_v44 = vld [vmem:[%s6508_s3 + $0x190] sm:$0xff] }
  0xad   : > { %1073 = vmatpush.msra.mxu1 %v4370_v9  ;;  %1228 = vmatpush.msrb.mxu0 %v1175_v48  ;;  %v4420_v9 = vld [vmem:[%s6508_s3 + $0x138] sm:$0xff]  ;;  %v4454_v48 = vld [vmem:[%s6508_s3 + $0x228] sm:$0xff] }
  0xaf   : > { %1074 = vmatpush.msra.mxu1 %v4369_v10  ;;  %1229 = vmatpush.msrb.mxu0 %v1174_v49  ;;  %v4406_v10 = vld [vmem:[%s6508_s3 + $0xd0] sm:$0xff]  ;;  %v4431_v49 = vld [vmem:[%s6508_s3 + $0x180] sm:$0xff] }
  0xb1   : > { %1011 = vmatmul.f32.vlgmr.msra.gmra.mxu3 %v796_v6  ;;  %1075 = vmatpush.msra.mxu1 %v4368_v11  ;;  %v4419_v11 = vld [vmem:[%s6508_s3 + $0x130] sm:$0xff] }
  0xb2   : > { %1230 = vmatpush.msrb.mxu0 %v1173_v50  ;;  %v4453_v50 = vld [vmem:[%s6508_s3 + $0x220] sm:$0xff] }
  0xb3   : > { %1076 = vmatpush.msra.mxu1 %v4367_v12  ;;  %v4405_v12 = vld [vmem:[%s6508_s3 + $0xc8] sm:$0xff] }
  0xb4   : > { %1231 = vmatpush.msrb.mxu0 %v1172_v55  ;;  %v4449_v55 = vld [vmem:[%s6508_s3 + $0x200] sm:$0xff] }
  0xb5   : > { %1077 = vmatpush.msra.mxu1 %v4366_v13  ;;  %v4418_v13 = vld [vmem:[%s6508_s3 + $0x128] sm:$0xff] }
  0xb6   : > { %1322 = vmatpush.msra.mxu0 %v4420_v9 }
  0xb7   : > { %1078 = vmatpush.msra.mxu1 %v4365_v14  ;;  %v4404_v14 = vld [vmem:[%s6508_s3 + $0xc0] sm:$0xff] }
  0xb8   : > { %1323 = vmatpush.msra.mxu0 %v4419_v11 }
  0xb9   : > { %1079 = vmatpush.msra.mxu1 %v4364_v15  ;;  %v4417_v15 = vld [vmem:[%s6508_s3 + $0x120] sm:$0xff] }
  0xba   : > { %1324 = vmatpush.msra.mxu0 %v4418_v13 }
  0xbb   : > { %1080 = vmatpush.msra.mxu1 %v4363_v16  ;;  %v4416_v16 = vld [vmem:[%s6508_s3 + $0x118] sm:$0xff] }
  0xbc   : > { %1325 = vmatpush.msra.mxu0 %v4417_v15 }
  0xbd   : > { %1081 = vmatpush.msra.mxu1 %v4362_v17  ;;  %v4429_v17 = vld [vmem:[%s6508_s3 + $0x178] sm:$0xff] }
  0xbe   : > { %1326 = vmatpush.msra.mxu0 %v4416_v16 }
  0xbf   : > { %1082 = vmatpush.msra.mxu1 %v4361_v18  ;;  %v4415_v18 = vld [vmem:[%s6508_s3 + $0x110] sm:$0xff] }
  0xc0   : > { %1327 = vmatpush.msra.mxu0 %v4415_v18  ;;  %v1476_v18 = vld [vmem:[%s6509_s6 + $0x8] sm:$0xff] }
  0xc1   : > { %1083 = vmatpush.msra.mxu1 %v4360_v19  ;;  %v4428_v19 = vld [vmem:[%s6508_s3 + $0x170] sm:$0xff] }
  0xc2   : > { %1084 = vmatmul.f32.vlgmr.msra.gmra.mxu1 %v796_v6  ;;  %v4395_v6 = vld [vmem:[%s6508_s3 + $0x80] sm:$0xff] }
  0xc3   : > { %1256 = vmatpush.msrb.mxu1 %v4402_v57 }
  0xc5   : > { %1257 = vmatpush.msrb.mxu1 %v4401_v59 }
  0xc7   : > { %1258 = vmatpush.msrb.mxu1 %v4400_v61 }
  0xc9   : > { %1259 = vmatpush.msrb.mxu1 %v4399_v63 }
  0xcb   : > { %1260 = vmatpush.msrb.mxu1 %v4398_v0 }
  0xcd   : > { %1261 = vmatpush.msrb.mxu1 %v4397_v2 }
  0xcf   : > { %1262 = vmatpush.msrb.mxu1 %v4396_v4 }
  0xd1   : > { %1263 = vmatpush.msrb.mxu1 %v4395_v6 }
  0xd3   : > { %1355 = vmatpush.msra.mxu1 %v4429_v17  ;;  %v1475_v17 = vld [vmem:[%s6509_s6] sm:$0xff] }
  0xd5   : > { %1356 = vmatpush.msra.mxu1 %v4428_v19  ;;  %v1477_v19 = vld [vmem:[%s6509_s6 + $0x10] sm:$0xff] }
 0x11f   : > { %v846_v20 = vpop.f32.mrf.mxu1  ;;  %v919_v22 = vpop.f32.mrf.mxu0 }
 0x126   : > { %v992_v25 = vpop.f32.mrf.mxu2 }
 0x127   : > { %v939_v23 = vpop.f32.mrf.mxu1  ;;  %v1065_v27 = vpop.f32.mrf.mxu0 }
 0x128   : > { %v940_v29 = vadd.f32 %v939_v23, %v919_v22  ;;  %v4413_v22 = vld [vmem:[%s6508_s3 + $0x100] sm:$0xff] }
 0x129   : > { %v4426_v23 = vld [vmem:[%s6508_s3 + $0x160] sm:$0xff] }
 0x12c   : > { %v866_v21 = vpop.f32.mrf.mxu3 }
 0x12d   : > { %v867_v26 = vadd.f32 %v866_v21, %v846_v20  ;;  %v4414_v20 = vld [vmem:[%s6508_s3 + $0x108] sm:$0xff] }
 0x12e   : > { %v4427_v21 = vld [vmem:[%s6508_s3 + $0x168] sm:$0xff]  ;;  %1328 = vmatpush.msra.mxu0 %v4414_v20  ;;  %v1478_v20 = vld [vmem:[%s6509_s6 + $0x18] sm:$0xff] }
 0x12f   : > { %v1088_v32 = vmax.f32 %v867_v26, %v940_v29  ;;  %1357 = vmatpush.msra.mxu1 %v4427_v21  ;;  %v4424_v26 = vld [vmem:[%s6508_s3 + $0x150] sm:$0xff]  ;;  %v1479_v21 = vld [vmem:[%s6509_s6 + $0x20] sm:$0xff] }
 0x130   : > { %1329 = vmatpush.msra.mxu0 %v4413_v22  ;;  %v4446_v29 = vld [vmem:[%s6508_s3 + $0x1f0] sm:$0xff]  ;;  %v1556_v22 = vld [vmem:[%s6472_s9 + $0x8] sm:$0xff] }
 0x131   : > { %1358 = vmatpush.msra.mxu1 %v4426_v23  ;;  %v1480_v23 = vld [vmem:[%s6509_s6 + $0x28] sm:$0xff] }
 0x134   : > { %v1012_v24 = vpop.f32.mrf.mxu3 }
 0x135   : > { %v1013_v30 = vadd.f32 %v1012_v24, %v992_v25  ;;  %v4425_v25 = vld [vmem:[%s6508_s3 + $0x158] sm:$0xff] }
 0x136   : > { %1359 = vmatpush.msra.mxu1 %v4425_v25  ;;  %v1482_v25 = vld [vmem:[%s6509_s6 + $0x38] sm:$0xff] }
 0x138   : > { %1360 = vmatpush.msra.mxu1 %v4424_v26  ;;  %v1483_v26 = vld [vmem:[%s6509_s6 + $0x40] sm:$0xff] }
 0x13f   : > { %v1085_v28 = vpop.f32.mrf.mxu1 }
 0x140   : > { %v1086_v31 = vadd.f32 %v1085_v28, %v1065_v27  ;;  %v4447_v27 = vld [vmem:[%s6508_s3 + $0x1f8] sm:$0xff]  ;;  %v4423_v28 = vld [vmem:[%s6508_s3 + $0x148] sm:$0xff] }
 0x141   : > { %1361 = vmatpush.msra.mxu1 %v4423_v28  ;;  %v4468_v28 = vld [vmem:[%s6472_s9 + $0x18] sm:$0xff] }
 0x142   : > { %v1089_v33 = vmax.f32 %v1013_v30, %v1086_v31  ;;  %v4438_v30 = vld [vmem:[%s6508_s3 + $0x1b8] sm:$0xff]  ;;  %v4422_v31 = vld [vmem:[%s6508_s3 + $0x140] sm:$0xff] }
 0x143   : > { %1362 = vmatpush.msra.mxu1 %v4422_v31  ;;  %v4471_v31 = vld [vmem:[%s6472_s9 + $0x20] sm:$0xff] }
 0x144   : > { %v1090_v34 = vmax.f32 %v1088_v32, %v1089_v33  ;;  %v4445_v32 = vld [vmem:[%s6508_s3 + $0x1e8] sm:$0xff] }
 0x146   : > { %1143 = vmatpush.msrb.mxu2 %v1090_v34  ;;  %4779 = vmatpush.msrb.mxu3 %v1090_v34  ;;  %v4437_v34 = vld [vmem:[%s6508_s3 + $0x1b0] sm:$0xff] }
 0x147   : > { %4376 = vmatmul.msk.f32.vlgmr.msrb.gmra.mxu2 %vm1100_vm1, %v1091_v35  ;;  %4383 = vmatmul.msk.f32.vlgmr.msrb.gmra.mxu3 %vm1100_vm1, %v1098_v38  ;;  %v4444_v35 = vld [vmem:[%s6508_s3 + $0x1e0] sm:$0xff]  ;;  %v4442_v38 = vld [vmem:[%s6508_s3 + $0x1d0] sm:$0xff] }
 0x148   : > { %1201 = vmatpush.msra.mxu3 %v4392_v42  ;;  %v4441_v42 = vld [vmem:[%s6508_s3 + $0x1c8] sm:$0xff] }
 0x14a   : > { %1202 = vmatpush.msra.mxu3 %v4391_v43 }
 0x14c   : > { %1203 = vmatpush.msra.mxu3 %v4390_v45  ;;  %v4455_v45 = vld [vmem:[%s6508_s3 + $0x230] sm:$0xff] }
 0x14e   : > { %1204 = vmatpush.msra.mxu3 %v4389_v54  ;;  %v4450_v54 = vld [vmem:[%s6508_s3 + $0x208] sm:$0xff] }
 0x14f   : > { %4377 = vmatmul.msk.f32.gmra.mxu2 %vm1100_vm1, %v1092_v36  ;;  %4384 = vmatmul.msk.f32.gmra.mxu3 %vm1100_vm1, %v1099_v47  ;;  %v4443_v36 = vld [vmem:[%s6508_s3 + $0x1d8] sm:$0xff]  ;;  %v4432_v47 = vld [vmem:[%s6508_s3 + $0x188] sm:$0xff] }
 0x150   : > { %1205 = vmatpush.msra.mxu3 %v4388_v56 }
 0x152   : > { %1206 = vmatpush.msra.mxu3 %v4387_v58 }
 0x154   : > { %1207 = vmatpush.msra.mxu3 %v4386_v60 }
 0x156   : > { %1208 = vmatpush.msra.mxu3 %v4385_v62 }
 0x157   : > { %4378 = vmatmul.msk.f32.gmra.mxu2 %vm1100_vm1, %v1093_v37  ;;  %v4436_v37 = vld [vmem:[%s6508_s3 + $0x1a8] sm:$0xff] }
 0x158   : > { %1289 = vmatpush.msrb.mxu3 %v4411_v1 }
 0x15a   : > { %1290 = vmatpush.msrb.mxu3 %v4410_v3 }
 0x15c   : > { %1291 = vmatpush.msrb.mxu3 %v4409_v5 }
 0x15e   : > { %1292 = vmatpush.msrb.mxu3 %v4408_v7 }
 0x15f   : > { %4379 = vmatmul.msk.f32.gmra.mxu2 %vm1100_vm1, %v1094_v46  ;;  %v4440_v46 = vld [vmem:[%s6508_s3 + $0x1c0] sm:$0xff] }
 0x160   : > { %1293 = vmatpush.msrb.mxu3 %v4407_v8 }
 0x162   : > { %1294 = vmatpush.msrb.mxu3 %v4406_v10 }
 0x164   : > { %1295 = vmatpush.msrb.mxu3 %v4405_v12 }
 0x166   : > { %1296 = vmatpush.msrb.mxu3 %v4404_v14  ;;  %v1471_v14 = vpop.permute.xlu0 %1470 }
 0x167   : > { %4380 = vmatmul.msk.f32.gmra.mxu2 %vm1100_vm1, %v1095_v51  ;;  %v4452_v51 = vld [vmem:[%s6508_s3 + $0x218] sm:$0xff] }
 0x16f   : > { %4381 = vmatmul.msk.f32.gmra.mxu2 %vm1100_vm1, %v1096_v52 }
 0x177   : > { %4382 = vmatmul.msk.f32.gmra.mxu2 %vm1100_vm1, %v1097_v53  ;;  %v4451_v53 = vld [vmem:[%s6508_s3 + $0x210] sm:$0xff] }
 0x1ca   : > { %v1145_v24 = vpop.f32.mrf.mxu2  ;;  %v1166_v57 = vpop.f32.mrf.mxu3 }
 0x1cb   : > { %4394 = vmatmul.msk.f32.vlgmr.msrb.gmra.mxu0 %vm1189_vm2, %v1145_v24  ;;  %v1481_v24 = vld [vmem:[%s6509_s6 + $0x30] sm:$0xff] }
 0x1cc   : > { %1421 = vmatpush.msrb.mxu0 %v4447_v27  ;;  %v1555_v27 = vld [vmem:[%s6472_s9] sm:$0xff] }
 0x1ce   : > { %1422 = vmatpush.msrb.mxu0 %v4446_v29  ;;  %v4467_v29 = vld [vmem:[%s6472_s9 + $0x10] sm:$0xff] }
 0x1d0   : > { %1423 = vmatpush.msrb.mxu0 %v4445_v32  ;;  %v4475_v32 = vld [vmem:[%s6472_s9 + $0x38] sm:$0xff] }
 0x1d2   : > { %v1148_v33 = vpop.f32.mrf.mxu2  ;;  %1424 = vmatpush.msrb.mxu0 %v4444_v35  ;;  %v1169_v59 = vpop.f32.mrf.mxu3 }
 0x1d3   : > { %4393 = vmatmul.msk.f32.vlgmr.msra.gmra.mxu3 %vm1189_vm2, %v1148_v33  ;;  %v4474_v33 = vld [vmem:[%s6472_s9 + $0x30] sm:$0xff] }
 0x1d4   : > { %1388 = vmatpush.msra.mxu3 %v4438_v30  ;;  %1425 = vmatpush.msrb.mxu0 %v4443_v36  ;;  %v4472_v30 = vld [vmem:[%s6472_s9 + $0x28] sm:$0xff]  ;;  %v4481_v36 = vld [vmem:[%s6472_s9 + $0x58] sm:$0xff] }
 0x1d6   : > { %1389 = vmatpush.msra.mxu3 %v4437_v34  ;;  %1426 = vmatpush.msrb.mxu0 %v4442_v38  ;;  %v4484_v34 = vld [vmem:[%s6472_s9 + $0x68] sm:$0xff]  ;;  %v4480_v38 = vld [vmem:[%s6472_s9 + $0x50] sm:$0xff] }
 0x1d7   : > { %1735 = vmatpush.msra.mxu2 %v4484_v34 }
 0x1d8   : > { %1390 = vmatpush.msra.mxu3 %v4436_v37  ;;  %1427 = vmatpush.msrb.mxu0 %v4441_v42  ;;  %v4478_v37 = vld [vmem:[%s6472_s9 + $0x48] sm:$0xff] }
 0x1da   : > { %v1151_v43 = vpop.f32.mrf.mxu2  ;;  %1391 = vmatpush.msra.mxu3 %v4435_v39  ;;  %1428 = vmatpush.msrb.mxu0 %v4440_v46  ;;  %v4490_v46 = vld [vmem:[%s6472_s9 + $0x88] sm:$0xff] }
 0x1db   : > { %4403 = vmatmul.msk.f32.vlgmr.msrb.gmra.mxu1 %vm1189_vm2, %v1151_v43  ;;  %v4487_v43 = vld [vmem:[%s6472_s9 + $0x78] sm:$0xff] }
 0x1dc   : > { %1392 = vmatpush.msra.mxu3 %v4434_v40  ;;  %1454 = vmatpush.msrb.mxu1 %v4456_v41  ;;  %v4477_v40 = vld [vmem:[%s6472_s9 + $0x40] sm:$0xff] }
 0x1dd   : > { %v4483_v41 = vld [vmem:[%s6472_s9 + $0x60] sm:$0xff] }
 0x1de   : > { %1393 = vmatpush.msra.mxu3 %v4433_v44  ;;  %1455 = vmatpush.msrb.mxu1 %v4455_v45  ;;  %v4486_v44 = vld [vmem:[%s6472_s9 + $0x70] sm:$0xff] }
 0x1df   : > { %1736 = vmatpush.msra.mxu2 %v4483_v41  ;;  %v4525_v41 = vld [vmem:[%s6475_s12 + $0x48] sm:$0xff] }
 0x1e0   : > { %1394 = vmatpush.msra.mxu3 %v4432_v47  ;;  %1456 = vmatpush.msrb.mxu1 %v4454_v48  ;;  %v4489_v47 = vld [vmem:[%s6472_s9 + $0x80] sm:$0xff] }
 0x1e2   : > { %v1154_v52 = vpop.f32.mrf.mxu2  ;;  %1395 = vmatpush.msra.mxu3 %v4431_v49  ;;  %1457 = vmatpush.msrb.mxu1 %v4453_v50  ;;  %v1796_v49 = vld [vmem:[%s6510_s0] sm:$0xff]  ;;  %v2249_v50 = vld [vmem:[%s6474_s11 + $0x8] sm:$0xff] }
 0x1e3   : > { %4412 = vmatmul.msk.f32.vlgmr.msrb.gmra.mxu3 %vm1189_vm2, %v1154_v52  ;;  %1799 = vperm.xlu1 %4794, %v1796_v49  }
 0x1e4   : > { %1458 = vmatpush.msrb.mxu1 %v4452_v51 }
 0x1e6   : > { %1459 = vmatpush.msrb.mxu1 %v4451_v53 }
 0x1e8   : > { %1460 = vmatpush.msrb.mxu1 %v4450_v54 }
 0x1ea   : > { %v1157_v56 = vpop.f32.mrf.mxu2  ;;  %1461 = vmatpush.msrb.mxu1 %v4449_v55 }
 0x1eb   : > { %4421 = vmatmul.msk.f32.vlgmr.msra.gmra.mxu0 %vm1189_vm2, %v1157_v56  ;;  %2257 = vperm.xlu1 %4794, %v2249_v50   ;;  %v4532_v50 = vld [vmem:[%s6475_s12 + $0x60] sm:$0xff] }
 0x1ec   : > { %1578 = vmatpush.msra.mxu0 %v4468_v28  ;;  %v1818_v28 = vld [vmem:[%s6473_s10 + $0x70] sm:$0xff] }
 0x1ee   : > { %1579 = vmatpush.msra.mxu0 %v4467_v29  ;;  %v4510_v29 = vld [vmem:[%s6475_s12 + $0x10] sm:$0xff] }
 0x1f2   : > { %v1160_v58 = vpop.f32.mrf.mxu2 }
 0x1f3   : > { %4430 = vmatmul.msk.f32.vlgmr.msra.gmra.mxu1 %vm1189_vm2, %v1160_v58  ;;  %4448 = vmatmul.msk.f32.vlgmr.msrb.gmra.mxu0 %vm1189_vm2, %v1166_v57 }
 0x1f4   : > { %1601 = vmatpush.msra.mxu1 %v1556_v22  ;;  %1627 = vmatpush.msrb.mxu0 %v4472_v30  ;;  %v1815_v22 = vld [vmem:[%s6473_s10 + $0x58] sm:$0xff] }
 0x1f5   : > { %v1819_v30 = vld [vmem:[%s6473_s10 + $0x78] sm:$0xff] }
 0x1f6   : > { %1602 = vmatpush.msra.mxu1 %v1555_v27  ;;  %1628 = vmatpush.msrb.mxu0 %v4471_v31  ;;  %v4511_v27 = vld [vmem:[%s6475_s12 + $0x18] sm:$0xff]  ;;  %v4517_v31 = vld [vmem:[%s6475_s12 + $0x28] sm:$0xff] }
 0x1fa   : > { %v1163_v60 = vpop.f32.mrf.mxu2 }
 0x1fb   : > { %4439 = vmatmul.msk.f32.vlgmr.msra.gmra.mxu3 %vm1189_vm2, %v1163_v60  ;;  %4457 = vmatmul.msk.f32.vlgmr.msrb.gmra.mxu1 %vm1189_vm2, %v1169_v59 }
 0x1fc   : > { %1654 = vmatpush.msrb.mxu1 %v4475_v32  ;;  %v1820_v32 = vld [vmem:[%s6473_s10 + $0x80] sm:$0xff] }
 0x1fe   : > { %1655 = vmatpush.msrb.mxu1 %v4474_v33  ;;  %v4516_v33 = vld [vmem:[%s6475_s12 + $0x20] sm:$0xff] }
 0x248   : > { %v1233_v62 = vpop.f32.mrf.mxu0 }
 0x256   : > { %v1210_v61 = vpop.f32.mrf.mxu3 }
 0x257   : > { %v1234_v0 = vadd.f32 %v1233_v62, %v1210_v61 }
 0x258   : > { %v1265_v63 = vpop.f32.mrf.mxu1 }
 0x259   : > { %v1268_v2 = vadd.f32 %v1265_v63, %v1234_v0 }
 0x266   : > { %v1298_v1 = vpop.f32.mrf.mxu3 }
 0x267   : > { %v1301_v3 = vadd.f32 %v1298_v1, %v1268_v2 }
 0x268   : > { %v1331_v4 = vpop.f32.mrf.mxu0 }
 0x269   : > { %v1334_v6 = vadd.f32 %v1331_v4, %v1301_v3 }
 0x270   : > { %v1364_v5 = vpop.f32.mrf.mxu1  ;;  %v1430_v10 = vpop.f32.mrf.mxu0 }
 0x271   : > { %v1367_v7 = vadd.f32 %v1364_v5, %v1334_v6 }
 0x278   : > { %v1463_v11 = vpop.f32.mrf.mxu1 }
 0x27e   : > { %v1397_v8 = vpop.f32.mrf.mxu3 }
 0x27f   : > { %v1400_v9 = vadd.f32 %v1397_v8, %v1367_v7  ;;  %v1800_v8 = vpop.permute.xlu1 %1799 }
 0x281   : > { %v1433_v12 = vadd.f32 %v1430_v10, %v1400_v9 }
 0x283   : > { %v1466_v13 = vadd.f32 %v1463_v11, %v1433_v12  ;;  %v1804_v11 = vld [vmem:[%s6473_s10] sm:$0xff]  ;;  %v1805_v12 = vld [vmem:[%s6473_s10 + $0x8] sm:$0xff] }
 0x285   : > { %v1473_v15 = vadd.f32 %v1471_v14, %v1466_v13  ;;  %v1806_v13 = vld [vmem:[%s6473_s10 + $0x10] sm:$0xff]  ;;  %v1807_v14 = vld [vmem:[%s6473_s10 + $0x18] sm:$0xff] }
 0x287   : > { %v1474_v16 = vmax.f32 %v1473_v15, 0.0  ;;  %v1808_v15 = vld [vmem:[%s6473_s10 + $0x20] sm:$0xff] }
 0x289   : > { %1526 = vmatpush.msrb.mxu3 %v1474_v16  ;;  %v1809_v16 = vld [vmem:[%s6473_s10 + $0x28] sm:$0xff] }
 0x28a   : > { %4458 = vmatmul.msk.f32.vlgmr.msrb.gmra.mxu3 %vm1100_vm1, %v1475_v17  ;;  %v1810_v17 = vld [vmem:[%s6473_s10 + $0x30] sm:$0xff] }
 0x292   : > { %4459 = vmatmul.msk.f32.gmra.mxu3 %vm1100_vm1, %v1476_v18  ;;  %v1811_v18 = vld [vmem:[%s6473_s10 + $0x38] sm:$0xff] }
 0x29a   : > { %4460 = vmatmul.msk.f32.gmra.mxu3 %vm1100_vm1, %v1477_v19  ;;  %v1812_v19 = vld [vmem:[%s6473_s10 + $0x40] sm:$0xff] }
 0x2a2   : > { %4461 = vmatmul.msk.f32.gmra.mxu3 %vm1100_vm1, %v1478_v20  ;;  %v1813_v20 = vld [vmem:[%s6473_s10 + $0x48] sm:$0xff] }
 0x2aa   : > { %4462 = vmatmul.msk.f32.gmra.mxu3 %vm1100_vm1, %v1479_v21  ;;  %v1814_v21 = vld [vmem:[%s6473_s10 + $0x50] sm:$0xff] }
 0x2b2   : > { %4463 = vmatmul.msk.f32.gmra.mxu3 %vm1100_vm1, %v1480_v23  ;;  %v1816_v23 = vld [vmem:[%s6473_s10 + $0x60] sm:$0xff] }
 0x2ba   : > { %4464 = vmatmul.msk.f32.gmra.mxu3 %vm1100_vm1, %v1481_v24  ;;  %v1948_v24 = vld [vmem:[%s6475_s12 + $0x8] sm:$0xff] }
 0x2c2   : > { %4465 = vmatmul.msk.f32.gmra.mxu3 %vm1100_vm1, %v1482_v25  ;;  %v1947_v25 = vld [vmem:[%s6475_s12] sm:$0xff] }
 0x2ca   : > { %4466 = vmatmul.msk.f32.gmra.mxu3 %vm1100_vm1, %v1483_v26  ;;  %v1817_v26 = vld [vmem:[%s6473_s10 + $0x68] sm:$0xff] }
 0x30d   : > { %v1528_v35 = vpop.f32.mrf.mxu3 }
 0x30e   : > { %4470 = vmatmul.msk.f32.vlgmr.msra.gmra.mxu1 %vm1560_vm3, %v1528_v35  ;;  %v1821_v35 = vld [vmem:[%s6473_s10 + $0x88] sm:$0xff] }
 0x30f   : > { %1708 = vmatpush.msra.mxu1 %v4481_v36 }
 0x311   : > { %1709 = vmatpush.msra.mxu1 %v4480_v38  ;;  %v4520_v38 = vld [vmem:[%s6475_s12 + $0x30] sm:$0xff] }
 0x315   : > { %v1531_v39 = vpop.f32.mrf.mxu3 }
 0x316   : > { %4469 = vmatmul.msk.f32.vlgmr.msra.gmra.mxu0 %vm1560_vm3, %v1531_v39 }
 0x317   : > { %1681 = vmatpush.msra.mxu0 %v4478_v37  ;;  %v4521_v37 = vld [vmem:[%s6475_s12 + $0x38] sm:$0xff] }
 0x319   : > { %1682 = vmatpush.msra.mxu0 %v4477_v40 }
 0x31d   : > { %v1534_v42 = vpop.f32.mrf.mxu3 }
 0x31e   : > { %4473 = vmatmul.msk.f32.vlgmr.msrb.gmra.mxu0 %vm1560_vm3, %v1534_v42  ;;  %v4524_v42 = vld [vmem:[%s6475_s12 + $0x40] sm:$0xff] }
 0x31f   : > { %1762 = vmatpush.msrb.mxu0 %v4487_v43 }
 0x321   : > { %1763 = vmatpush.msrb.mxu0 %v4486_v44 }
 0x325   : > { %v1537_v45 = vpop.f32.mrf.mxu3 }
 0x326   : > { %4476 = vmatmul.msk.f32.vlgmr.msrb.gmra.mxu1 %vm1560_vm3, %v1537_v45  ;;  %v4533_v45 = vld [vmem:[%s6475_s12 + $0x68] sm:$0xff] }
 0x327   : > { %1789 = vmatpush.msrb.mxu1 %v4490_v46  ;;  %2169 = vmatpush.msra.mxu3 %v4533_v45  ;;  %v4529_v46 = vld [vmem:[%s6475_s12 + $0x58] sm:$0xff]  ;;  %v2266_v45 = vld [vmem:[%s6476_s13 + $0x10] sm:$0xff] }
 0x329   : > { %1790 = vmatpush.msrb.mxu1 %v4489_v47  ;;  %v4528_v47 = vld [vmem:[%s6475_s12 + $0x50] sm:$0xff]  ;;  %2170 = vmatpush.msra.mxu3 %v4532_v50  ;;  %v2271_v50 = vld [vmem:[%s6476_s13 + $0x38] sm:$0xff] }
 0x32d   : > { %v1540_v48 = vpop.f32.mrf.mxu3 }
 0x32e   : > { %4479 = vmatmul.msk.f32.vlgmr.msra.gmra.mxu0 %vm1560_vm3, %v1540_v48 }
 0x32f   : > { %1972 = vmatpush.msra.mxu0 %v4511_v27 }
 0x331   : > { %1973 = vmatpush.msra.mxu0 %v4510_v29 }
 0x335   : > { %v1543_v51 = vpop.f32.mrf.mxu3 }
 0x336   : > { %4482 = vmatmul.msk.f32.vlgmr.msra.gmra.mxu1 %vm1560_vm3, %v1543_v51 }
 0x337   : > { %2001 = vmatpush.msra.mxu1 %v1948_v24 }
 0x339   : > { %2002 = vmatpush.msra.mxu1 %v1947_v25 }
 0x33d   : > { %v1546_v52 = vpop.f32.mrf.mxu3 }
 0x33e   : > { %4485 = vmatmul.msk.f32.vlgmr.msra.gmra.mxu2 %vm1560_vm3, %v1546_v52 }
 0x345   : > { %v1549_v53 = vpop.f32.mrf.mxu3 }
 0x346   : > { %4488 = vmatmul.msk.f32.vlgmr.msrb.gmra.mxu0 %vm1560_vm3, %v1549_v53  ;;  %v4537_v53 = vld [vmem:[%s6475_s12 + $0x78] sm:$0xff] }
 0x347   : > { %2033 = vmatpush.msrb.mxu0 %v4517_v31 }
 0x349   : > { %2034 = vmatpush.msrb.mxu0 %v4516_v33 }
 0x34d   : > { %v1552_v54 = vpop.f32.mrf.mxu3 }
 0x34e   : > { %4491 = vmatmul.msk.f32.vlgmr.msrb.gmra.mxu1 %vm1560_vm3, %v1552_v54  ;;  %v4536_v54 = vld [vmem:[%s6475_s12 + $0x70] sm:$0xff] }
 0x34f   : > { %2067 = vmatpush.msrb.mxu1 %v4521_v37 }
 0x351   : > { %2068 = vmatpush.msrb.mxu1 %v4520_v38  ;;  %v2258_v38 = vpop.permute.xlu1 %2257 }
 0x38b   : > { %v1604_v56 = vpop.f32.mrf.mxu1 }
 0x393   : > { %v1581_v55 = vpop.f32.mrf.mxu0 }
 0x394   : > { %v1605_v59 = vadd.f32 %v1604_v56, %v1581_v55 }
 0x39b   : > { %v1630_v57 = vpop.f32.mrf.mxu0 }
 0x39c   : > { %v1633_v60 = vadd.f32 %v1630_v57, %v1605_v59  ;;  %v4541_v57 = vld [vmem:[%s6475_s12 + $0x88] sm:$0xff] }
 0x3a3   : > { %v1657_v58 = vpop.f32.mrf.mxu1 }
 0x3a4   : > { %v1660_v62 = vadd.f32 %v1657_v58, %v1633_v60  ;;  %v4540_v58 = vld [vmem:[%s6475_s12 + $0x80] sm:$0xff] }
 0x3ab   : > { %v1684_v61 = vpop.f32.mrf.mxu0 }
 0x3ac   : > { %v1687_v0 = vadd.f32 %v1684_v61, %v1660_v62 }
 0x3b3   : > { %v1711_v63 = vpop.f32.mrf.mxu1 }
 0x3b4   : > { %v1714_v2 = vadd.f32 %v1711_v63, %v1687_v0  ;;  %v2248_v63 = vld [vmem:[%s6474_s11] sm:$0xff] }
 0x3b5   : > { %2252 = vperm.xlu2 %4795, %v2248_v63  }
 0x3c1   : > { %v1738_v1 = vpop.f32.mrf.mxu2 }
 0x3c2   : > { %v1741_v3 = vadd.f32 %v1738_v1, %v1714_v2  ;;  %v2729_v2 = vld [vmem:[%s6477_s14 + $0x8] sm:$0xff] }
 0x3c3   : > { %v1765_v4 = vpop.f32.mrf.mxu0  ;;  %2737 = vperm.xlu2 %4795, %v2729_v2   ;;  %v4573_v2 = vld [vmem:[%s6478_s15 + $0xc] sm:$0xf] }
 0x3c4   : > { %v1768_v5 = vadd.f32 %v1765_v4, %v1741_v3 }
 0x3cb   : > { %v1792_v6 = vpop.f32.mrf.mxu1 }
 0x3cc   : > { %v1795_v7 = vadd.f32 %v1792_v6, %v1768_v5 }
 0x3ce   : > { %v1802_v9 = vadd.f32 %v1800_v8, %v1795_v7 }
 0x3d0   : > { %v1803_v10 = vmax.f32 %v1802_v9, 0.0 }
 0x3d2   : > { %1891 = vmatpush.msrb.mxu2 %v1803_v10 }
 0x3d3   : > { %4492 = vmatmul.msk.f32.vlgmr.msrb.gmra.mxu2 %vm1100_vm1, %v1804_v11 }
 0x3db   : > { %4493 = vmatmul.msk.f32.gmra.mxu2 %vm1100_vm1, %v1805_v12 }
 0x3e3   : > { %4494 = vmatmul.msk.f32.gmra.mxu2 %vm1100_vm1, %v1806_v13 }
 0x3eb   : > { %4495 = vmatmul.msk.f32.gmra.mxu2 %vm1100_vm1, %v1807_v14 }
 0x3f3   : > { %4496 = vmatmul.msk.f32.gmra.mxu2 %vm1100_vm1, %v1808_v15 }
 0x3fb   : > { %4497 = vmatmul.msk.f32.gmra.mxu2 %vm1100_vm1, %v1809_v16 }
 0x403   : > { %4498 = vmatmul.msk.f32.gmra.mxu2 %vm1100_vm1, %v1810_v17 }
 0x40b   : > { %4499 = vmatmul.msk.f32.gmra.mxu2 %vm1100_vm1, %v1811_v18 }
 0x413   : > { %4500 = vmatmul.msk.f32.gmra.mxu2 %vm1100_vm1, %v1812_v19 }
 0x41b   : > { %4501 = vmatmul.msk.f32.gmra.mxu2 %vm1100_vm1, %v1813_v20 }
 0x423   : > { %4502 = vmatmul.msk.f32.gmra.mxu2 %vm1100_vm1, %v1814_v21 }
 0x42b   : > { %4503 = vmatmul.msk.f32.gmra.mxu2 %vm1100_vm1, %v1815_v22 }
 0x433   : > { %4504 = vmatmul.msk.f32.gmra.mxu2 %vm1100_vm1, %v1816_v23 }
 0x43b   : > { %4505 = vmatmul.msk.f32.gmra.mxu2 %vm1100_vm1, %v1817_v26 }
 0x443   : > { %4506 = vmatmul.msk.f32.gmra.mxu2 %vm1100_vm1, %v1818_v28 }
 0x44b   : > { %4507 = vmatmul.msk.f32.gmra.mxu2 %vm1100_vm1, %v1819_v30 }
 0x453   : > { %4508 = vmatmul.msk.f32.gmra.mxu2 %vm1100_vm1, %v1820_v32 }
 0x456   : > { %v1893_v34 = vpop.f32.mrf.mxu2 }
 0x457   : > { %4514 = vmatmul.msk.f32.vlgmr.msra.gmra.mxu1 %vm1560_vm3, %v1893_v34 }
 0x458   : > { %2135 = vmatpush.msra.mxu1 %v4529_v46  ;;  %v2267_v46 = vld [vmem:[%s6476_s13 + $0x18] sm:$0xff] }
 0x45a   : > { %2136 = vmatpush.msra.mxu1 %v4528_v47  ;;  %v2268_v47 = vld [vmem:[%s6476_s13 + $0x20] sm:$0xff] }
 0x45b   : > { %4509 = vmatmul.msk.f32.gmra.mxu2 %vm1100_vm1, %v1821_v35  ;;  %v2253_v35 = vpop.permute.xlu2 %2252 }
 0x45e   : > { %v1896_v36 = vpop.f32.mrf.mxu2 }
 0x45f   : > { %4515 = vmatmul.msk.f32.gmra.mxu1 %vm1560_vm3, %v1896_v36 }
 0x466   : > { %v1899_v39 = vpop.f32.mrf.mxu2 }
 0x467   : > { %4512 = vmatmul.msk.f32.vlgmr.msra.gmra.mxu0 %vm1560_vm3, %v1899_v39 }
 0x468   : > { %2101 = vmatpush.msra.mxu0 %v4525_v41 }
 0x46a   : > { %2102 = vmatpush.msra.mxu0 %v4524_v42 }
 0x46e   : > { %v1902_v40 = vpop.f32.mrf.mxu2 }
 0x46f   : > { %4513 = vmatmul.msk.f32.gmra.mxu0 %vm1560_vm3, %v1902_v40 }
 0x476   : > { %v1905_v43 = vpop.f32.mrf.mxu2 }
 0x477   : > { %4518 = vmatmul.msk.f32.vlgmr.msrb.gmra.mxu0 %vm1560_vm3, %v1905_v43  ;;  %v2264_v43 = vld [vmem:[%s6476_s13] sm:$0xff] }
 0x478   : > { %2203 = vmatpush.msrb.mxu0 %v4537_v53  ;;  %v2274_v53 = vld [vmem:[%s6476_s13 + $0x50] sm:$0xff] }
 0x47a   : > { %2204 = vmatpush.msrb.mxu0 %v4536_v54  ;;  %v2275_v54 = vld [vmem:[%s6476_s13 + $0x58] sm:$0xff] }
 0x47e   : > { %v1908_v44 = vpop.f32.mrf.mxu2 }
 0x47f   : > { %4519 = vmatmul.msk.f32.gmra.mxu0 %vm1560_vm3, %v1908_v44  ;;  %v2265_v44 = vld [vmem:[%s6476_s13 + $0x8] sm:$0xff] }
 0x486   : > { %v1911_v48 = vpop.f32.mrf.mxu2 }
 0x487   : > { %4522 = vmatmul.msk.f32.vlgmr.msrb.gmra.mxu1 %vm1560_vm3, %v1911_v48  ;;  %v2269_v48 = vld [vmem:[%s6476_s13 + $0x28] sm:$0xff] }
 0x488   : > { %2237 = vmatpush.msrb.mxu1 %v4541_v57  ;;  %v2277_v57 = vld [vmem:[%s6476_s13 + $0x68] sm:$0xff] }
 0x48a   : > { %2238 = vmatpush.msrb.mxu1 %v4540_v58  ;;  %v2278_v58 = vld [vmem:[%s6476_s13 + $0x70] sm:$0xff] }
 0x48e   : > { %v1914_v49 = vpop.f32.mrf.mxu2 }
 0x48f   : > { %4523 = vmatmul.msk.f32.gmra.mxu1 %vm1560_vm3, %v1914_v49  ;;  %v2270_v49 = vld [vmem:[%s6476_s13 + $0x30] sm:$0xff] }
 0x496   : > { %v1917_v51 = vpop.f32.mrf.mxu2 }
 0x497   : > { %4526 = vmatmul.msk.f32.vlgmr.msra.gmra.mxu0 %vm1560_vm3, %v1917_v51  ;;  %v2272_v51 = vld [vmem:[%s6476_s13 + $0x40] sm:$0xff] }
 0x49e   : > { %v1920_v52 = vpop.f32.mrf.mxu2 }
 0x49f   : > { %4527 = vmatmul.msk.f32.gmra.mxu0 %vm1560_vm3, %v1920_v52  ;;  %v2273_v52 = vld [vmem:[%s6476_s13 + $0x48] sm:$0xff] }
 0x4a6   : > { %v1923_v55 = vpop.f32.mrf.mxu2 }
 0x4a7   : > { %4530 = vmatmul.msk.f32.vlgmr.msra.gmra.mxu1 %vm1560_vm3, %v1923_v55  ;;  %v2276_v55 = vld [vmem:[%s6476_s13 + $0x60] sm:$0xff] }
 0x4ae   : > { %v1926_v56 = vpop.f32.mrf.mxu2 }
 0x4af   : > { %4531 = vmatmul.msk.f32.gmra.mxu1 %vm1560_vm3, %v1926_v56  ;;  %v2407_v56 = vld [vmem:[%s6478_s15] sm:$0xf] }
 0x4b0   : > { %4566 = vmatpush.msk.msra.mxu1 %vm2417_vm4, %v2407_v56 }
 0x4b6   : > { %v1929_v59 = vpop.f32.mrf.mxu2 }
 0x4b7   : > { %4534 = vmatmul.msk.f32.vlgmr.msra.gmra.mxu3 %vm1560_vm3, %v1929_v59  ;;  %v4562_v59 = vld [vmem:[%s6478_s15 + $0x4] sm:$0xf] }
 0x4b8   : > { %4563 = vmatpush.msk.msra.mxu0 %vm2417_vm4, %v4562_v59  ;;  %v2738_v59 = vpop.permute.xlu2 %2737 }
 0x4be   : > { %v1932_v60 = vpop.f32.mrf.mxu2 }
 0x4bf   : > { %4535 = vmatmul.msk.f32.gmra.mxu3 %vm1560_vm3, %v1932_v60  ;;  %v2279_v60 = vld [vmem:[%s6476_s13 + $0x78] sm:$0xff] }
 0x4c6   : > { %v1935_v61 = vpop.f32.mrf.mxu2 }
 0x4c7   : > { %4538 = vmatmul.msk.f32.vlgmr.msrb.gmra.mxu0 %vm1560_vm3, %v1935_v61  ;;  %v2280_v61 = vld [vmem:[%s6476_s13 + $0x80] sm:$0xff] }
 0x4ce   : > { %v1938_v62 = vpop.f32.mrf.mxu2 }
 0x4cf   : > { %4539 = vmatmul.msk.f32.gmra.mxu0 %vm1560_vm3, %v1938_v62  ;;  %v4569_v62 = vld [vmem:[%s6478_s15 + $0x8] sm:$0xf] }
 0x4d0   : > { %4570 = vmatpush.msk.msrb.mxu0 %vm2417_vm4, %v4569_v62 }
 0x4d4   : > { %v2004_v4 = vpop.f32.mrf.mxu1 }
 0x4d6   : > { %v1941_v0 = vpop.f32.mrf.mxu2 }
 0x4d7   : > { %4542 = vmatmul.msk.f32.vlgmr.msrb.gmra.mxu1 %vm1560_vm3, %v1941_v0  ;;  %v2281_v0 = vld [vmem:[%s6476_s13 + $0x88] sm:$0xff] }
 0x4d8   : > { %4574 = vmatpush.msk.msrb.mxu1 %vm2417_vm4, %v4573_v2  ;;  %v2746_v2 = vld [vmem:[%s6479_s16 + $0x10] sm:$0xff] }
 0x4dc   : > { %v2007_v6 = vpop.f32.mrf.mxu1 }
 0x4de   : > { %v1944_v1 = vpop.f32.mrf.mxu2 }
 0x4df   : > { %4543 = vmatmul.msk.f32.gmra.mxu1 %vm1560_vm3, %v1944_v1 }
 0x4e4   : > { %v1975_v3 = vpop.f32.mrf.mxu0 }
 0x4e5   : > { %v2005_v16 = vadd.f32 %v2004_v4, %v1975_v3 }
 0x4ec   : > { %v1978_v5 = vpop.f32.mrf.mxu0 }
 0x4ed   : > { %v2008_v18 = vadd.f32 %v2007_v6, %v1978_v5  ;;  %v4577_v5 = vld [vmem:[%s6478_s15 + $0x10] sm:$0xf] }
 0x4f4   : > { %v2036_v7 = vpop.f32.mrf.mxu0 }
 0x4f5   : > { %v2042_v19 = vadd.f32 %v2036_v7, %v2005_v16 }
 0x4fc   : > { %v2039_v9 = vpop.f32.mrf.mxu0 }
 0x4fd   : > { %v2043_v20 = vadd.f32 %v2039_v9, %v2008_v18 }
 0x504   : > { %v2070_v8 = vpop.f32.mrf.mxu1 }
 0x505   : > { %v2076_v21 = vadd.f32 %v2070_v8, %v2042_v19  ;;  %v4581_v8 = vld [vmem:[%s6478_s15 + $0x14] sm:$0xf] }
 0x50c   : > { %v2073_v10 = vpop.f32.mrf.mxu1 }
 0x50d   : > { %v2077_v22 = vadd.f32 %v2073_v10, %v2043_v20 }
 0x514   : > { %v2104_v11 = vpop.f32.mrf.mxu0 }
 0x515   : > { %v2110_v23 = vadd.f32 %v2104_v11, %v2076_v21  ;;  %v4585_v11 = vld [vmem:[%s6478_s15 + $0x18] sm:$0xf] }
 0x51c   : > { %v2107_v13 = vpop.f32.mrf.mxu0 }
 0x51d   : > { %v2111_v25 = vadd.f32 %v2107_v13, %v2077_v22 }
 0x524   : > { %v2138_v12 = vpop.f32.mrf.mxu1 }
 0x525   : > { %v2144_v26 = vadd.f32 %v2138_v12, %v2110_v23 }
 0x52c   : > { %v2141_v14 = vpop.f32.mrf.mxu1 }
 0x52d   : > { %v2145_v28 = vadd.f32 %v2141_v14, %v2111_v25  ;;  %v4589_v14 = vld [vmem:[%s6478_s15 + $0x1c] sm:$0xf] }
 0x53a   : > { %v2172_v15 = vpop.f32.mrf.mxu3 }
 0x53b   : > { %v2178_v29 = vadd.f32 %v2172_v15, %v2144_v26 }
 0x542   : > { %v2175_v27 = vpop.f32.mrf.mxu3 }
 0x543   : > { %v2179_v31 = vadd.f32 %v2175_v27, %v2145_v28 }
 0x544   : > { %v2206_v17 = vpop.f32.mrf.mxu0 }
 0x545   : > { %v2212_v32 = vadd.f32 %v2206_v17, %v2178_v29  ;;  %v4593_v17 = vld [vmem:[%s6478_s15 + $0x20] sm:$0xf] }
 0x54c   : > { %v2209_v30 = vpop.f32.mrf.mxu0 }
 0x54d   : > { %v2213_v33 = vadd.f32 %v2209_v30, %v2179_v31 }
 0x554   : > { %v2240_v24 = vpop.f32.mrf.mxu1 }
 0x555   : > { %v2246_v34 = vadd.f32 %v2240_v24, %v2212_v32 }
 0x557   : > { %v2260_v39 = vadd.f32 %v2253_v35, %v2246_v34 }
 0x559   : > { %v2262_v42 = vmax.f32 %v2260_v39, 0.0 }
 0x55c   : > { %v2243_v36 = vpop.f32.mrf.mxu1 }
 0x55d   : > { %v2247_v37 = vadd.f32 %v2243_v36, %v2213_v33 }
 0x55f   : > { %v2261_v40 = vadd.f32 %v2258_v38, %v2247_v37 }
 0x561   : > { %v2263_v41 = vmax.f32 %v2261_v40, 0.0 }
 0x563   : > { %2350 = vmatpush.msrb.mxu3 %v2263_v41 }
 0x565   : > { %2351 = vmatpush.msrb.mxu3 %v2262_v42 }
 0x566   : > { %4544 = vmatmul.msk.f32.vlgmr.msrb.gmra.mxu3 %vm1560_vm3, %v2264_v43 }
 0x56e   : > { %4545 = vmatmul.msk.f32.gmra.mxu3 %vm1560_vm3, %v2265_v44 }
 0x576   : > { %4546 = vmatmul.msk.f32.gmra.mxu3 %vm1560_vm3, %v2266_v45 }
 0x57e   : > { %4547 = vmatmul.msk.f32.gmra.mxu3 %vm1560_vm3, %v2267_v46 }
 0x586   : > { %4548 = vmatmul.msk.f32.gmra.mxu3 %vm1560_vm3, %v2268_v47 }
 0x58e   : > { %4549 = vmatmul.msk.f32.gmra.mxu3 %vm1560_vm3, %v2269_v48 }
 0x596   : > { %4550 = vmatmul.msk.f32.gmra.mxu3 %vm1560_vm3, %v2270_v49 }
 0x59e   : > { %4551 = vmatmul.msk.f32.gmra.mxu3 %vm1560_vm3, %v2271_v50 }
 0x5a6   : > { %4552 = vmatmul.msk.f32.gmra.mxu3 %vm1560_vm3, %v2272_v51 }
 0x5ae   : > { %4553 = vmatmul.msk.f32.gmra.mxu3 %vm1560_vm3, %v2273_v52 }
 0x5b6   : > { %4554 = vmatmul.msk.f32.gmra.mxu3 %vm1560_vm3, %v2274_v53 }
 0x5be   : > { %4555 = vmatmul.msk.f32.gmra.mxu3 %vm1560_vm3, %v2275_v54 }
 0x5c6   : > { %4556 = vmatmul.msk.f32.gmra.mxu3 %vm1560_vm3, %v2276_v55 }
 0x5ce   : > { %4557 = vmatmul.msk.f32.gmra.mxu3 %vm1560_vm3, %v2277_v57 }
 0x5d6   : > { %4558 = vmatmul.msk.f32.gmra.mxu3 %vm1560_vm3, %v2278_v58  ;;  %v2733_v58 = vpop.permute.xlu0 %2732 }
 0x5de   : > { %4559 = vmatmul.msk.f32.gmra.mxu3 %vm1560_vm3, %v2279_v60 }
 0x5e6   : > { %4560 = vmatmul.msk.f32.gmra.mxu3 %vm1560_vm3, %v2280_v61 }
 0x5e9   : > { %v2353_v63 = vpop.f32.mrf.mxu3 }
 0x5ea   : > { %4567 = vmatmul.msk.f32.vlgmr.msra.gmra.mxu1 %vm2410_vm5, %v2353_v63 }
 0x5eb   : > { %4582 = vmatpush.msk.msra.mxu1 %vm2417_vm4, %v4581_v8  ;;  %v2752_v8 = vld [vmem:[%s6479_s16 + $0x40] sm:$0xff] }
 0x5ee   : > { %4561 = vmatmul.msk.f32.gmra.mxu3 %vm1560_vm3, %v2281_v0  ;;  %v2744_v0 = vld [vmem:[%s6479_s16] sm:$0xff] }
 0x5f1   : > { %v2356_v1 = vpop.f32.mrf.mxu3 }
 0x5f2   : > { %4568 = vmatmul.msk.f32.gmra.mxu1 %vm2410_vm5, %v2356_v1  ;;  %v2745_v1 = vld [vmem:[%s6479_s16 + $0x8] sm:$0xff] }
 0x5f9   : > { %v2359_v3 = vpop.f32.mrf.mxu3 }
 0x5fa   : > { %4564 = vmatmul.msk.f32.vlgmr.msra.gmra.mxu0 %vm2410_vm5, %v2359_v3  ;;  %v2747_v3 = vld [vmem:[%s6479_s16 + $0x18] sm:$0xff] }
 0x5fb   : > { %4578 = vmatpush.msk.msra.mxu0 %vm2417_vm4, %v4577_v5  ;;  %v2749_v5 = vld [vmem:[%s6479_s16 + $0x28] sm:$0xff] }
 0x601   : > { %v2362_v4 = vpop.f32.mrf.mxu3 }
 0x602   : > { %4565 = vmatmul.msk.f32.gmra.mxu0 %vm2410_vm5, %v2362_v4  ;;  %v2748_v4 = vld [vmem:[%s6479_s16 + $0x20] sm:$0xff] }
 0x609   : > { %v2365_v6 = vpop.f32.mrf.mxu3 }
 0x60a   : > { %4571 = vmatmul.msk.f32.vlgmr.msrb.gmra.mxu0 %vm2410_vm5, %v2365_v6  ;;  %v2750_v6 = vld [vmem:[%s6479_s16 + $0x30] sm:$0xff] }
 0x60b   : > { %4586 = vmatpush.msk.msrb.mxu0 %vm2417_vm4, %v4585_v11  ;;  %v2755_v11 = vld [vmem:[%s6479_s16 + $0x58] sm:$0xff] }
 0x611   : > { %v2368_v7 = vpop.f32.mrf.mxu3 }
 0x612   : > { %4572 = vmatmul.msk.f32.gmra.mxu0 %vm2410_vm5, %v2368_v7  ;;  %v2751_v7 = vld [vmem:[%s6479_s16 + $0x38] sm:$0xff] }
 0x619   : > { %v2371_v9 = vpop.f32.mrf.mxu3 }
 0x61a   : > { %4575 = vmatmul.msk.f32.vlgmr.msrb.gmra.mxu1 %vm2410_vm5, %v2371_v9  ;;  %v2753_v9 = vld [vmem:[%s6479_s16 + $0x48] sm:$0xff] }
 0x61b   : > { %4590 = vmatpush.msk.msrb.mxu1 %vm2417_vm4, %v4589_v14  ;;  %v2757_v14 = vld [vmem:[%s6479_s16 + $0x68] sm:$0xff] }
 0x621   : > { %v2374_v10 = vpop.f32.mrf.mxu3 }
 0x622   : > { %4576 = vmatmul.msk.f32.gmra.mxu1 %vm2410_vm5, %v2374_v10  ;;  %v2754_v10 = vld [vmem:[%s6479_s16 + $0x50] sm:$0xff] }
 0x629   : > { %v2377_v12 = vpop.f32.mrf.mxu3 }
 0x62a   : > { %4579 = vmatmul.msk.f32.vlgmr.msra.gmra.mxu0 %vm2410_vm5, %v2377_v12  ;;  %v3013_v12 = vld [vmem:[%s6481_s18] sm:$0xf] }
 0x62b   : > { %4594 = vmatpush.msk.msra.mxu0 %vm2417_vm4, %v4593_v17  ;;  %v4633_v17 = vld [vmem:[%s6481_s18 + $0x4] sm:$0xf] }
 0x62c   : > { %4634 = vmatpush.msk.msra.mxu2 %vm2417_vm4, %v4633_v17 }
 0x631   : > { %v2380_v13 = vpop.f32.mrf.mxu3 }
 0x632   : > { %4580 = vmatmul.msk.f32.gmra.mxu0 %vm2410_vm5, %v2380_v13  ;;  %v2756_v13 = vld [vmem:[%s6479_s16 + $0x60] sm:$0xff] }
 0x639   : > { %v2383_v15 = vpop.f32.mrf.mxu3 }
 0x63a   : > { %4583 = vmatmul.msk.f32.vlgmr.msra.gmra.mxu1 %vm2410_vm5, %v2383_v15  ;;  %v2758_v15 = vld [vmem:[%s6479_s16 + $0x70] sm:$0xff] }
 0x641   : > { %v2386_v16 = vpop.f32.mrf.mxu3 }
 0x642   : > { %4584 = vmatmul.msk.f32.gmra.mxu1 %vm2410_vm5, %v2386_v16  ;;  %v2759_v16 = vld [vmem:[%s6479_s16 + $0x78] sm:$0xff] }
 0x649   : > { %v2389_v18 = vpop.f32.mrf.mxu3 }
 0x64a   : > { %4587 = vmatmul.msk.f32.vlgmr.msrb.gmra.mxu0 %vm2410_vm5, %v2389_v18 }
 0x64b   : > { %4639 = vmatpush.msk.msrb.mxu0 %vm2417_vm4, %v3013_v12 }
 0x651   : > { %v2392_v19 = vpop.f32.mrf.mxu3 }
 0x652   : > { %4588 = vmatmul.msk.f32.gmra.mxu0 %vm2410_vm5, %v2392_v19  ;;  %v2760_v19 = vld [vmem:[%s6479_s16 + $0x80] sm:$0xff] }
 0x659   : > { %v2395_v20 = vpop.f32.mrf.mxu3 }
 0x65a   : > { %4591 = vmatmul.msk.f32.vlgmr.msrb.gmra.mxu1 %vm2410_vm5, %v2395_v20 }
 0x661   : > { %v2398_v21 = vpop.f32.mrf.mxu3 }
 0x662   : > { %4592 = vmatmul.msk.f32.gmra.mxu1 %vm2410_vm5, %v2398_v21  ;;  %v2761_v21 = vld [vmem:[%s6479_s16 + $0x88] sm:$0xff] }
 0x667   : > { %v2470_v26 = vpop.f32.mrf.mxu1 }
 0x669   : > { %v2401_v22 = vpop.f32.mrf.mxu3 }
 0x66a   : > { %4595 = vmatmul.msk.f32.vlgmr.msra.gmra.mxu0 %vm2410_vm5, %v2401_v22 }
 0x66f   : > { %v2473_v28 = vpop.f32.mrf.mxu1 }
 0x671   : > { %v2404_v23 = vpop.f32.mrf.mxu3 }
 0x672   : > { %4596 = vmatmul.msk.f32.gmra.mxu0 %vm2410_vm5, %v2404_v23  ;;  %v2762_v23 = vld [vmem:[%s6479_s16 + $0x90] sm:$0xff] }
 0x677   : > { %v2438_v24 = vpop.f32.mrf.mxu0 }
 0x678   : > { %v2471_v38 = vadd.f32 %v2470_v26, %v2438_v24  ;;  %v4644_v26 = vld [vmem:[%s6481_s18 + $0x8] sm:$0xf] }
 0x679   : > { %4645 = vmatpush.msk.msrb.mxu2 %vm2417_vm4, %v4644_v26 }
 0x67f   : > { %v2441_v25 = vpop.f32.mrf.mxu0 }
 0x680   : > { %v2474_v40 = vadd.f32 %v2473_v28, %v2441_v25  ;;  %v2763_v25 = vld [vmem:[%s6479_s16 + $0x98] sm:$0xff]  ;;  %v2764_v28 = vld [vmem:[%s6479_s16 + $0xa0] sm:$0xff] }
 0x687   : > { %v2504_v27 = vpop.f32.mrf.mxu0 }
 0x688   : > { %v2510_v41 = vadd.f32 %v2504_v27, %v2471_v38 }
 0x68f   : > { %v2507_v29 = vpop.f32.mrf.mxu0 }
 0x690   : > { %v2511_v42 = vadd.f32 %v2507_v29, %v2474_v40  ;;  %v4656_v40 = vld [vmem:[%s6481_s18 + $0x10] sm:$0xf] }
 0x691   : > { %4657 = vmatpush.msk.msra.mxu3 %vm2417_vm4, %v4656_v40 }
 0x697   : > { %v2540_v30 = vpop.f32.mrf.mxu1 }
 0x698   : > { %v2546_v43 = vadd.f32 %v2540_v30, %v2510_v41  ;;  %v2765_v30 = vld [vmem:[%s6479_s16 + $0xa8] sm:$0xff] }
 0x69f   : > { %v2543_v32 = vpop.f32.mrf.mxu1 }
 0x6a0   : > { %v2547_v44 = vadd.f32 %v2543_v32, %v2511_v42  ;;  %v2766_v32 = vld [vmem:[%s6479_s16 + $0xb0] sm:$0xff] }
 0x6a1   : > { %v2770_v42 = vld [vmem:[%s6479_s16 + $0xd0] sm:$0xff] }
 0x6a7   : > { %v2576_v31 = vpop.f32.mrf.mxu0 }
 0x6a8   : > { %v2582_v45 = vadd.f32 %v2576_v31, %v2546_v43 }
 0x6af   : > { %v2579_v33 = vpop.f32.mrf.mxu0 }
 0x6b0   : > { %v2583_v47 = vadd.f32 %v2579_v33, %v2547_v44  ;;  %v2771_v44 = vld [vmem:[%s6479_s16 + $0xd8] sm:$0xff] }
 0x6b7   : > { %v2612_v34 = vpop.f32.mrf.mxu1 }
 0x6b8   : > { %v2618_v48 = vadd.f32 %v2612_v34, %v2582_v45  ;;  %v2767_v34 = vld [vmem:[%s6479_s16 + $0xb8] sm:$0xff] }
 0x6bf   : > { %v2615_v36 = vpop.f32.mrf.mxu1 }
 0x6c0   : > { %v2619_v49 = vadd.f32 %v2615_v36, %v2583_v47 }
 0x6c7   : > { %v2648_v35 = vpop.f32.mrf.mxu0 }
 0x6c8   : > { %v2654_v50 = vadd.f32 %v2648_v35, %v2618_v48  ;;  %v4650_v35 = vld [vmem:[%s6481_s18 + $0xc] sm:$0xf] }
 0x6c9   : > { %4651 = vmatpush.msk.msra.mxu0 %vm2417_vm4, %v4650_v35  ;;  %v2773_v48 = vld [vmem:[%s6479_s16 + $0xe8] sm:$0xff] }
 0x6cf   : > { %v2651_v37 = vpop.f32.mrf.mxu0 }
 0x6d0   : > { %v2655_v52 = vadd.f32 %v2651_v37, %v2619_v49  ;;  %v2768_v37 = vld [vmem:[%s6479_s16 + $0xc0] sm:$0xff] }
 0x6d7   : > { %v2684_v39 = vpop.f32.mrf.mxu1 }
 0x6d8   : > { %v2690_v53 = vadd.f32 %v2684_v39, %v2654_v50  ;;  %v2769_v39 = vld [vmem:[%s6479_s16 + $0xc8] sm:$0xff]  ;;  %v2774_v50 = vld [vmem:[%s6479_s16 + $0xf0] sm:$0xff] }
 0x6df   : > { %v2687_v51 = vpop.f32.mrf.mxu1 }
 0x6e0   : > { %v2691_v54 = vadd.f32 %v2687_v51, %v2655_v52  ;;  %v2775_v52 = vld [vmem:[%s6479_s16 + $0xf8] sm:$0xff] }
 0x6e7   : > { %v2720_v46 = vpop.f32.mrf.mxu0 }
 0x6e8   : > { %v2726_v55 = vadd.f32 %v2720_v46, %v2690_v53  ;;  %v2772_v46 = vld [vmem:[%s6479_s16 + $0xe0] sm:$0xff]  ;;  %v4662_v53 = vld [vmem:[%s6481_s18 + $0x14] sm:$0xf] }
 0x6ea   : > { %v2740_v60 = vadd.f32 %v2733_v58, %v2726_v55  ;;  %v2776_v55 = vld [vmem:[%s6479_s16 + $0x100] sm:$0xff] }
 0x6ec   : > { %v2742_v63 = vmax.f32 %v2740_v60, 0.0 }
 0x6ef   : > { %v2723_v56 = vpop.f32.mrf.mxu0 }
 0x6f0   : > { %v2727_v57 = vadd.f32 %v2723_v56, %v2691_v54 }
 0x6f2   : > { %v2741_v61 = vadd.f32 %v2738_v59, %v2727_v57  ;;  %v2777_v57 = vld [vmem:[%s6479_s16 + $0x108] sm:$0xff]  ;;  %v2778_v59 = vld [vmem:[%s6479_s16 + $0x110] sm:$0xff] }
 0x6f4   : > { %v2743_v62 = vmax.f32 %v2741_v61, 0.0  ;;  %v2779_v61 = vld [vmem:[%s6479_s16 + $0x118] sm:$0xff] }
 0x6f6   : > { %2902 = vmatpush.msra.mxu1 %v2743_v62  ;;  %v4668_v62 = vld [vmem:[%s6481_s18 + $0x18] sm:$0xf] }
 0x6f8   : > { %2903 = vmatpush.msra.mxu1 %v2742_v63 }
 0x6f9   : > { %4597 = vmatmul.msk.f32.vlgmr.msra.gmra.mxu1 %vm1560_vm3, %v2744_v0 }
 0x701   : > { %4598 = vmatmul.msk.f32.gmra.mxu1 %vm1560_vm3, %v2745_v1 }
 0x709   : > { %4599 = vmatmul.msk.f32.gmra.mxu1 %vm1560_vm3, %v2746_v2 }
 0x711   : > { %4600 = vmatmul.msk.f32.gmra.mxu1 %vm1560_vm3, %v2747_v3  ;;  %v4674_v3 = vld [vmem:[%s6481_s18 + $0x1c] sm:$0xf] }
 0x712   : > { %4675 = vmatpush.msk.msrb.mxu3 %vm2417_vm4, %v4674_v3 }
 0x719   : > { %4601 = vmatmul.msk.f32.gmra.mxu1 %vm1560_vm3, %v2748_v4 }
 0x721   : > { %4602 = vmatmul.msk.f32.gmra.mxu1 %vm1560_vm3, %v2749_v5 }
 0x729   : > { %4603 = vmatmul.msk.f32.gmra.mxu1 %vm1560_vm3, %v2750_v6 }
 0x731   : > { %4604 = vmatmul.msk.f32.gmra.mxu1 %vm1560_vm3, %v2751_v7 }
 0x739   : > { %4605 = vmatmul.msk.f32.gmra.mxu1 %vm1560_vm3, %v2752_v8  ;;  %v4680_v8 = vld [vmem:[%s6481_s18 + $0x20] sm:$0xf] }
 0x741   : > { %4606 = vmatmul.msk.f32.gmra.mxu1 %vm1560_vm3, %v2753_v9 }
 0x749   : > { %4607 = vmatmul.msk.f32.gmra.mxu1 %vm1560_vm3, %v2754_v10 }
 0x751   : > { %4608 = vmatmul.msk.f32.gmra.mxu1 %vm1560_vm3, %v2755_v11 }
 0x759   : > { %4609 = vmatmul.msk.f32.gmra.mxu1 %vm1560_vm3, %v2756_v13 }
 0x761   : > { %4610 = vmatmul.msk.f32.gmra.mxu1 %vm1560_vm3, %v2757_v14 }
 0x769   : > { %4611 = vmatmul.msk.f32.gmra.mxu1 %vm1560_vm3, %v2758_v15 }
 0x771   : > { %4612 = vmatmul.msk.f32.gmra.mxu1 %vm1560_vm3, %v2759_v16 }
 0x776   : > { %v2905_v18 = vpop.f32.mrf.mxu1 }
 0x777   : > { %4640 = vmatmul.msk.f32.vlgmr.msrb.gmra.mxu0 %vm2410_vm5, %v2905_v18 }
 0x778   : > { %4669 = vmatpush.msk.msrb.mxu0 %vm2417_vm4, %v4668_v62 }
 0x779   : > { %4613 = vmatmul.msk.f32.gmra.mxu1 %vm1560_vm3, %v2760_v19 }
 0x77e   : > { %v2908_v20 = vpop.f32.mrf.mxu1 }
 0x77f   : > { %4641 = vmatmul.msk.f32.gmra.mxu0 %vm2410_vm5, %v2908_v20 }
 0x781   : > { %4614 = vmatmul.msk.f32.gmra.mxu1 %vm1560_vm3, %v2761_v21 }
 0x786   : > { %v2911_v22 = vpop.f32.mrf.mxu1 }
 0x787   : > { %4642 = vmatmul.msk.f32.gmra.mxu0 %vm2410_vm5, %v2911_v22 }
 0x789   : > { %4615 = vmatmul.msk.f32.gmra.mxu1 %vm1560_vm3, %v2762_v23 }
 0x78e   : > { %v2914_v24 = vpop.f32.mrf.mxu1 }
 0x78f   : > { %4643 = vmatmul.msk.f32.gmra.mxu0 %vm2410_vm5, %v2914_v24 }
 0x791   : > { %4616 = vmatmul.msk.f32.gmra.mxu1 %vm1560_vm3, %v2763_v25 }
 0x796   : > { %v2917_v27 = vpop.f32.mrf.mxu1 }
 0x797   : > { %4635 = vmatmul.msk.f32.vlgmr.msra.gmra.mxu2 %vm2410_vm5, %v2917_v27 }
 0x798   : > { %4663 = vmatpush.msk.msra.mxu2 %vm2417_vm4, %v4662_v53 }
 0x799   : > { %4617 = vmatmul.msk.f32.gmra.mxu1 %vm1560_vm3, %v2764_v28 }
 0x79e   : > { %v2920_v29 = vpop.f32.mrf.mxu1 }
 0x79f   : > { %4636 = vmatmul.msk.f32.gmra.mxu2 %vm2410_vm5, %v2920_v29 }
 0x7a1   : > { %4618 = vmatmul.msk.f32.gmra.mxu1 %vm1560_vm3, %v2765_v30 }
 0x7a6   : > { %v2923_v31 = vpop.f32.mrf.mxu1 }
 0x7a7   : > { %4637 = vmatmul.msk.f32.gmra.mxu2 %vm2410_vm5, %v2923_v31 }
 0x7a9   : > { %4619 = vmatmul.msk.f32.gmra.mxu1 %vm1560_vm3, %v2766_v32 }
 0x7ae   : > { %v2926_v33 = vpop.f32.mrf.mxu1 }
 0x7af   : > { %4638 = vmatmul.msk.f32.gmra.mxu2 %vm2410_vm5, %v2926_v33 }
 0x7b1   : > { %4620 = vmatmul.msk.f32.gmra.mxu1 %vm1560_vm3, %v2767_v34 }
 0x7b6   : > { %v2929_v36 = vpop.f32.mrf.mxu1 }
 0x7b7   : > { %4646 = vmatmul.msk.f32.vlgmr.msrb.gmra.mxu2 %vm2410_vm5, %v2929_v36 }
 0x7b8   : > { %4681 = vmatpush.msk.msrb.mxu2 %vm2417_vm4, %v4680_v8 }
 0x7b9   : > { %4621 = vmatmul.msk.f32.gmra.mxu1 %vm1560_vm3, %v2768_v37 }
 0x7be   : > { %v2932_v38 = vpop.f32.mrf.mxu1 }
 0x7bf   : > { %4647 = vmatmul.msk.f32.gmra.mxu2 %vm2410_vm5, %v2932_v38 }
 0x7c1   : > { %4622 = vmatmul.msk.f32.gmra.mxu1 %vm1560_vm3, %v2769_v39 }
 0x7c6   : > { %v2935_v41 = vpop.f32.mrf.mxu1 }
 0x7c7   : > { %4648 = vmatmul.msk.f32.gmra.mxu2 %vm2410_vm5, %v2935_v41 }
 0x7c9   : > { %4623 = vmatmul.msk.f32.gmra.mxu1 %vm1560_vm3, %v2770_v42 }
 0x7ce   : > { %v2938_v43 = vpop.f32.mrf.mxu1 }
 0x7cf   : > { %4649 = vmatmul.msk.f32.gmra.mxu2 %vm2410_vm5, %v2938_v43 }
 0x7d1   : > { %4624 = vmatmul.msk.f32.gmra.mxu1 %vm1560_vm3, %v2771_v44 }
 0x7d6   : > { %v2941_v45 = vpop.f32.mrf.mxu1 }
 0x7d7   : > { %4652 = vmatmul.msk.f32.vlgmr.msra.gmra.mxu0 %vm2410_vm5, %v2941_v45 }
 0x7d9   : > { %4625 = vmatmul.msk.f32.gmra.mxu1 %vm1560_vm3, %v2772_v46 }
 0x7de   : > { %v2944_v47 = vpop.f32.mrf.mxu1 }
 0x7df   : > { %4653 = vmatmul.msk.f32.gmra.mxu0 %vm2410_vm5, %v2944_v47 }
 0x7e1   : > { %4626 = vmatmul.msk.f32.gmra.mxu1 %vm1560_vm3, %v2773_v48 }
 0x7e6   : > { %v2947_v49 = vpop.f32.mrf.mxu1 }
 0x7e7   : > { %4654 = vmatmul.msk.f32.gmra.mxu0 %vm2410_vm5, %v2947_v49 }
 0x7e9   : > { %4627 = vmatmul.msk.f32.gmra.mxu1 %vm1560_vm3, %v2774_v50 }
 0x7ee   : > { %v2950_v51 = vpop.f32.mrf.mxu1 }
 0x7ef   : > { %4655 = vmatmul.msk.f32.gmra.mxu0 %vm2410_vm5, %v2950_v51 }
 0x7f1   : > { %4628 = vmatmul.msk.f32.gmra.mxu1 %vm1560_vm3, %v2775_v52 }
 0x7f4   : > { %v3092_v20 = vpop.f32.mrf.mxu0 }
 0x7f6   : > { %v2953_v54 = vpop.f32.mrf.mxu1 }
 0x7f7   : > { %4658 = vmatmul.msk.f32.vlgmr.msra.gmra.mxu3 %vm2410_vm5, %v2953_v54 }
 0x7f9   : > { %4629 = vmatmul.msk.f32.gmra.mxu1 %vm1560_vm3, %v2776_v55 }
 0x7fc   : > { %v3095_v22 = vpop.f32.mrf.mxu0 }
 0x7fe   : > { %v2956_v56 = vpop.f32.mrf.mxu1 }
 0x7ff   : > { %4659 = vmatmul.msk.f32.gmra.mxu3 %vm2410_vm5, %v2956_v56 }
 0x801   : > { %4630 = vmatmul.msk.f32.gmra.mxu1 %vm1560_vm3, %v2777_v57 }
 0x804   : > { %v3098_v24 = vpop.f32.mrf.mxu0 }
 0x806   : > { %v2959_v58 = vpop.f32.mrf.mxu1 }
 0x807   : > { %4660 = vmatmul.msk.f32.gmra.mxu3 %vm2410_vm5, %v2959_v58 }
 0x809   : > { %4631 = vmatmul.msk.f32.gmra.mxu1 %vm1560_vm3, %v2778_v59 }
 0x80c   : > { %v3101_v26 = vpop.f32.mrf.mxu0 }
 0x80e   : > { %v2962_v60 = vpop.f32.mrf.mxu1 }
 0x80f   : > { %4661 = vmatmul.msk.f32.gmra.mxu3 %vm2410_vm5, %v2962_v60 }
 0x811   : > { %4632 = vmatmul.msk.f32.gmra.mxu1 %vm1560_vm3, %v2779_v61 }
 0x816   : > { %v2965_v63 = vpop.f32.mrf.mxu1 }
 0x817   : > { %4664 = vmatmul.msk.f32.vlgmr.msra.gmra.mxu2 %vm2410_vm5, %v2965_v63 }
 0x81a   : > { %v3048_v15 = vpop.f32.mrf.mxu2 }
 0x81b   : > { %v3093_v53 = vadd.f32 %v3092_v20, %v3048_v15 }
 0x81e   : > { %v2968_v0 = vpop.f32.mrf.mxu1 }
 0x81f   : > { %4665 = vmatmul.msk.f32.gmra.mxu2 %vm2410_vm5, %v2968_v0 }
 0x822   : > { %v3051_v18 = vpop.f32.mrf.mxu2 }
 0x823   : > { %v3096_v50 = vadd.f32 %v3095_v22, %v3051_v18  ;;  %v3457_v18 = vld [vmem:[%s6480_s17 + $0x18] sm:$0xff]  ;;  %v3455_v22 = vld [vmem:[%s6480_s17 + $0x8] sm:$0xff] }
 0x826   : > { %v2971_v1 = vpop.f32.mrf.mxu1 }
 0x827   : > { %4666 = vmatmul.msk.f32.gmra.mxu2 %vm2410_vm5, %v2971_v1 }
 0x82a   : > { %v3054_v19 = vpop.f32.mrf.mxu2 }
 0x82b   : > { %v3099_v48 = vadd.f32 %v3098_v24, %v3054_v19 }
 0x82e   : > { %v2974_v2 = vpop.f32.mrf.mxu1 }
 0x82f   : > { %4667 = vmatmul.msk.f32.gmra.mxu2 %vm2410_vm5, %v2974_v2 }
 0x832   : > { %v3057_v21 = vpop.f32.mrf.mxu2 }
 0x833   : > { %v3102_v51 = vadd.f32 %v3101_v26, %v3057_v21  ;;  %v3454_v26 = vld [vmem:[%s6480_s17] sm:$0xff] }
 0x836   : > { %v2977_v4 = vpop.f32.mrf.mxu1 }
 0x837   : > { %4670 = vmatmul.msk.f32.vlgmr.msrb.gmra.mxu0 %vm2410_vm5, %v2977_v4 }
 0x83a   : > { %v3138_v23 = vpop.f32.mrf.mxu2 }
 0x83b   : > { %v3150_v57 = vadd.f32 %v3138_v23, %v3093_v53  ;;  %v3476_v53 = vld [vmem:[%s6482_s19 + $0x50] sm:$0xff] }
 0x83e   : > { %v2980_v5 = vpop.f32.mrf.mxu1 }
 0x83f   : > { %4671 = vmatmul.msk.f32.gmra.mxu0 %vm2410_vm5, %v2980_v5 }
 0x842   : > { %v3141_v25 = vpop.f32.mrf.mxu2 }
 0x843   : > { %v3151_v54 = vadd.f32 %v3141_v25, %v3096_v50  ;;  %v3499_v50 = vld [vmem:[%s6482_s19 + $0x108] sm:$0xff] }
 0x846   : > { %v2983_v6 = vpop.f32.mrf.mxu1 }
 0x847   : > { %4672 = vmatmul.msk.f32.gmra.mxu0 %vm2410_vm5, %v2983_v6 }
 0x84a   : > { %v3144_v27 = vpop.f32.mrf.mxu2 }
 0x84b   : > { %v3152_v52 = vadd.f32 %v3144_v27, %v3099_v48  ;;  %v3498_v48 = vld [vmem:[%s6482_s19 + $0x100] sm:$0xff] }
 0x84e   : > { %v2986_v7 = vpop.f32.mrf.mxu1 }
 0x84f   : > { %4673 = vmatmul.msk.f32.gmra.mxu0 %vm2410_vm5, %v2986_v7 }
 0x852   : > { %v3147_v30 = vpop.f32.mrf.mxu2 }
 0x853   : > { %v3153_v55 = vadd.f32 %v3147_v30, %v3102_v51  ;;  %v3475_v51 = vld [vmem:[%s6482_s19 + $0x48] sm:$0xff] }
 0x854   : > { %v3188_v28 = vpop.f32.mrf.mxu0 }
 0x855   : > { %v3200_v62 = vadd.f32 %v3188_v28, %v3150_v57  ;;  %v3478_v57 = vld [vmem:[%s6482_s19 + $0x60] sm:$0xff] }
 0x856   : > { %v2989_v9 = vpop.f32.mrf.mxu1 }
 0x857   : > { %4676 = vmatmul.msk.f32.vlgmr.msrb.gmra.mxu3 %vm2410_vm5, %v2989_v9 }
 0x85c   : > { %v3191_v31 = vpop.f32.mrf.mxu0 }
 0x85d   : > { %v3201_v58 = vadd.f32 %v3191_v31, %v3151_v54  ;;  %v3501_v54 = vld [vmem:[%s6482_s19 + $0x118] sm:$0xff] }
 0x85e   : > { %v2992_v10 = vpop.f32.mrf.mxu1 }
 0x85f   : > { %4677 = vmatmul.msk.f32.gmra.mxu3 %vm2410_vm5, %v2992_v10 }
 0x864   : > { %v3194_v34 = vpop.f32.mrf.mxu0 }
 0x865   : > { %v3202_v56 = vadd.f32 %v3194_v34, %v3152_v52  ;;  %v3491_v34 = vld [vmem:[%s6482_s19 + $0xc8] sm:$0xff]  ;;  %v3500_v52 = vld [vmem:[%s6482_s19 + $0x110] sm:$0xff] }
 0x866   : > { %v2995_v11 = vpop.f32.mrf.mxu1 }
 0x867   : > { %4678 = vmatmul.msk.f32.gmra.mxu3 %vm2410_vm5, %v2995_v11 }
 0x86c   : > { %v3197_v37 = vpop.f32.mrf.mxu0 }
 0x86d   : > { %v3203_v59 = vadd.f32 %v3197_v37, %v3153_v55  ;;  %v3468_v37 = vld [vmem:[%s6482_s19 + $0x10] sm:$0xff]  ;;  %v3477_v55 = vld [vmem:[%s6482_s19 + $0x58] sm:$0xff] }
 0x86e   : > { %v2998_v12 = vpop.f32.mrf.mxu1 }
 0x86f   : > { %4679 = vmatmul.msk.f32.gmra.mxu3 %vm2410_vm5, %v2998_v12 }
 0x876   : > { %v3001_v13 = vpop.f32.mrf.mxu1 }
 0x877   : > { %4682 = vmatmul.msk.f32.vlgmr.msrb.gmra.mxu2 %vm2410_vm5, %v3001_v13 }
 0x87a   : > { %v3238_v29 = vpop.f32.mrf.mxu3 }
 0x87b   : > { %v3250_v3 = vadd.f32 %v3238_v29, %v3200_v62 }
 0x87e   : > { %v3004_v14 = vpop.f32.mrf.mxu1 }
 0x87f   : > { %4683 = vmatmul.msk.f32.gmra.mxu2 %vm2410_vm5, %v3004_v14 }
 0x882   : > { %v3241_v32 = vpop.f32.mrf.mxu3 }
 0x883   : > { %v3251_v63 = vadd.f32 %v3241_v32, %v3201_v58  ;;  %v3479_v58 = vld [vmem:[%s6482_s19 + $0x68] sm:$0xff] }
 0x886   : > { %v3007_v16 = vpop.f32.mrf.mxu1 }
 0x887   : > { %4684 = vmatmul.msk.f32.gmra.mxu2 %vm2410_vm5, %v3007_v16  ;;  %v3456_v16 = vld [vmem:[%s6480_s17 + $0x10] sm:$0xff] }
 0x88a   : > { %v3244_v35 = vpop.f32.mrf.mxu3 }
 0x88b   : > { %v3252_v60 = vadd.f32 %v3244_v35, %v3202_v56  ;;  %v3467_v35 = vld [vmem:[%s6482_s19 + $0x8] sm:$0xff]  ;;  %v3735_v56 = vld [vmem:[%s6484_s21] sm:$0x1] }
 0x88e   : > { %v3010_v17 = vpop.f32.mrf.mxu1 }
 0x88f   : > { %4685 = vmatmul.msk.f32.gmra.mxu2 %vm2410_vm5, %v3010_v17 }
 0x892   : > { %v3247_v38 = vpop.f32.mrf.mxu3 }
 0x893   : > { %v3253_v0 = vadd.f32 %v3247_v38, %v3203_v59  ;;  %v3493_v38 = vld [vmem:[%s6482_s19 + $0xd8] sm:$0xff]  ;;  %v3480_v59 = vld [vmem:[%s6482_s19 + $0x70] sm:$0xff] }
 0x89a   : > { %v3288_v33 = vpop.f32.mrf.mxu2 }
 0x89b   : > { %v3300_v8 = vadd.f32 %v3288_v33, %v3250_v3  ;;  %v3466_v33 = vld [vmem:[%s6482_s19] sm:$0xff]  ;;  %v3484_v3 = vld [vmem:[%s6482_s19 + $0x90] sm:$0xff] }
 0x8a2   : > { %v3291_v36 = vpop.f32.mrf.mxu2 }
 0x8a3   : > { %v3301_v4 = vadd.f32 %v3291_v36, %v3251_v63  ;;  %v3492_v36 = vld [vmem:[%s6482_s19 + $0xd0] sm:$0xff]  ;;  %v3482_v63 = vld [vmem:[%s6482_s19 + $0x80] sm:$0xff] }
 0x8aa   : > { %v3294_v39 = vpop.f32.mrf.mxu2 }
 0x8ab   : > { %v3302_v1 = vadd.f32 %v3294_v39, %v3252_v60  ;;  %v3469_v39 = vld [vmem:[%s6482_s19 + $0x18] sm:$0xff] }
 0x8ac   : > { %v3481_v60 = vld [vmem:[%s6482_s19 + $0x78] sm:$0xff] }
 0x8b2   : > { %v3297_v42 = vpop.f32.mrf.mxu2 }
 0x8b3   : > { %v3303_v5 = vadd.f32 %v3297_v42, %v3253_v0  ;;  %v3495_v42 = vld [vmem:[%s6482_s19 + $0xe8] sm:$0xff] }
 0x8b4   : > { %v3338_v40 = vpop.f32.mrf.mxu0 }
 0x8b5   : > { %v3350_v12 = vadd.f32 %v3338_v40, %v3300_v8  ;;  %v3494_v40 = vld [vmem:[%s6482_s19 + $0xe0] sm:$0xff] }
 0x8b6   : > { %v3486_v8 = vld [vmem:[%s6482_s19 + $0xa0] sm:$0xff] }
 0x8bc   : > { %v3341_v43 = vpop.f32.mrf.mxu0 }
 0x8bd   : > { %v3351_v9 = vadd.f32 %v3341_v43, %v3301_v4  ;;  %v3471_v43 = vld [vmem:[%s6482_s19 + $0x28] sm:$0xff] }
 0x8c4   : > { %v3344_v46 = vpop.f32.mrf.mxu0 }
 0x8c5   : > { %v3352_v6 = vadd.f32 %v3344_v46, %v3302_v1  ;;  %v3497_v46 = vld [vmem:[%s6482_s19 + $0xf8] sm:$0xff]  ;;  %v3483_v1 = vld [vmem:[%s6482_s19 + $0x88] sm:$0xff] }
 0x8cc   : > { %v3347_v2 = vpop.f32.mrf.mxu0 }
 0x8cd   : > { %v3353_v10 = vadd.f32 %v3347_v2, %v3303_v5  ;;  %v3485_v5 = vld [vmem:[%s6482_s19 + $0x98] sm:$0xff] }
 0x8da   : > { %v3388_v41 = vpop.f32.mrf.mxu3 }
 0x8db   : > { %v3400_v19 = vadd.f32 %v3388_v41, %v3350_v12  ;;  %v3470_v41 = vld [vmem:[%s6482_s19 + $0x20] sm:$0xff] }
 0x8e2   : > { %v3391_v44 = vpop.f32.mrf.mxu3 }
 0x8e3   : > { %v3401_v13 = vadd.f32 %v3391_v44, %v3351_v9  ;;  %v3496_v44 = vld [vmem:[%s6482_s19 + $0xf0] sm:$0xff] }
 0x8ea   : > { %v3394_v49 = vpop.f32.mrf.mxu3 }
 0x8eb   : > { %v3402_v11 = vadd.f32 %v3394_v49, %v3352_v6  ;;  %v3474_v49 = vld [vmem:[%s6482_s19 + $0x40] sm:$0xff] }
 0x8ec   : > { %v4733_v6 = vld [vmem:[%s6484_s21 + $0x2] sm:$0x1] }
 0x8f2   : > { %v3397_v7 = vpop.f32.mrf.mxu3 }
 0x8f3   : > { %v3403_v14 = vadd.f32 %v3397_v7, %v3353_v10  ;;  %v3487_v10 = vld [vmem:[%s6482_s19 + $0xa8] sm:$0xff] }
 0x8fa   : > { %v3438_v45 = vpop.f32.mrf.mxu2 }
 0x8fb   : > { %v3450_v23 = vadd.f32 %v3438_v45, %v3400_v19  ;;  %v3472_v45 = vld [vmem:[%s6482_s19 + $0x30] sm:$0xff]  ;;  %v3490_v19 = vld [vmem:[%s6482_s19 + $0xc0] sm:$0xff] }
 0x8fd   : > { %v3458_v29 = vadd.f32 %v3454_v26, %v3450_v23  ;;  %v4745_v26 = vld [vmem:[%s6484_s21 + $0x4] sm:$0x1] }
 0x8ff   : > { %v3462_v32 = vmax.f32 %v3458_v29, 0.0 }
 0x902   : > { %v3441_v47 = vpop.f32.mrf.mxu2 }
 0x903   : > { %v3451_v20 = vadd.f32 %v3441_v47, %v3401_v13  ;;  %v3473_v47 = vld [vmem:[%s6482_s19 + $0x38] sm:$0xff]  ;;  %v3488_v13 = vld [vmem:[%s6482_s19 + $0xb0] sm:$0xff] }
 0x905   : > { %v3459_v27 = vadd.f32 %v3455_v22, %v3451_v20 }
 0x907   : > { %v3463_v31 = vmax.f32 %v3459_v27, 0.0 }
 0x90a   : > { %v3444_v61 = vpop.f32.mrf.mxu2 }
 0x90b   : > { %v3452_v15 = vadd.f32 %v3444_v61, %v3402_v11  ;;  %v4722_v61 = vld [vmem:[%s6484_s21 + $0x1] sm:$0x1] }
 0x90c   : > { %4723 = vmatpush.msk.msra.mxu3 %vm3751_vm6, %v4722_v61 }
 0x90d   : > { %v3460_v24 = vadd.f32 %v3456_v16, %v3452_v15  ;;  %v3489_v15 = vld [vmem:[%s6482_s19 + $0xb8] sm:$0xff] }
 0x90e   : > { %4734 = vmatpush.msk.msrb.mxu3 %vm3751_vm6, %v4733_v6 }
 0x90f   : > { %v3464_v30 = vmax.f32 %v3460_v24, 0.0 }
 0x912   : > { %v3447_v17 = vpop.f32.mrf.mxu2 }
 0x913   : > { %v3453_v21 = vadd.f32 %v3447_v17, %v3403_v14  ;;  %v4739_v17 = vld [vmem:[%s6484_s21 + $0x3] sm:$0x1] }
 0x915   : > { %v3461_v25 = vadd.f32 %v3457_v18, %v3453_v21 }
 0x917   : > { %v3465_v28 = vmax.f32 %v3461_v25, 0.0 }
 0x919   : > { %3622 = vmatpush.msra.mxu0 %v3465_v28  ;;  %4780 = vmatpush.msra.mxu2 %v3465_v28 }
 0x91b   : > { %3623 = vmatpush.msra.mxu0 %v3464_v30  ;;  %4781 = vmatpush.msra.mxu2 %v3464_v30 }
 0x91d   : > { %3624 = vmatpush.msra.mxu0 %v3463_v31  ;;  %4782 = vmatpush.msra.mxu2 %v3463_v31 }
 0x91f   : > { %3625 = vmatpush.msra.mxu0 %v3462_v32  ;;  %4783 = vmatpush.msra.mxu2 %v3462_v32 }
 0x920   : > { %4686 = vmatmul.msk.f32.vlgmr.msra.gmra.mxu0 %vm751_vm0, %v3466_v33  ;;  %4711 = vmatmul.msk.f32.vlgmr.msra.gmra.mxu2 %vm751_vm0, %v3491_v34  ;;  %v4751_v34 = vld [vmem:[%s6484_s21 + $0x5] sm:$0x1] }
 0x921   : > { %4728 = vmatpush.msk.msrb.mxu2 %vm3751_vm6, %v3735_v56 }
 0x923   : > { %4740 = vmatpush.msk.msra.mxu2 %vm3751_vm6, %v4739_v17 }
 0x928   : > { %4687 = vmatmul.msk.f32.gmra.mxu0 %vm751_vm0, %v3467_v35  ;;  %4712 = vmatmul.msk.f32.gmra.mxu2 %vm751_vm0, %v3492_v36 }
 0x930   : > { %4688 = vmatmul.msk.f32.gmra.mxu0 %vm751_vm0, %v3468_v37  ;;  %4713 = vmatmul.msk.f32.gmra.mxu2 %vm751_vm0, %v3493_v38 }
 0x938   : > { %4689 = vmatmul.msk.f32.gmra.mxu0 %vm751_vm0, %v3469_v39  ;;  %4714 = vmatmul.msk.f32.gmra.mxu2 %vm751_vm0, %v3494_v40 }
 0x940   : > { %4690 = vmatmul.msk.f32.gmra.mxu0 %vm751_vm0, %v3470_v41  ;;  %4715 = vmatmul.msk.f32.gmra.mxu2 %vm751_vm0, %v3495_v42  ;;  %v4757_v42 = vld [vmem:[%s6484_s21 + $0x6] sm:$0x1] }
 0x948   : > { %4691 = vmatmul.msk.f32.gmra.mxu0 %vm751_vm0, %v3471_v43  ;;  %4716 = vmatmul.msk.f32.gmra.mxu2 %vm751_vm0, %v3496_v44  ;;  %v4763_v44 = vld [vmem:[%s6484_s21 + $0x7] sm:$0x1] }
 0x950   : > { %4692 = vmatmul.msk.f32.gmra.mxu0 %vm751_vm0, %v3472_v45  ;;  %4717 = vmatmul.msk.f32.gmra.mxu2 %vm751_vm0, %v3497_v46 }
 0x958   : > { %4693 = vmatmul.msk.f32.gmra.mxu0 %vm751_vm0, %v3473_v47  ;;  %4718 = vmatmul.msk.f32.gmra.mxu2 %vm751_vm0, %v3498_v48 }
 0x960   : > { %4694 = vmatmul.msk.f32.gmra.mxu0 %vm751_vm0, %v3474_v49  ;;  %4719 = vmatmul.msk.f32.gmra.mxu2 %vm751_vm0, %v3499_v50 }
 0x968   : > { %4695 = vmatmul.msk.f32.gmra.mxu0 %vm751_vm0, %v3475_v51  ;;  %4720 = vmatmul.msk.f32.gmra.mxu2 %vm751_vm0, %v3500_v52 }
 0x970   : > { %4696 = vmatmul.msk.f32.gmra.mxu0 %vm751_vm0, %v3476_v53  ;;  %4721 = vmatmul.msk.f32.gmra.mxu2 %vm751_vm0, %v3501_v54 }
 0x978   : > { %4697 = vmatmul.msk.f32.gmra.mxu0 %vm751_vm0, %v3477_v55 }
 0x980   : > { %4698 = vmatmul.msk.f32.gmra.mxu0 %vm751_vm0, %v3478_v57  ;;  %v4769_v57 = vld [vmem:[%s6484_s21 + $0x8] sm:$0x1] }
 0x988   : > { %4699 = vmatmul.msk.f32.gmra.mxu0 %vm751_vm0, %v3479_v58 }
 0x990   : > { %4700 = vmatmul.msk.f32.gmra.mxu0 %vm751_vm0, %v3480_v59 }
 0x998   : > { %4701 = vmatmul.msk.f32.gmra.mxu0 %vm751_vm0, %v3481_v60 }
 0x99d   : > { %v3627_v62 = vpop.f32.mrf.mxu0 }
 0x99e   : > { %4729 = vmatmul.msk.f32.vlgmr.msrb.gmra.mxu2 %vm3738_vm7, %v3627_v62 }
 0x99f   : > { %4752 = vmatpush.msk.msrb.mxu2 %vm3751_vm6, %v4751_v34 }
 0x9a0   : > { %4702 = vmatmul.msk.f32.gmra.mxu0 %vm751_vm0, %v3482_v63 }
 0x9a3   : > { %v6362_v11 = vpop.f32.mrf.mxu2 }
 0x9a5   : > { %v3630_v0 = vpop.f32.mrf.mxu0 }
 0x9a6   : > { %4730 = vmatmul.msk.f32.gmra.mxu2 %vm3738_vm7, %v3630_v0 }
 0x9a8   : > { %4703 = vmatmul.msk.f32.gmra.mxu0 %vm751_vm0, %v3483_v1 }
 0x9ab   : > { %v6373_v16 = vpop.f32.mrf.mxu2 }
 0x9ad   : > { %v3633_v2 = vpop.f32.mrf.mxu0 }
 0x9ae   : > { %4731 = vmatmul.msk.f32.gmra.mxu2 %vm3738_vm7, %v3633_v2 }
 0x9b0   : > { %4704 = vmatmul.msk.f32.gmra.mxu0 %vm751_vm0, %v3484_v3 }
 0x9b3   : > { %v6385_v20 = vpop.f32.mrf.mxu2 }
 0x9b5   : > { %v3636_v4 = vpop.f32.mrf.mxu0 }
 0x9b6   : > { %4732 = vmatmul.msk.f32.gmra.mxu2 %vm3738_vm7, %v3636_v4 }
 0x9b8   : > { %4705 = vmatmul.msk.f32.gmra.mxu0 %vm751_vm0, %v3485_v5 }
 0x9bb   : > { %v3711_v22 = vpop.f32.mrf.mxu2 }
 0x9bd   : > { %v3639_v7 = vpop.f32.mrf.mxu0 }
 0x9be   : > { %4724 = vmatmul.msk.f32.vlgmr.msra.gmra.mxu3 %vm3738_vm7, %v3639_v7 }
 0x9bf   : > { %4746 = vmatpush.msk.msra.mxu3 %vm3751_vm6, %v4745_v26 }
 0x9c0   : > { %4706 = vmatmul.msk.f32.gmra.mxu0 %vm751_vm0, %v3486_v8 }
 0x9c3   : > { %v3714_v24 = vpop.f32.mrf.mxu2 }
 0x9c5   : > { %v3642_v9 = vpop.f32.mrf.mxu0 }
 0x9c6   : > { %4725 = vmatmul.msk.f32.gmra.mxu3 %vm3738_vm7, %v3642_v9 }
 0x9c8   : > { %4707 = vmatmul.msk.f32.gmra.mxu0 %vm751_vm0, %v3487_v10 }
 0x9cb   : > { %v3717_v28 = vpop.f32.mrf.mxu2 }
 0x9cd   : > { %v3645_v12 = vpop.f32.mrf.mxu0 }
 0x9ce   : > { %4726 = vmatmul.msk.f32.gmra.mxu3 %vm3738_vm7, %v3645_v12 }
 0x9d0   : > { %4708 = vmatmul.msk.f32.gmra.mxu0 %vm751_vm0, %v3488_v13 }
 0x9d3   : > { %v3720_v30 = vpop.f32.mrf.mxu2 }
 0x9d5   : > { %v3648_v14 = vpop.f32.mrf.mxu0 }
 0x9d6   : > { %4727 = vmatmul.msk.f32.gmra.mxu3 %vm3738_vm7, %v3648_v14 }
 0x9d8   : > { %4709 = vmatmul.msk.f32.gmra.mxu0 %vm751_vm0, %v3489_v15 }
 0x9db   : > { %v3723_v32 = vpop.f32.mrf.mxu2 }
 0x9dd   : > { %v3651_v18 = vpop.f32.mrf.mxu0 }
 0x9de   : > { %4735 = vmatmul.msk.f32.vlgmr.msrb.gmra.mxu3 %vm3738_vm7, %v3651_v18 }
 0x9df   : > { %4758 = vmatpush.msk.msrb.mxu3 %vm3751_vm6, %v4757_v42 }
 0x9e0   : > { %4710 = vmatmul.msk.f32.gmra.mxu0 %vm751_vm0, %v3490_v19 }
 0x9e3   : > { %v3726_v35 = vpop.f32.mrf.mxu2 }
 0x9e5   : > { %v3654_v21 = vpop.f32.mrf.mxu0 }
 0x9e6   : > { %4736 = vmatmul.msk.f32.gmra.mxu3 %vm3738_vm7, %v3654_v21 }
 0x9eb   : > { %v3729_v38 = vpop.f32.mrf.mxu2 }
 0x9ed   : > { %v3657_v23 = vpop.f32.mrf.mxu0 }
 0x9ee   : > { %4737 = vmatmul.msk.f32.gmra.mxu3 %vm3738_vm7, %v3657_v23 }
 0x9f3   : > { %v3732_v40 = vpop.f32.mrf.mxu2 }
 0x9f5   : > { %v3660_v25 = vpop.f32.mrf.mxu0 }
 0x9f6   : > { %4738 = vmatmul.msk.f32.gmra.mxu3 %vm3738_vm7, %v3660_v25 }
 0x9fd   : > { %v3663_v27 = vpop.f32.mrf.mxu0 }
 0x9fe   : > { %4741 = vmatmul.msk.f32.vlgmr.msra.gmra.mxu2 %vm3738_vm7, %v3663_v27 }
 0x9ff   : > { %4764 = vmatpush.msk.msra.mxu2 %vm3751_vm6, %v4763_v44 }
 0xa05   : > { %v3666_v29 = vpop.f32.mrf.mxu0 }
 0xa06   : > { %4742 = vmatmul.msk.f32.gmra.mxu2 %vm3738_vm7, %v3666_v29 }
 0xa0d   : > { %v3669_v31 = vpop.f32.mrf.mxu0 }
 0xa0e   : > { %4743 = vmatmul.msk.f32.gmra.mxu2 %vm3738_vm7, %v3669_v31 }
 0xa15   : > { %v3672_v33 = vpop.f32.mrf.mxu0 }
 0xa16   : > { %4744 = vmatmul.msk.f32.gmra.mxu2 %vm3738_vm7, %v3672_v33 }
 0xa1d   : > { %v3675_v36 = vpop.f32.mrf.mxu0 }
 0xa1e   : > { %4747 = vmatmul.msk.f32.vlgmr.msra.gmra.mxu3 %vm3738_vm7, %v3675_v36 }
 0xa1f   : > { %4770 = vmatpush.msk.msra.mxu3 %vm3751_vm6, %v4769_v57 }
 0xa21   : > { %v3816_v43 = vpop.f32.mrf.mxu2 }
 0xa25   : > { %v3678_v37 = vpop.f32.mrf.mxu0 }
 0xa26   : > { %4748 = vmatmul.msk.f32.gmra.mxu3 %vm3738_vm7, %v3678_v37 }
 0xa29   : > { %v3819_v48 = vpop.f32.mrf.mxu2 }
 0xa2d   : > { %v3681_v39 = vpop.f32.mrf.mxu0 }
 0xa2e   : > { %4749 = vmatmul.msk.f32.gmra.mxu3 %vm3738_vm7, %v3681_v39 }
 0xa31   : > { %v3822_v53 = vpop.f32.mrf.mxu2 }
 0xa35   : > { %v3684_v41 = vpop.f32.mrf.mxu0 }
 0xa36   : > { %4750 = vmatmul.msk.f32.gmra.mxu3 %vm3738_vm7, %v3684_v41 }
 0xa39   : > { %v3825_v58 = vpop.f32.mrf.mxu2 }
 0xa3d   : > { %v3687_v45 = vpop.f32.mrf.mxu0 }
 0xa3e   : > { %4753 = vmatmul.msk.f32.vlgmr.msrb.gmra.mxu2 %vm3738_vm7, %v3687_v45 }
 0xa41   : > { %v3772_v46 = vpop.f32.mrf.mxu3 }
 0xa42   : > { %v3817_v47 = vadd.f32 %v3816_v43, %v3772_v46 }
 0xa45   : > { %v3690_v49 = vpop.f32.mrf.mxu0 }
 0xa46   : > { %4754 = vmatmul.msk.f32.gmra.mxu2 %vm3738_vm7, %v3690_v49  ;;  %v4180_v49 = vld [vmem:[%s6483_s20 + $0x10] sm:$0xff] }
 0xa49   : > { %v3775_v50 = vpop.f32.mrf.mxu3 }
 0xa4a   : > { %v3820_v51 = vadd.f32 %v3819_v48, %v3775_v50 }
 0xa4d   : > { %v3693_v52 = vpop.f32.mrf.mxu0 }
 0xa4e   : > { %4755 = vmatmul.msk.f32.gmra.mxu2 %vm3738_vm7, %v3693_v52 }
 0xa51   : > { %v3778_v54 = vpop.f32.mrf.mxu3 }
 0xa52   : > { %v3823_v55 = vadd.f32 %v3822_v53, %v3778_v54 }
 0xa55   : > { %v3696_v56 = vpop.f32.mrf.mxu0 }
 0xa56   : > { %4756 = vmatmul.msk.f32.gmra.mxu2 %vm3738_vm7, %v3696_v56 }
 0xa59   : > { %v3781_v59 = vpop.f32.mrf.mxu3 }
 0xa5a   : > { %v3826_v60 = vadd.f32 %v3825_v58, %v3781_v59  ;;  %v4178_v59 = vld [vmem:[%s6483_s20] sm:$0xff] }
 0xa5d   : > { %v3699_v61 = vpop.f32.mrf.mxu0 }
 0xa5e   : > { %4759 = vmatmul.msk.f32.vlgmr.msrb.gmra.mxu3 %vm3738_vm7, %v3699_v61  ;;  %4765 = vmatmul.msk.f32.vlgmr.msra.gmra.mxu2 %vm3738_vm7, %v3711_v22 }
 0xa61   : > { %v3862_v62 = vpop.f32.mrf.mxu3 }
 0xa62   : > { %v3874_v63 = vadd.f32 %v3862_v62, %v3817_v47 }
 0xa66   : > { %4760 = vmatmul.msk.f32.gmra.mxu3 %vm3738_vm7, %v6362_v11  ;;  %4766 = vmatmul.msk.f32.gmra.mxu2 %vm3738_vm7, %v3714_v24 }
 0xa69   : > { %v3865_v0 = vpop.f32.mrf.mxu3 }
 0xa6a   : > { %v3875_v1 = vadd.f32 %v3865_v0, %v3820_v51  ;;  %v4181_v51 = vld [vmem:[%s6483_s20 + $0x18] sm:$0xff] }
 0xa6e   : > { %4761 = vmatmul.msk.f32.gmra.mxu3 %vm3738_vm7, %v6373_v16  ;;  %4767 = vmatmul.msk.f32.gmra.mxu2 %vm3738_vm7, %v3717_v28 }
 0xa71   : > { %v3868_v2 = vpop.f32.mrf.mxu3 }
 0xa72   : > { %v3876_v3 = vadd.f32 %v3868_v2, %v3823_v55  ;;  %v4179_v55 = vld [vmem:[%s6483_s20 + $0x8] sm:$0xff]  ;;  %v4190_v2 = vld [vmem:[%s6485_s22] sm:$0xf] }
 0xa76   : > { %4762 = vmatmul.msk.f32.gmra.mxu3 %vm3738_vm7, %v6385_v20  ;;  %4768 = vmatmul.msk.f32.gmra.mxu2 %vm3738_vm7, %v3720_v30 }
 0xa79   : > { %v3871_v4 = vpop.f32.mrf.mxu3 }
 0xa7a   : > { %v3877_v5 = vadd.f32 %v3871_v4, %v3826_v60 }
 0xa7e   : > { %4771 = vmatmul.msk.f32.vlgmr.msra.gmra.mxu3 %vm3738_vm7, %v3723_v32 }
 0xa81   : > { %v3912_v6 = vpop.f32.mrf.mxu2 }
 0xa82   : > { %v3924_v7 = vadd.f32 %v3912_v6, %v3874_v63 }
 0xa86   : > { %4772 = vmatmul.msk.f32.gmra.mxu3 %vm3738_vm7, %v3726_v35 }
 0xa89   : > { %v3915_v8 = vpop.f32.mrf.mxu2 }
 0xa8a   : > { %v3925_v9 = vadd.f32 %v3915_v8, %v3875_v1 }
 0xa8e   : > { %4773 = vmatmul.msk.f32.gmra.mxu3 %vm3738_vm7, %v3729_v38 }
 0xa91   : > { %v3918_v10 = vpop.f32.mrf.mxu2 }
 0xa92   : > { %v3926_v11 = vadd.f32 %v3918_v10, %v3876_v3  ;;  %v4191_v3 = vld [vmem:[%s6486_s23] sm:$0xf] }
 0xa96   : > { %4774 = vmatmul.msk.f32.gmra.mxu3 %vm3738_vm7, %v3732_v40 }
 0xa99   : > { %v3921_v18 = vpop.f32.mrf.mxu2 }
 0xa9a   : > { %v3927_v33 = vadd.f32 %v3921_v18, %v3877_v5 }
 0xaa1   : > { %v3962_v12 = vpop.f32.mrf.mxu3 }
 0xaa2   : > { %v3974_v13 = vadd.f32 %v3962_v12, %v3924_v7 }
 0xaa9   : > { %v3965_v14 = vpop.f32.mrf.mxu3 }
 0xaaa   : > { %v3975_v15 = vadd.f32 %v3965_v14, %v3925_v9 }
 0xab1   : > { %v3968_v16 = vpop.f32.mrf.mxu3 }
 0xab2   : > { %v3976_v17 = vadd.f32 %v3968_v16, %v3926_v11 }
 0xab9   : > { %v3971_v20 = vpop.f32.mrf.mxu3 }
 0xaba   : > { %v3977_v34 = vadd.f32 %v3971_v20, %v3927_v33 }
 0xac1   : > { %v4012_v19 = vpop.f32.mrf.mxu2 }
 0xac2   : > { %v4024_v40 = vadd.f32 %v4012_v19, %v3974_v13 }
 0xac9   : > { %v4015_v21 = vpop.f32.mrf.mxu2 }
 0xaca   : > { %v4025_v37 = vadd.f32 %v4015_v21, %v3975_v15 }
 0xad1   : > { %v4018_v23 = vpop.f32.mrf.mxu2 }
 0xad2   : > { %v4026_v35 = vadd.f32 %v4018_v23, %v3976_v17 }
 0xad9   : > { %v4021_v25 = vpop.f32.mrf.mxu2 }
 0xada   : > { %v4027_v38 = vadd.f32 %v4021_v25, %v3977_v34 }
 0xae1   : > { %v4062_v22 = vpop.f32.mrf.mxu3  ;;  %v4112_v27 = vpop.f32.mrf.mxu2 }
 0xae2   : > { %v4074_v43 = vadd.f32 %v4062_v22, %v4024_v40 }
 0xae4   : > { %v4124_v52 = vadd.f32 %v4112_v27, %v4074_v43 }
 0xae9   : > { %v4065_v24 = vpop.f32.mrf.mxu3  ;;  %v4115_v30 = vpop.f32.mrf.mxu2 }
 0xaea   : > { %v4075_v41 = vadd.f32 %v4065_v24, %v4025_v37 }
 0xaec   : > { %v4125_v46 = vadd.f32 %v4115_v30, %v4075_v41 }
 0xaf1   : > { %v4068_v26 = vpop.f32.mrf.mxu3  ;;  %v4118_v32 = vpop.f32.mrf.mxu2 }
 0xaf2   : > { %v4076_v39 = vadd.f32 %v4068_v26, %v4026_v35 }
 0xaf4   : > { %v4126_v44 = vadd.f32 %v4118_v32, %v4076_v39 }
 0xaf9   : > { %v4071_v28 = vpop.f32.mrf.mxu3  ;;  %v4121_v45 = vpop.f32.mrf.mxu2 }
 0xafa   : > { %v4077_v42 = vadd.f32 %v4071_v28, %v4027_v38 }
 0xafc   : > { %v4127_v47 = vadd.f32 %v4121_v45, %v4077_v42 }
 0xb01   : > { %v4162_v29 = vpop.f32.mrf.mxu3 }
 0xb02   : > { %v4174_v56 = vadd.f32 %v4162_v29, %v4124_v52 }
 0xb04   : > { %v4182_v62 = vadd.f32 %v4178_v59, %v4174_v56 }
 0xb06   : > { %v4186_v1 = vmax.f32 %v4182_v62, 0.0 }
 0xb09   : > { %v4165_v31 = vpop.f32.mrf.mxu3 }
 0xb0a   : > { %v4175_v53 = vadd.f32 %v4165_v31, %v4125_v46 }
 0xb0c   : > { %v4183_v60 = vadd.f32 %v4179_v55, %v4175_v53 }
 0xb0e   : > { %v4187_v0 = vmax.f32 %v4183_v60, 0.0 }
 0xb11   : > { %v4168_v36 = vpop.f32.mrf.mxu3 }
 0xb12   : > { %v4176_v48 = vadd.f32 %v4168_v36, %v4126_v44 }
 0xb14   : > { %v4184_v57 = vadd.f32 %v4180_v49, %v4176_v48 }
 0xb16   : > { %v4188_v63 = vmax.f32 %v4184_v57, 0.0 }
 0xb19   : > { %v4171_v50 = vpop.f32.mrf.mxu3 }
 0xb1a   : > { %v4177_v54 = vadd.f32 %v4171_v50, %v4127_v47 }
 0xb1c   : > { %v4185_v58 = vadd.f32 %v4181_v51, %v4177_v54 }
 0xb1e   : > { %v4189_v61 = vmax.f32 %v4185_v58, 0.0 }
 0xb20   : > { %4207 = vmatpush.msrb.mxu2 %v4189_v61 }
 0xb22   : > { %4208 = vmatpush.msrb.mxu2 %v4188_v63 }
 0xb24   : > { %4209 = vmatpush.msrb.mxu2 %v4187_v0 }
 0xb26   : > { %4210 = vmatpush.msrb.mxu2 %v4186_v1 }
 0xb27   : > { %4775 = vmatmul.msk.f32.vlgmr.msrb.gmra.mxu2 %vm751_vm0, %v4190_v2 }
 0xbaa   : > { %v4212_v4 = vpop.f32.mrf.mxu2 }
 0xbab   : > { %v4213_v5 = vadd.f32 %v4212_v4, %v4191_v3 }
 0xbad   : > { %4216 = vst.msk [vmem:[%s735_s7] sm:$0xf] %vm4215_vm8, %v4213_v5 }
 0xbae PF: > { %s34_s5 = sadd.s32 1, %s4802_s5  }
 0xbaf   : > { %p31_p4 = scmp.ge.s32.totalorder %s34_s5, 4  }
 0xbb1   :  { %33 = sbr.rel (!%p31_p4) target bundleno = 10 (0xa), region = 197 }

</bundles_post_ra>
